<compile_context>
chip_gen: v7x
topology: tpu7x:2x2x1
jax: 0.10.0
libtpu: 0.0.40
codegen_flags: <defaults>
</compile_context>

<pallas_src>
import functools

import jax
import jax.numpy as jnp
from jax.experimental import pallas as pl
from jax.experimental.pallas import tpu as pltpu

LANE = 128
_VMEM_LIMIT = 32 * 1024 * 1024


def _round_up(x, m):
    return (x + m - 1) // m * m


# ---------------------------------------------------------------------------
# Kernel 1: tiled (M, K) @ (K, Cout) + bias + ReLU   (the 1x1 "upsample" conv)
# ---------------------------------------------------------------------------
def _mm_bias_relu_kernel(x_ref, w_ref, b_ref, o_ref):
    y = jnp.dot(x_ref[...], w_ref[...], preferred_element_type=jnp.float32)
    y = jnp.maximum(y + b_ref[...], 0.0)
    o_ref[...] = y.astype(o_ref.dtype)


def _mm_bias_relu(x, w, b, *, tm):
    mp, kp = x.shape
    coutp = w.shape[1]
    return pl.pallas_call(
        _mm_bias_relu_kernel,
        out_shape=jax.ShapeDtypeStruct((mp, coutp), jnp.bfloat16),
        grid=(mp // tm,),
        in_specs=[
            pl.BlockSpec((tm, kp), lambda i: (i, 0)),
            pl.BlockSpec((kp, coutp), lambda i: (0, 0)),   # resident weights
            pl.BlockSpec((1, coutp), lambda i: (0, 0)),
        ],
        out_specs=pl.BlockSpec((tm, coutp), lambda i: (i, 0)),
        compiler_params=pltpu.CompilerParams(
            dimension_semantics=("parallel",),
            vmem_limit_bytes=_VMEM_LIMIT,
        ),
    )(x, w, b)


# ---------------------------------------------------------------------------
# Kernel 2: fused 3x3 conv (implicit GEMM) + bias + ReLU
# ---------------------------------------------------------------------------
def _conv3x3_kernel(x_ref, w_ref, b_ref, o_ref, *, tr, ws, ho, wo):
    # x_ref : (lin, cinp)       flat padded input (row stride ws), resident
    # w_ref : (9, cinp, coutp)  tap-major weights, resident
    # b_ref : (1, coutp)        f32 bias
    # o_ref : (tr, ws, coutp)   one output row tile (row stride == ws)
    coutp = o_ref.shape[-1]
    m = tr * ws
    r = pl.program_id(1)
    base = pl.multiple_of(r * m, 8)
    win = x_ref[pl.ds(base, m + 2 * ws + 8), :]              # halo window
    acc = jnp.zeros((m, coutp), jnp.float32)
    for kh in range(3):
        for kw in range(3):
            off = kh * ws + kw
            acc = acc + jnp.dot(win[off:off + m, :], w_ref[kh * 3 + kw],
                                preferred_element_type=jnp.float32)
    y = jnp.maximum(acc + b_ref[...], 0.0).reshape(tr, ws, coutp)
    # zero out-of-range rows / right-edge wrap columns so this buffer can be
    # chained straight into the next conv.
    row = r * tr + jax.lax.broadcasted_iota(jnp.int32, (tr, ws, 1), 0)
    col = jax.lax.broadcasted_iota(jnp.int32, (tr, ws, 1), 1)
    y = jnp.where(jnp.logical_and(row < ho, col < wo), y, 0.0)
    o_ref[...] = y.astype(o_ref.dtype)


def _conv3x3_bias_relu(x_flat, w9, b, *, ws, ho, wo, tr, n_tiles):
    n, lin, cinp = x_flat.shape
    coutp = w9.shape[-1]
    kernel = functools.partial(_conv3x3_kernel, tr=tr, ws=ws, ho=ho, wo=wo)
    return pl.pallas_call(
        kernel,
        out_shape=jax.ShapeDtypeStruct((n, n_tiles * tr, ws, coutp), jnp.bfloat16),
        grid=(n, n_tiles),
        in_specs=[
            pl.BlockSpec((None, lin, cinp), lambda b_, r_: (b_, 0, 0)),
            pl.BlockSpec((9, cinp, coutp), lambda b_, r_: (0, 0, 0)),
            pl.BlockSpec((1, coutp), lambda b_, r_: (0, 0)),
        ],
        out_specs=pl.BlockSpec((None, tr, ws, coutp),
                               lambda b_, r_: (b_, r_, 0, 0)),
        compiler_params=pltpu.CompilerParams(
            dimension_semantics=("parallel", "parallel"),
            vmem_limit_bytes=_VMEM_LIMIT,
        ),
    )(x_flat, w9, b)


# ---------------------------------------------------------------------------
# UBlock parameters + forward
# ---------------------------------------------------------------------------
def init_ublock_params(key, left_chan, up_chan, out_chan):
    ks = jax.random.split(key, 6)
    cin1 = left_chan + up_chan
    return {
        # upsample: Conv2d(up, 4*up, k=1, bias=True) -> ReLU -> PixelShuffle(2)
        "up_w": 0.1 * jax.random.normal(ks[0], (up_chan * 4, up_chan, 1, 1), jnp.float32),
        "up_b": 0.1 * jax.random.normal(ks[1], (up_chan * 4,), jnp.float32),
        # BatchNorm2d(left_chan) -- inference mode with running stats
        "bn_gamma": jnp.ones((left_chan,), jnp.float32),
        "bn_beta": jnp.zeros((left_chan,), jnp.float32),
        "bn_mean": jnp.zeros((left_chan,), jnp.float32),
        "bn_var": jnp.ones((left_chan,), jnp.float32),
        # block: ReLU -> Conv3x3(left+up, out) -> ReLU -> Conv3x3(out, out) -> ReLU
        "c1_w": 0.1 * jax.random.normal(ks[2], (out_chan, cin1, 3, 3), jnp.float32),
        "c1_b": 0.1 * jax.random.normal(ks[3], (out_chan,), jnp.float32),
        "c2_w": 0.1 * jax.random.normal(ks[4], (out_chan, out_chan, 3, 3), jnp.float32),
        "c2_b": 0.1 * jax.random.normal(ks[5], (out_chan,), jnp.float32),
    }


def ublock_forward(params, downfeat, upfeat, *, padding=0, eps=1e-5):
    """downfeat: (N, left, H, W) NCHW; upfeat: (N, up, h, w) NCHW -> NCHW output."""
    n, left, hd, wd = downfeat.shape
    _, up, hu, wu = upfeat.shape
    out_chan = params["c1_b"].shape[0]
    cin1 = left + up
    act_dt = jnp.bfloat16

    # ---- self.upsample: 1x1 conv + bias + ReLU (Pallas) -> PixelShuffle(2) ----
    c4 = 4 * up
    kp = _round_up(up, LANE)
    c4p = _round_up(c4, LANE)
    m_tot = n * hu * wu
    tm = min(512, _round_up(m_tot, 8))
    mp = _round_up(m_tot, tm)
    x_up = jnp.transpose(upfeat, (0, 2, 3, 1)).reshape(m_tot, up)
    x_up_p = jnp.zeros((mp, kp), act_dt).at[:m_tot, :up].set(x_up.astype(act_dt))
    w_up = params["up_w"].reshape(c4, up).T                         # (up, 4*up)
    w_up_p = jnp.zeros((kp, c4p), act_dt).at[:up, :c4].set(w_up.astype(act_dt))
    b_up_p = jnp.zeros((1, c4p), jnp.float32).at[0, :c4].set(params["up_b"])
    y_up = _mm_bias_relu(x_up_p, w_up_p, b_up_p, tm=tm)
    y_up = y_up[:m_tot, :c4].reshape(n, hu, wu, up, 2, 2)
    up_feat = jnp.transpose(y_up, (0, 1, 4, 2, 5, 3)).reshape(n, 2 * hu, 2 * wu, up)

    if up_feat.shape[1:3] != (hd, wd):     # F.interpolate(mode="nearest")
        rows = (jnp.arange(hd) * up_feat.shape[1]) // hd
        cols = (jnp.arange(wd) * up_feat.shape[2]) // wd
        up_feat = up_feat[:, rows][:, :, cols]

    # ---- BN (inference, folded) + concat + leading ReLU + pad, one XLA pass ----
    # TODO(synk): training-mode batch statistics are not computed (running stats).
    scale = params["bn_gamma"] / jnp.sqrt(params["bn_var"] + eps)
    shift = params["bn_beta"] - params["bn_mean"] * scale
    down = jnp.transpose(downfeat, (0, 2, 3, 1)) * scale + shift
    feat = jnp.maximum(jnp.concatenate([down, up_feat.astype(down.dtype)], -1), 0.0)

    cinp = _round_up(cin1, LANE)
    coutp = _round_up(out_chan, LANE)

    # conv1 geometry
    hp1, wp1 = hd + 2 * padding, wd + 2 * padding
    ho1, wo1 = hp1 - 2, wp1 - 2
    ws1 = _round_up(wp1, 8)
    tr = max(1, min(ho1, max(1, 1024 // ws1)))
    if padding == 0:
        # conv2 reads conv1's output buffer directly -> size conv1's row
        # coverage so conv2's last halo window stays in-bounds (and zero).
        ho2, wo2 = ho1 - 2, wo1 - 2
        nt2 = pl.cdiv(ho2, tr)
        nt1 = max(pl.cdiv(ho1, tr), pl.cdiv(nt2 * tr + 3, tr))
    else:
        nt1 = pl.cdiv(ho1, tr)

    hbuf1 = nt1 * tr + 3
    buf1 = jnp.zeros((n, hbuf1, ws1, cinp), act_dt)
    buf1 = buf1.at[:, padding:padding + hd, padding:padding + wd, :cin1].set(
        feat.astype(act_dt))
    buf1 = buf1.reshape(n, hbuf1 * ws1, cinp)

    w1 = jnp.transpose(params["c1_w"], (2, 3, 1, 0)).reshape(9, cin1, out_chan)
    w1p = jnp.zeros((9, cinp, coutp), act_dt).at[:, :cin1, :out_chan].set(
        w1.astype(act_dt))
    b1p = jnp.zeros((1, coutp), jnp.float32).at[0, :out_chan].set(params["c1_b"])
    y1 = _conv3x3_bias_relu(buf1, w1p, b1p, ws=ws1, ho=ho1, wo=wo1, tr=tr,
                            n_tiles=nt1)                # (n, nt1*tr, ws1, coutp)

    w2 = jnp.transpose(params["c2_w"], (2, 3, 1, 0)).reshape(9, out_chan, out_chan)
    w2p = jnp.zeros((9, coutp, coutp), act_dt).at[:, :out_chan, :out_chan].set(
        w2.astype(act_dt))
    b2p = jnp.zeros((1, coutp), jnp.float32).at[0, :out_chan].set(params["c2_b"])

    if padding == 0:
        ws2, tr2 = ws1, tr
        x2 = y1.reshape(n, nt1 * tr * ws1, coutp)       # row-major reinterpret
    else:
        # TODO(synk): padding > 0 rebuilds conv2's zero-padded buffer in XLA
        # (one extra layout pass) instead of chaining buffers directly.
        hp2, wp2 = ho1 + 2 * padding, wo1 + 2 * padding
        ho2, wo2 = hp2 - 2, wp2 - 2
        ws2 = _round_up(wp2, 8)
        tr2 = max(1, min(ho2, max(1, 1024 // ws2)))
        nt2 = pl.cdiv(ho2, tr2)
        hbuf2 = nt2 * tr2 + 3
        buf2 = jnp.zeros((n, hbuf2, ws2, coutp), act_dt)
        buf2 = buf2.at[:, padding:padding + ho1, padding:padding + wo1, :].set(
            y1[:, :ho1, :wo1, :])
        x2 = buf2.reshape(n, hbuf2 * ws2, coutp)

    y2 = _conv3x3_bias_relu(x2, w2p, b2p, ws=ws2, ho=ho2, wo=wo2, tr=tr2,
                            n_tiles=nt2)                # (n, nt2*tr2, ws2, coutp)

    out = y2[:, :ho2, :wo2, :out_chan]
    return jnp.transpose(out, (0, 3, 1, 2)).astype(downfeat.dtype)


# ---------------------------------------------------------------------------
if __name__ == "__main__":
    key = jax.random.PRNGKey(0)
    k1, k2, k3 = jax.random.split(key, 3)

    left_chan, up_chan, out_chan = 4, 6, 8
    N, H, W = 2, 16, 16          # downfeat spatial
    h, w = 8, 8                  # upfeat spatial (x2 upsample matches downfeat)
    padding = 0                  # module default

    downfeat = jax.random.normal(k1, (N, left_chan, H, W), jnp.float32)
    upfeat = jax.random.normal(k2, (N, up_chan, h, w), jnp.float32)
    params = init_ublock_params(k3, left_chan, up_chan, out_chan)

    fwd = jax.jit(functools.partial(ublock_forward, padding=padding))
    out = jax.block_until_ready(fwd(params, downfeat, upfeat))

    # padding=0: two valid 3x3 convs shrink spatial by 4
    assert out.shape == (N, out_chan, H - 4, W - 4), out.shape
    assert bool(jnp.all(jnp.isfinite(out)))
    print("KERNEL_OK")
</pallas_src>

<mosaic_0001>
module attributes {stable_mosaic.version = 11 : i64} {
  func.func @_mm_bias_relu_kernel(%arg0: i32, %arg1: memref<128x128xbf16, #tpu.memory_space<vmem>>, %arg2: memref<128x128xbf16, #tpu.memory_space<vmem>>, %arg3: memref<1x128xf32, #tpu.memory_space<vmem>>, %arg4: memref<128x128xbf16, #tpu.memory_space<vmem>>) attributes {dimension_semantics = [#tpu.dimension_semantics<parallel>], iteration_bounds = array<i64: 1>, scalar_prefetch = 0 : i64, scratch_operands = 0 : i64, tpu.core_type = #tpu.core_type<tc>, window_params = [{transform_indices = @transform_0, window_bounds = array<i64: 128, 128>}, {pipeline_mode = #tpu.pipeline_mode<synchronous>, transform_indices = @transform_1, window_bounds = array<i64: 128, 128>}, {pipeline_mode = #tpu.pipeline_mode<synchronous>, transform_indices = @transform_2, window_bounds = array<i64: 1, 128>}, {transform_indices = @transform_3, window_bounds = array<i64: 128, 128>}]} {
    %c0 = arith.constant 0 : index
    %c0_0 = arith.constant 0 : index
    %0 = vector.load %arg1[%c0, %c0_0] : memref<128x128xbf16, #tpu.memory_space<vmem>>, vector<128x128xbf16>
    %c0_1 = arith.constant 0 : index
    %c0_2 = arith.constant 0 : index
    %1 = vector.load %arg2[%c0_1, %c0_2] : memref<128x128xbf16, #tpu.memory_space<vmem>>, vector<128x128xbf16>
    %cst = arith.constant dense<0.000000e+00> : vector<128x128xf32>
    %2 = tpu.matmul %0, %1, %cst {dimension_numbers = #tpu.dot_dimension_numbers<[1], [0], [0], [1], [0, 0, 1, 1], [], []>} : vector<128x128xbf16>, vector<128x128xbf16>, vector<128x128xf32> -> vector<128x128xf32>
    %c0_3 = arith.constant 0 : index
    %c0_4 = arith.constant 0 : index
    %3 = vector.load %arg3[%c0_3, %c0_4] : memref<1x128xf32, #tpu.memory_space<vmem>>, vector<1x128xf32>
    %4 = vector.broadcast %3 : vector<1x128xf32> to vector<128x128xf32>
    %5 = arith.addf %2, %4 : vector<128x128xf32>
    %cst_5 = arith.constant 0.000000e+00 : f32
    %6 = vector.broadcast %cst_5 : f32 to vector<128x128xf32>
    %7 = arith.maximumf %5, %6 : vector<128x128xf32>
    %8 = arith.truncf %7 : vector<128x128xf32> to vector<128x128xbf16>
    %c0_6 = arith.constant 0 : index
    %c0_7 = arith.constant 0 : index
    %9 = vector.load %arg4[%c0_6, %c0_7] : memref<128x128xbf16, #tpu.memory_space<vmem>>, vector<128x128xbf16>
    tpu.vector_store %arg4[%c0_6, %c0_7], %8 {strides = array<i32>} : memref<128x128xbf16, #tpu.memory_space<vmem>>, vector<128x128xbf16>,
    return
  }
  func.func @transform_0(%arg0: i32) -> (i32, i32) {
    %c0_i32 = arith.constant 0 : i32
    %c0_i32_0 = arith.constant 0 : i32
    return %arg0, %c0_i32 : i32, i32
  }
  func.func @transform_1(%arg0: i32) -> (i32, i32) {
    %c0_i32 = arith.constant 0 : i32
    %c0_i32_0 = arith.constant 0 : i32
    %c0_i32_1 = arith.constant 0 : i32
    return %c0_i32, %c0_i32_0 : i32, i32
  }
  func.func @transform_2(%arg0: i32) -> (i32, i32) {
    %c0_i32 = arith.constant 0 : i32
    %c0_i32_0 = arith.constant 0 : i32
    %c0_i32_1 = arith.constant 0 : i32
    return %c0_i32, %c0_i32_0 : i32, i32
  }
  func.func @transform_3(%arg0: i32) -> (i32, i32) {
    %c0_i32 = arith.constant 0 : i32
    %c0_i32_0 = arith.constant 0 : i32
    return %arg0, %c0_i32 : i32, i32
  }
}

module attributes {stable_mosaic.version = 11 : i64} {
  func.func @_conv3x3_kernel(%arg0: i32, %arg1: i32, %arg2: memref<1x496x128xbf16, #tpu.memory_space<vmem>>, %arg3: memref<9x128x128xbf16, #tpu.memory_space<vmem>>, %arg4: memref<1x128xf32, #tpu.memory_space<vmem>>, %arg5: memref<1x14x16x128xbf16, #tpu.memory_space<vmem>>) attributes {dimension_semantics = [#tpu.dimension_semantics<parallel>, #tpu.dimension_semantics<parallel>], iteration_bounds = array<i64: 2, 2>, scalar_prefetch = 0 : i64, scratch_operands = 0 : i64, tpu.core_type = #tpu.core_type<tc>, window_params = [{transform_indices = @transform_0, window_bounds = array<i64: 1, 496, 128>}, {pipeline_mode = #tpu.pipeline_mode<synchronous>, transform_indices = @transform_1, window_bounds = array<i64: 9, 128, 128>}, {pipeline_mode = #tpu.pipeline_mode<synchronous>, transform_indices = @transform_2, window_bounds = array<i64: 1, 128>}, {transform_indices = @transform_3, window_bounds = array<i64: 1, 14, 16, 128>}]} {
    %c224_i32 = arith.constant 224 : i32
    %0 = arith.muli %arg1, %c224_i32 : i32
    %1 = tpu.assume_multiple %0, 8 : i32
    %c0 = arith.constant 0 : index
    %2 = arith.index_cast %1 : i32 to index
    %c0_0 = arith.constant 0 : index
    %3 = vector.load %arg2[%c0, %2, %c0_0] : memref<1x496x128xbf16, #tpu.memory_space<vmem>>, vector<1x264x128xbf16>
    %4 = vector.shape_cast %3 : vector<1x264x128xbf16> to vector<264x128xbf16>
    %cst = arith.constant 0.000000e+00 : f32
    %5 = vector.broadcast %cst : f32 to vector<224x128xf32>
    %6 = vector.extract_strided_slice %4 {offsets = [0, 0], sizes = [224, 128], strides = [1, 1]} : vector<264x128xbf16> to vector<224x128xbf16>
    %c0_1 = arith.constant 0 : index
    %c0_2 = arith.constant 0 : index
    %c0_3 = arith.constant 0 : index
    %7 = vector.load %arg3[%c0_1, %c0_2, %c0_3] : memref<9x128x128xbf16, #tpu.memory_space<vmem>>, vector<1x128x128xbf16>
    %8 = vector.shape_cast %7 : vector<1x128x128xbf16> to vector<128x128xbf16>
    %cst_4 = arith.constant dense<0.000000e+00> : vector<224x128xf32>
    %9 = tpu.matmul %6, %8, %cst_4 {dimension_numbers = #tpu.dot_dimension_numbers<[1], [0], [0], [1], [0, 0, 1, 1], [], []>} : vector<224x128xbf16>, vector<128x128xbf16>, vector<224x128xf32> -> vector<224x128xf32>
    %10 = arith.addf %5, %9 : vector<224x128xf32>
    %11 = vector.extract_strided_slice %4 {offsets = [1, 0], sizes = [224, 128], strides = [1, 1]} : vector<264x128xbf16> to vector<224x128xbf16>
    %c1 = arith.constant 1 : index
    %c0_5 = arith.constant 0 : index
    %c0_6 = arith.constant 0 : index
    %12 = vector.load %arg3[%c1, %c0_5, %c0_6] : memref<9x128x128xbf16, #tpu.memory_space<vmem>>, vector<1x128x128xbf16>
    %13 = vector.shape_cast %12 : vector<1x128x128xbf16> to vector<128x128xbf16>
    %cst_7 = arith.constant dense<0.000000e+00> : vector<224x128xf32>
    %14 = tpu.matmul %11, %13, %cst_7 {dimension_numbers = #tpu.dot_dimension_numbers<[1], [0], [0], [1], [0, 0, 1, 1], [], []>} : vector<224x128xbf16>, vector<128x128xbf16>, vector<224x128xf32> -> vector<224x128xf32>
    %15 = arith.addf %10, %14 : vector<224x128xf32>
    %16 = vector.extract_strided_slice %4 {offsets = [2, 0], sizes = [224, 128], strides = [1, 1]} : vector<264x128xbf16> to vector<224x128xbf16>
    %c2 = arith.constant 2 : index
    %c0_8 = arith.constant 0 : index
    %c0_9 = arith.constant 0 : index
    %17 = vector.load %arg3[%c2, %c0_8, %c0_9] : memref<9x128x128xbf16, #tpu.memory_space<vmem>>, vector<1x128x128xbf16>
    %18 = vector.shape_cast %17 : vector<1x128x128xbf16> to vector<128x128xbf16>
    %cst_10 = arith.constant dense<0.000000e+00> : vector<224x128xf32>
    %19 = tpu.matmul %16, %18, %cst_10 {dimension_numbers = #tpu.dot_dimension_numbers<[1], [0], [0], [1], [0, 0, 1, 1], [], []>} : vector<224x128xbf16>, vector<128x128xbf16>, vector<224x128xf32> -> vector<224x128xf32>
    %20 = arith.addf %15, %19 : vector<224x128xf32>
    %21 = vector.extract_strided_slice %4 {offsets = [16, 0], sizes = [224, 128], strides = [1, 1]} : vector<264x128xbf16> to vector<224x128xbf16>
    %c3 = arith.constant 3 : index
    %c0_11 = arith.constant 0 : index
    %c0_12 = arith.constant 0 : index
    %22 = vector.load %arg3[%c3, %c0_11, %c0_12] : memref<9x128x128xbf16, #tpu.memory_space<vmem>>, vector<1x128x128xbf16>
    %23 = vector.shape_cast %22 : vector<1x128x128xbf16> to vector<128x128xbf16>
    %cst_13 = arith.constant dense<0.000000e+00> : vector<224x128xf32>
    %24 = tpu.matmul %21, %23, %cst_13 {dimension_numbers = #tpu.dot_dimension_numbers<[1], [0], [0], [1], [0, 0, 1, 1], [], []>} : vector<224x128xbf16>, vector<128x128xbf16>, vector<224x128xf32> -> vector<224x128xf32>
    %25 = arith.addf %20, %24 : vector<224x128xf32>
    %26 = vector.extract_strided_slice %4 {offsets = [17, 0], sizes = [224, 128], strides = [1, 1]} : vector<264x128xbf16> to vector<224x128xbf16>
    %c4 = arith.constant 4 : index
    %c0_14 = arith.constant 0 : index
    %c0_15 = arith.constant 0 : index
    %27 = vector.load %arg3[%c4, %c0_14, %c0_15] : memref<9x128x128xbf16, #tpu.memory_space<vmem>>, vector<1x128x128xbf16>
    %28 = vector.shape_cast %27 : vector<1x128x128xbf16> to vector<128x128xbf16>
    %cst_16 = arith.constant dense<0.000000e+00> : vector<224x128xf32>
    %29 = tpu.matmul %26, %28, %cst_16 {dimension_numbers = #tpu.dot_dimension_numbers<[1], [0], [0], [1], [0, 0, 1, 1], [], []>} : vector<224x128xbf16>, vector<128x128xbf16>, vector<224x128xf32> -> vector<224x128xf32>
    %30 = arith.addf %25, %29 : vector<224x128xf32>
    %31 = vector.extract_strided_slice %4 {offsets = [18, 0], sizes = [224, 128], strides = [1, 1]} : vector<264x128xbf16> to vector<224x128xbf16>
    %c5 = arith.constant 5 : index
    %c0_17 = arith.constant 0 : index
    %c0_18 = arith.constant 0 : index
    %32 = vector.load %arg3[%c5, %c0_17, %c0_18] : memref<9x128x128xbf16, #tpu.memory_space<vmem>>, vector<1x128x128xbf16>
    %33 = vector.shape_cast %32 : vector<1x128x128xbf16> to vector<128x128xbf16>
    %cst_19 = arith.constant dense<0.000000e+00> : vector<224x128xf32>
    %34 = tpu.matmul %31, %33, %cst_19 {dimension_numbers = #tpu.dot_dimension_numbers<[1], [0], [0], [1], [0, 0, 1, 1], [], []>} : vector<224x128xbf16>, vector<128x128xbf16>, vector<224x128xf32> -> vector<224x128xf32>
    %35 = arith.addf %30, %34 : vector<224x128xf32>
    %36 = vector.extract_strided_slice %4 {offsets = [32, 0], sizes = [224, 128], strides = [1, 1]} : vector<264x128xbf16> to vector<224x128xbf16>
    %c6 = arith.constant 6 : index
    %c0_20 = arith.constant 0 : index
    %c0_21 = arith.constant 0 : index
    %37 = vector.load %arg3[%c6, %c0_20, %c0_21] : memref<9x128x128xbf16, #tpu.memory_space<vmem>>, vector<1x128x128xbf16>
    %38 = vector.shape_cast %37 : vector<1x128x128xbf16> to vector<128x128xbf16>
    %cst_22 = arith.constant dense<0.000000e+00> : vector<224x128xf32>
    %39 = tpu.matmul %36, %38, %cst_22 {dimension_numbers = #tpu.dot_dimension_numbers<[1], [0], [0], [1], [0, 0, 1, 1], [], []>} : vector<224x128xbf16>, vector<128x128xbf16>, vector<224x128xf32> -> vector<224x128xf32>
    %40 = arith.addf %35, %39 : vector<224x128xf32>
    %41 = vector.extract_strided_slice %4 {offsets = [33, 0], sizes = [224, 128], strides = [1, 1]} : vector<264x128xbf16> to vector<224x128xbf16>
    %c7 = arith.constant 7 : index
    %c0_23 = arith.constant 0 : index
    %c0_24 = arith.constant 0 : index
    %42 = vector.load %arg3[%c7, %c0_23, %c0_24] : memref<9x128x128xbf16, #tpu.memory_space<vmem>>, vector<1x128x128xbf16>
    %43 = vector.shape_cast %42 : vector<1x128x128xbf16> to vector<128x128xbf16>
    %cst_25 = arith.constant dense<0.000000e+00> : vector<224x128xf32>
    %44 = tpu.matmul %41, %43, %cst_25 {dimension_numbers = #tpu.dot_dimension_numbers<[1], [0], [0], [1], [0, 0, 1, 1], [], []>} : vector<224x128xbf16>, vector<128x128xbf16>, vector<224x128xf32> -> vector<224x128xf32>
    %45 = arith.addf %40, %44 : vector<224x128xf32>
    %46 = vector.extract_strided_slice %4 {offsets = [34, 0], sizes = [224, 128], strides = [1, 1]} : vector<264x128xbf16> to vector<224x128xbf16>
    %c8 = arith.constant 8 : index
    %c0_26 = arith.constant 0 : index
    %c0_27 = arith.constant 0 : index
    %47 = vector.load %arg3[%c8, %c0_26, %c0_27] : memref<9x128x128xbf16, #tpu.memory_space<vmem>>, vector<1x128x128xbf16>
    %48 = vector.shape_cast %47 : vector<1x128x128xbf16> to vector<128x128xbf16>
    %cst_28 = arith.constant dense<0.000000e+00> : vector<224x128xf32>
    %49 = tpu.matmul %46, %48, %cst_28 {dimension_numbers = #tpu.dot_dimension_numbers<[1], [0], [0], [1], [0, 0, 1, 1], [], []>} : vector<224x128xbf16>, vector<128x128xbf16>, vector<224x128xf32> -> vector<224x128xf32>
    %50 = arith.addf %45, %49 : vector<224x128xf32>
    %c0_29 = arith.constant 0 : index
    %c0_30 = arith.constant 0 : index
    %51 = vector.load %arg4[%c0_29, %c0_30] : memref<1x128xf32, #tpu.memory_space<vmem>>, vector<1x128xf32>
    %52 = vector.broadcast %51 : vector<1x128xf32> to vector<224x128xf32>
    %53 = arith.addf %50, %52 : vector<224x128xf32>
    %cst_31 = arith.constant 0.000000e+00 : f32
    %54 = vector.broadcast %cst_31 : f32 to vector<224x128xf32>
    %55 = arith.maximumf %53, %54 : vector<224x128xf32>
    %56 = vector.shape_cast %55 : vector<224x128xf32> to vector<14x16x128xf32>
    %c14_i32 = arith.constant 14 : i32
    %57 = arith.muli %arg1, %c14_i32 : i32
    %58 = tpu.iota {dimensions = array<i32: 0>} : vector<14x16x1xi32>
    %59 = vector.broadcast %57 : i32 to vector<14x16x1xi32>
    %60 = arith.addi %59, %58 : vector<14x16x1xi32>
    %61 = tpu.iota {dimensions = array<i32: 1>} : vector<14x16x1xi32>
    %c14_i32_32 = arith.constant 14 : i32
    %62 = vector.broadcast %c14_i32_32 : i32 to vector<14x16x1xi32>
    %63 = arith.cmpi slt, %60, %62 : vector<14x16x1xi32>
    %c14_i32_33 = arith.constant 14 : i32
    %64 = vector.broadcast %c14_i32_33 : i32 to vector<14x16x1xi32>
    %65 = arith.cmpi slt, %61, %64 : vector<14x16x1xi32>
    %66 = arith.andi %63, %65 : vector<14x16x1xi1>
    %cst_34 = arith.constant 0.000000e+00 : f32
    %67 = vector.shape_cast %66 : vector<14x16x1xi1> to vector<14x16x1xi1>
    %68 = vector.broadcast %67 : vector<14x16x1xi1> to vector<14x16x128xi1>
    %69 = vector.broadcast %cst_34 : f32 to vector<14x16x128xf32>
    %70 = arith.select %68, %56, %69 : vector<14x16x128xi1>, vector<14x16x128xf32>
    %71 = arith.truncf %70 : vector<14x16x128xf32> to vector<14x16x128xbf16>
    %c0_35 = arith.constant 0 : index
    %c0_36 = arith.constant 0 : index
    %c0_37 = arith.constant 0 : index
    %c0_38 = arith.constant 0 : index
    %72 = vector.load %arg5[%c0_35, %c0_36, %c0_37, %c0_38] : memref<1x14x16x128xbf16, #tpu.memory_space<vmem>>, vector<1x14x16x128xbf16>
    %73 = vector.shape_cast %72 : vector<1x14x16x128xbf16> to vector<14x16x128xbf16>
    %74 = vector.shape_cast %71 : vector<14x16x128xbf16> to vector<1x14x16x128xbf16>
    tpu.vector_store %arg5[%c0_35, %c0_36, %c0_37, %c0_38], %74 {strides = array<i32>} : memref<1x14x16x128xbf16, #tpu.memory_space<vmem>>, vector<1x14x16x128xbf16>,
    return
  }
  func.func @transform_0(%arg0: i32, %arg1: i32) -> (i32, i32, i32) {
    %c0_i32 = arith.constant 0 : i32
    %c0_i32_0 = arith.constant 0 : i32
    %c0_i32_1 = arith.constant 0 : i32
    return %arg0, %c0_i32, %c0_i32_0 : i32, i32, i32
  }
  func.func @transform_1(%arg0: i32, %arg1: i32) -> (i32, i32, i32) {
    %c0_i32 = arith.constant 0 : i32
    %c0_i32_0 = arith.constant 0 : i32
    %c0_i32_1 = arith.constant 0 : i32
    %c0_i32_2 = arith.constant 0 : i32
    return %c0_i32, %c0_i32_0, %c0_i32_1 : i32, i32, i32
  }
  func.func @transform_2(%arg0: i32, %arg1: i32) -> (i32, i32) {
    %c0_i32 = arith.constant 0 : i32
    %c0_i32_0 = arith.constant 0 : i32
    %c0_i32_1 = arith.constant 0 : i32
    return %c0_i32, %c0_i32_0 : i32, i32
  }
  func.func @transform_3(%arg0: i32, %arg1: i32) -> (i32, i32, i32, i32) {
    %c0_i32 = arith.constant 0 : i32
    %c0_i32_0 = arith.constant 0 : i32
    %c0_i32_1 = arith.constant 0 : i32
    return %arg0, %arg1, %c0_i32, %c0_i32_0 : i32, i32, i32, i32
  }
}

module attributes {stable_mosaic.version = 11 : i64} {
  func.func @_conv3x3_kernel(%arg0: i32, %arg1: i32, %arg2: memref<1x448x128xbf16, #tpu.memory_space<vmem>>, %arg3: memref<9x128x128xbf16, #tpu.memory_space<vmem>>, %arg4: memref<1x128xf32, #tpu.memory_space<vmem>>, %arg5: memref<1x14x16x128xbf16, #tpu.memory_space<vmem>>) attributes {dimension_semantics = [#tpu.dimension_semantics<parallel>, #tpu.dimension_semantics<parallel>], iteration_bounds = array<i64: 2, 1>, scalar_prefetch = 0 : i64, scratch_operands = 0 : i64, tpu.core_type = #tpu.core_type<tc>, window_params = [{transform_indices = @transform_0, window_bounds = array<i64: 1, 448, 128>}, {pipeline_mode = #tpu.pipeline_mode<synchronous>, transform_indices = @transform_1, window_bounds = array<i64: 9, 128, 128>}, {pipeline_mode = #tpu.pipeline_mode<synchronous>, transform_indices = @transform_2, window_bounds = array<i64: 1, 128>}, {transform_indices = @transform_3, window_bounds = array<i64: 1, 14, 16, 128>}]} {
    %c224_i32 = arith.constant 224 : i32
    %0 = arith.muli %arg1, %c224_i32 : i32
    %1 = tpu.assume_multiple %0, 8 : i32
    %c0 = arith.constant 0 : index
    %2 = arith.index_cast %1 : i32 to index
    %c0_0 = arith.constant 0 : index
    %3 = vector.load %arg2[%c0, %2, %c0_0] : memref<1x448x128xbf16, #tpu.memory_space<vmem>>, vector<1x264x128xbf16>
    %4 = vector.shape_cast %3 : vector<1x264x128xbf16> to vector<264x128xbf16>
    %cst = arith.constant 0.000000e+00 : f32
    %5 = vector.broadcast %cst : f32 to vector<224x128xf32>
    %6 = vector.extract_strided_slice %4 {offsets = [0, 0], sizes = [224, 128], strides = [1, 1]} : vector<264x128xbf16> to vector<224x128xbf16>
    %c0_1 = arith.constant 0 : index
    %c0_2 = arith.constant 0 : index
    %c0_3 = arith.constant 0 : index
    %7 = vector.load %arg3[%c0_1, %c0_2, %c0_3] : memref<9x128x128xbf16, #tpu.memory_space<vmem>>, vector<1x128x128xbf16>
    %8 = vector.shape_cast %7 : vector<1x128x128xbf16> to vector<128x128xbf16>
    %cst_4 = arith.constant dense<0.000000e+00> : vector<224x128xf32>
    %9 = tpu.matmul %6, %8, %cst_4 {dimension_numbers = #tpu.dot_dimension_numbers<[1], [0], [0], [1], [0, 0, 1, 1], [], []>} : vector<224x128xbf16>, vector<128x128xbf16>, vector<224x128xf32> -> vector<224x128xf32>
    %10 = arith.addf %5, %9 : vector<224x128xf32>
    %11 = vector.extract_strided_slice %4 {offsets = [1, 0], sizes = [224, 128], strides = [1, 1]} : vector<264x128xbf16> to vector<224x128xbf16>
    %c1 = arith.constant 1 : index
    %c0_5 = arith.constant 0 : index
    %c0_6 = arith.constant 0 : index
    %12 = vector.load %arg3[%c1, %c0_5, %c0_6] : memref<9x128x128xbf16, #tpu.memory_space<vmem>>, vector<1x128x128xbf16>
    %13 = vector.shape_cast %12 : vector<1x128x128xbf16> to vector<128x128xbf16>
    %cst_7 = arith.constant dense<0.000000e+00> : vector<224x128xf32>
    %14 = tpu.matmul %11, %13, %cst_7 {dimension_numbers = #tpu.dot_dimension_numbers<[1], [0], [0], [1], [0, 0, 1, 1], [], []>} : vector<224x128xbf16>, vector<128x128xbf16>, vector<224x128xf32> -> vector<224x128xf32>
    %15 = arith.addf %10, %14 : vector<224x128xf32>
    %16 = vector.extract_strided_slice %4 {offsets = [2, 0], sizes = [224, 128], strides = [1, 1]} : vector<264x128xbf16> to vector<224x128xbf16>
    %c2 = arith.constant 2 : index
    %c0_8 = arith.constant 0 : index
    %c0_9 = arith.constant 0 : index
    %17 = vector.load %arg3[%c2, %c0_8, %c0_9] : memref<9x128x128xbf16, #tpu.memory_space<vmem>>, vector<1x128x128xbf16>
    %18 = vector.shape_cast %17 : vector<1x128x128xbf16> to vector<128x128xbf16>
    %cst_10 = arith.constant dense<0.000000e+00> : vector<224x128xf32>
    %19 = tpu.matmul %16, %18, %cst_10 {dimension_numbers = #tpu.dot_dimension_numbers<[1], [0], [0], [1], [0, 0, 1, 1], [], []>} : vector<224x128xbf16>, vector<128x128xbf16>, vector<224x128xf32> -> vector<224x128xf32>
    %20 = arith.addf %15, %19 : vector<224x128xf32>
    %21 = vector.extract_strided_slice %4 {offsets = [16, 0], sizes = [224, 128], strides = [1, 1]} : vector<264x128xbf16> to vector<224x128xbf16>
    %c3 = arith.constant 3 : index
    %c0_11 = arith.constant 0 : index
    %c0_12 = arith.constant 0 : index
    %22 = vector.load %arg3[%c3, %c0_11, %c0_12] : memref<9x128x128xbf16, #tpu.memory_space<vmem>>, vector<1x128x128xbf16>
    %23 = vector.shape_cast %22 : vector<1x128x128xbf16> to vector<128x128xbf16>
    %cst_13 = arith.constant dense<0.000000e+00> : vector<224x128xf32>
    %24 = tpu.matmul %21, %23, %cst_13 {dimension_numbers = #tpu.dot_dimension_numbers<[1], [0], [0], [1], [0, 0, 1, 1], [], []>} : vector<224x128xbf16>, vector<128x128xbf16>, vector<224x128xf32> -> vector<224x128xf32>
    %25 = arith.addf %20, %24 : vector<224x128xf32>
    %26 = vector.extract_strided_slice %4 {offsets = [17, 0], sizes = [224, 128], strides = [1, 1]} : vector<264x128xbf16> to vector<224x128xbf16>
    %c4 = arith.constant 4 : index
    %c0_14 = arith.constant 0 : index
    %c0_15 = arith.constant 0 : index
    %27 = vector.load %arg3[%c4, %c0_14, %c0_15] : memref<9x128x128xbf16, #tpu.memory_space<vmem>>, vector<1x128x128xbf16>
    %28 = vector.shape_cast %27 : vector<1x128x128xbf16> to vector<128x128xbf16>
    %cst_16 = arith.constant dense<0.000000e+00> : vector<224x128xf32>
    %29 = tpu.matmul %26, %28, %cst_16 {dimension_numbers = #tpu.dot_dimension_numbers<[1], [0], [0], [1], [0, 0, 1, 1], [], []>} : vector<224x128xbf16>, vector<128x128xbf16>, vector<224x128xf32> -> vector<224x128xf32>
    %30 = arith.addf %25, %29 : vector<224x128xf32>
    %31 = vector.extract_strided_slice %4 {offsets = [18, 0], sizes = [224, 128], strides = [1, 1]} : vector<264x128xbf16> to vector<224x128xbf16>
    %c5 = arith.constant 5 : index
    %c0_17 = arith.constant 0 : index
    %c0_18 = arith.constant 0 : index
    %32 = vector.load %arg3[%c5, %c0_17, %c0_18] : memref<9x128x128xbf16, #tpu.memory_space<vmem>>, vector<1x128x128xbf16>
    %33 = vector.shape_cast %32 : vector<1x128x128xbf16> to vector<128x128xbf16>
    %cst_19 = arith.constant dense<0.000000e+00> : vector<224x128xf32>
    %34 = tpu.matmul %31, %33, %cst_19 {dimension_numbers = #tpu.dot_dimension_numbers<[1], [0], [0], [1], [0, 0, 1, 1], [], []>} : vector<224x128xbf16>, vector<128x128xbf16>, vector<224x128xf32> -> vector<224x128xf32>
    %35 = arith.addf %30, %34 : vector<224x128xf32>
    %36 = vector.extract_strided_slice %4 {offsets = [32, 0], sizes = [224, 128], strides = [1, 1]} : vector<264x128xbf16> to vector<224x128xbf16>
    %c6 = arith.constant 6 : index
    %c0_20 = arith.constant 0 : index
    %c0_21 = arith.constant 0 : index
    %37 = vector.load %arg3[%c6, %c0_20, %c0_21] : memref<9x128x128xbf16, #tpu.memory_space<vmem>>, vector<1x128x128xbf16>
    %38 = vector.shape_cast %37 : vector<1x128x128xbf16> to vector<128x128xbf16>
    %cst_22 = arith.constant dense<0.000000e+00> : vector<224x128xf32>
    %39 = tpu.matmul %36, %38, %cst_22 {dimension_numbers = #tpu.dot_dimension_numbers<[1], [0], [0], [1], [0, 0, 1, 1], [], []>} : vector<224x128xbf16>, vector<128x128xbf16>, vector<224x128xf32> -> vector<224x128xf32>
    %40 = arith.addf %35, %39 : vector<224x128xf32>
    %41 = vector.extract_strided_slice %4 {offsets = [33, 0], sizes = [224, 128], strides = [1, 1]} : vector<264x128xbf16> to vector<224x128xbf16>
    %c7 = arith.constant 7 : index
    %c0_23 = arith.constant 0 : index
    %c0_24 = arith.constant 0 : index
    %42 = vector.load %arg3[%c7, %c0_23, %c0_24] : memref<9x128x128xbf16, #tpu.memory_space<vmem>>, vector<1x128x128xbf16>
    %43 = vector.shape_cast %42 : vector<1x128x128xbf16> to vector<128x128xbf16>
    %cst_25 = arith.constant dense<0.000000e+00> : vector<224x128xf32>
    %44 = tpu.matmul %41, %43, %cst_25 {dimension_numbers = #tpu.dot_dimension_numbers<[1], [0], [0], [1], [0, 0, 1, 1], [], []>} : vector<224x128xbf16>, vector<128x128xbf16>, vector<224x128xf32> -> vector<224x128xf32>
    %45 = arith.addf %40, %44 : vector<224x128xf32>
    %46 = vector.extract_strided_slice %4 {offsets = [34, 0], sizes = [224, 128], strides = [1, 1]} : vector<264x128xbf16> to vector<224x128xbf16>
    %c8 = arith.constant 8 : index
    %c0_26 = arith.constant 0 : index
    %c0_27 = arith.constant 0 : index
    %47 = vector.load %arg3[%c8, %c0_26, %c0_27] : memref<9x128x128xbf16, #tpu.memory_space<vmem>>, vector<1x128x128xbf16>
    %48 = vector.shape_cast %47 : vector<1x128x128xbf16> to vector<128x128xbf16>
    %cst_28 = arith.constant dense<0.000000e+00> : vector<224x128xf32>
    %49 = tpu.matmul %46, %48, %cst_28 {dimension_numbers = #tpu.dot_dimension_numbers<[1], [0], [0], [1], [0, 0, 1, 1], [], []>} : vector<224x128xbf16>, vector<128x128xbf16>, vector<224x128xf32> -> vector<224x128xf32>
    %50 = arith.addf %45, %49 : vector<224x128xf32>
    %c0_29 = arith.constant 0 : index
    %c0_30 = arith.constant 0 : index
    %51 = vector.load %arg4[%c0_29, %c0_30] : memref<1x128xf32, #tpu.memory_space<vmem>>, vector<1x128xf32>
    %52 = vector.broadcast %51 : vector<1x128xf32> to vector<224x128xf32>
    %53 = arith.addf %50, %52 : vector<224x128xf32>
    %cst_31 = arith.constant 0.000000e+00 : f32
    %54 = vector.broadcast %cst_31 : f32 to vector<224x128xf32>
    %55 = arith.maximumf %53, %54 : vector<224x128xf32>
    %56 = vector.shape_cast %55 : vector<224x128xf32> to vector<14x16x128xf32>
    %c14_i32 = arith.constant 14 : i32
    %57 = arith.muli %arg1, %c14_i32 : i32
    %58 = tpu.iota {dimensions = array<i32: 0>} : vector<14x16x1xi32>
    %59 = vector.broadcast %57 : i32 to vector<14x16x1xi32>
    %60 = arith.addi %59, %58 : vector<14x16x1xi32>
    %61 = tpu.iota {dimensions = array<i32: 1>} : vector<14x16x1xi32>
    %c12_i32 = arith.constant 12 : i32
    %62 = vector.broadcast %c12_i32 : i32 to vector<14x16x1xi32>
    %63 = arith.cmpi slt, %60, %62 : vector<14x16x1xi32>
    %c12_i32_32 = arith.constant 12 : i32
    %64 = vector.broadcast %c12_i32_32 : i32 to vector<14x16x1xi32>
    %65 = arith.cmpi slt, %61, %64 : vector<14x16x1xi32>
    %66 = arith.andi %63, %65 : vector<14x16x1xi1>
    %cst_33 = arith.constant 0.000000e+00 : f32
    %67 = vector.shape_cast %66 : vector<14x16x1xi1> to vector<14x16x1xi1>
    %68 = vector.broadcast %67 : vector<14x16x1xi1> to vector<14x16x128xi1>
    %69 = vector.broadcast %cst_33 : f32 to vector<14x16x128xf32>
    %70 = arith.select %68, %56, %69 : vector<14x16x128xi1>, vector<14x16x128xf32>
    %71 = arith.truncf %70 : vector<14x16x128xf32> to vector<14x16x128xbf16>
    %c0_34 = arith.constant 0 : index
    %c0_35 = arith.constant 0 : index
    %c0_36 = arith.constant 0 : index
    %c0_37 = arith.constant 0 : index
    %72 = vector.load %arg5[%c0_34, %c0_35, %c0_36, %c0_37] : memref<1x14x16x128xbf16, #tpu.memory_space<vmem>>, vector<1x14x16x128xbf16>
    %73 = vector.shape_cast %72 : vector<1x14x16x128xbf16> to vector<14x16x128xbf16>
    %74 = vector.shape_cast %71 : vector<14x16x128xbf16> to vector<1x14x16x128xbf16>
    tpu.vector_store %arg5[%c0_34, %c0_35, %c0_36, %c0_37], %74 {strides = array<i32>} : memref<1x14x16x128xbf16, #tpu.memory_space<vmem>>, vector<1x14x16x128xbf16>,
    return
  }
  func.func @transform_0(%arg0: i32, %arg1: i32) -> (i32, i32, i32) {
    %c0_i32 = arith.constant 0 : i32
    %c0_i32_0 = arith.constant 0 : i32
    %c0_i32_1 = arith.constant 0 : i32
    return %arg0, %c0_i32, %c0_i32_0 : i32, i32, i32
  }
  func.func @transform_1(%arg0: i32, %arg1: i32) -> (i32, i32, i32) {
    %c0_i32 = arith.constant 0 : i32
    %c0_i32_0 = arith.constant 0 : i32
    %c0_i32_1 = arith.constant 0 : i32
    %c0_i32_2 = arith.constant 0 : i32
    return %c0_i32, %c0_i32_0, %c0_i32_1 : i32, i32, i32
  }
  func.func @transform_2(%arg0: i32, %arg1: i32) -> (i32, i32) {
    %c0_i32 = arith.constant 0 : i32
    %c0_i32_0 = arith.constant 0 : i32
    %c0_i32_1 = arith.constant 0 : i32
    return %c0_i32, %c0_i32_0 : i32, i32
  }
  func.func @transform_3(%arg0: i32, %arg1: i32) -> (i32, i32, i32, i32) {
    %c0_i32 = arith.constant 0 : i32
    %c0_i32_0 = arith.constant 0 : i32
    %c0_i32_1 = arith.constant 0 : i32
    return %arg0, %arg1, %c0_i32, %c0_i32_0 : i32, i32, i32, i32
  }
}

</mosaic_0001>

<bundles_post_ra>
// kernel: ublock_forward.3
= control target key start
LH: loop header
LB: loop body
LE: loop exit
PB: predicated region body
PF: predicated region fallthrough
CT: control target
= control target key end

     0   :  { %s618_s1 = inlined_call_operand.vmem [shape: bf16[128,128], index: 1, kind: input, shape index: {}]   ;;  %s619_s0 = inlined_call_operand.vmem [shape: bf16[128,128], index: 0, kind: input, shape index: {}]   ;;  %s620_s2 = inlined_call_operand.vmem [shape: f32[1,128], index: 2, kind: input, shape index: {}]   ;;  %s621_s3 = inlined_call_operand.vmem [shape: bf16[128,128], index: 3, kind: output, shape index: {}]  }
   0x1   :  { %v507_v0 = vld [vmem:[%s618_s1] sm:$0xff]   ;;  %v508_v1 = vld [vmem:[%s618_s1 + $0x8] sm:$0xff]   ;;  %v509_v2 = vld [vmem:[%s618_s1 + $0x10] sm:$0xff]  }
   0x2   :  { %459 = vmatprep.subr.bf16.mxu0 %v507_v0  ;;  %491 = vmatprep.subr.bf16.mxu1 %v507_v0  ;;  %v510_v3 = vld [vmem:[%s618_s1 + $0x18] sm:$0xff]   ;;  %v515_v4 = vld [vmem:[%s619_s0] sm:$0xff]   ;;  %v512_v7 = vld [vmem:[%s618_s1 + $0x28] sm:$0xff]  }
   0x3   :  { %460 = vmatpush3.bf16.msra.mxu0 %v507_v0  ;;  %499 = vmatpush3.bf16.msra.mxu1 %v507_v0  ;;  %v516_v5 = vld [vmem:[%s619_s0 + $0x20] sm:$0xff]   ;;  %v513_v8 = vld [vmem:[%s618_s1 + $0x30] sm:$0xff]   ;;  %v514_v9 = vld [vmem:[%s618_s1 + $0x38] sm:$0xff]  }
   0x4   :  { %461 = vmatprep.subr.bf16.mxu0 %v508_v1  ;;  %492 = vmatprep.subr.bf16.mxu1 %v508_v1  ;;  %v511_v6 = vld [vmem:[%s618_s1 + $0x20] sm:$0xff]   ;;  %v517_v10 = vld [vmem:[%s619_s0 + $0x8] sm:$0xff]   ;;  %v519_v12 = vld [vmem:[%s619_s0 + $0x10] sm:$0xff]  }
   0x5   :  { %475 = vmatprep.mubr.bf16.mxu0 %v515_v4  ;;  %483 = vmatprep.mubr.bf16.mxu1 %v516_v5  ;;  %v518_v11 = vld [vmem:[%s619_s0 + $0x28] sm:$0xff]   ;;  %v520_v13 = vld [vmem:[%s619_s0 + $0x30] sm:$0xff]   ;;  %v521_v14 = vld [vmem:[%s619_s0 + $0x18] sm:$0xff]  }
   0x6   :  { %v522_v15 = vld [vmem:[%s619_s0 + $0x38] sm:$0xff]   ;;  %v347_v16 = vld [vmem:[%s620_s2] ss:$0 sm:$0xff] }
   0x7   :  { %462 = vmatpush3.bf16.msra.mxu0 %v508_v1  ;;  %500 = vmatpush3.bf16.msra.mxu1 %v508_v1 }
   0x8   :  { %463 = vmatprep.subr.bf16.mxu0 %v509_v2  ;;  %493 = vmatprep.subr.bf16.mxu1 %v509_v2 }
   0xb   :  { %464 = vmatpush3.bf16.msra.mxu0 %v509_v2  ;;  %501 = vmatpush3.bf16.msra.mxu1 %v509_v2 }
   0xc   :  { %465 = vmatprep.subr.bf16.mxu0 %v510_v3  ;;  %494 = vmatprep.subr.bf16.mxu1 %v510_v3 }
   0xf   :  { %466 = vmatpush3.bf16.msra.mxu0 %v510_v3  ;;  %502 = vmatpush3.bf16.msra.mxu1 %v510_v3 }
  0x10   :  { %467 = vmatprep.subr.bf16.mxu0 %v511_v6  ;;  %495 = vmatprep.subr.bf16.mxu1 %v511_v6 }
  0x13   :  { %468 = vmatpush3.bf16.msra.mxu0 %v511_v6  ;;  %503 = vmatpush3.bf16.msra.mxu1 %v511_v6 }
  0x14   :  { %469 = vmatprep.subr.bf16.mxu0 %v512_v7  ;;  %496 = vmatprep.subr.bf16.mxu1 %v512_v7 }
  0x17   :  { %470 = vmatpush3.bf16.msra.mxu0 %v512_v7  ;;  %504 = vmatpush3.bf16.msra.mxu1 %v512_v7 }
  0x18   :  { %471 = vmatprep.subr.bf16.mxu0 %v513_v8  ;;  %497 = vmatprep.subr.bf16.mxu1 %v513_v8 }
  0x1b   :  { %472 = vmatpush3.bf16.msra.mxu0 %v513_v8  ;;  %505 = vmatpush3.bf16.msra.mxu1 %v513_v8 }
  0x1c   :  { %473 = vmatprep.subr.bf16.mxu0 %v514_v9  ;;  %498 = vmatprep.subr.bf16.mxu1 %v514_v9 }
  0x1f   :  { %474 = vmatpush3.bf16.msra.mxu0 %v514_v9  ;;  %506 = vmatpush3.bf16.msra.mxu1 %v514_v9 }
  0x22   :  { %476 = vmatmul.mubr.bf16.vlgmr.msra.gmra.mrb[0].mxu0 %v517_v10  ;;  %484 = vmatmul.mubr.bf16.vlgmr.msra.gmra.mrb[0].mxu1 %v518_v11 }
  0x23   :  { %479 = vmatprep.mubr.bf16.mxu0 %v519_v12  ;;  %487 = vmatprep.mubr.bf16.mxu1 %v520_v13 }
  0x2a   :  { %480 = vmatmul.mubr.bf16.gmra.mrb[4].mxu0 %v521_v14  ;;  %488 = vmatmul.mubr.bf16.gmra.mrb[4].mxu1 %v522_v15 }
  0xf5   :  { %v477_v17 = vpop.f32.mrb[0].mxu0  ;;  %v485_v18 = vpop.f32.mrb[0].mxu1 }
  0xf6   :  { %v193_v19 = vadd.f32 %v477_v17, %v347_v16  ;;  %v225_v20 = vadd.f32 %v485_v18, %v347_v16  ;;  %v184_v21 = vpop.f32.mrb[1].mxu0  ;;  %v216_v22 = vpop.f32.mrb[1].mxu1 }
  0xf7   :  { %v185_v23 = vadd.f32 %v347_v16, %v184_v21  ;;  %v217_v24 = vadd.f32 %v347_v16, %v216_v22  ;;  %v478_v25 = vpop.f32.mrb[2].mxu0  ;;  %v486_v26 = vpop.f32.mrb[2].mxu1 }
  0xf8   :  { %v196_v27 = vadd.f32 %v478_v25, %v347_v16  ;;  %v228_v28 = vadd.f32 %v486_v26, %v347_v16  ;;  %v187_v29 = vpop.f32.mrb[3].mxu0  ;;  %v219_v30 = vpop.f32.mrb[3].mxu1  ;;  %v249_v33 = vmax.f32 %v193_v19, 0.0  ;;  %v257_v34 = vmax.f32 %v225_v20, 0.0 }
  0xf9   :  { %v188_v31 = vadd.f32 %v347_v16, %v187_v29  ;;  %v220_v32 = vadd.f32 %v347_v16, %v219_v30  ;;  %v247_v37 = vmax.f32 %v185_v23, 0.0  ;;  %v255_v38 = vmax.f32 %v217_v24, 0.0 }
  0xfa   :  { %v250_v35 = vmax.f32 %v196_v27, 0.0  ;;  %v258_v36 = vmax.f32 %v228_v28, 0.0 }
  0xfb   :  { %v248_v39 = vmax.f32 %v188_v31, 0.0  ;;  %v256_v40 = vmax.f32 %v220_v32, 0.0 }
  0xfc   :  { %v404_v41 = vpack.c.bf16 %v250_v35, %v249_v33  ;;  %v424_v42 = vpack.c.bf16 %v258_v36, %v257_v34 }
  0xfd   :  { %v399_v43 = vpack.c.bf16 %v248_v39, %v247_v37  ;;  %v419_v44 = vpack.c.bf16 %v256_v40, %v255_v38  ;;  %v481_v45 = vpop.f32.mrb[4].mxu0  ;;  %v489_v46 = vpop.f32.mrb[4].mxu1 }
  0xfe   :  { %436 = vst [vmem:[%s621_s3 + $0x8] sm:$0xff] %v404_v41   ;;  %440 = vst [vmem:[%s621_s3 + $0x28] sm:$0xff] %v424_v42   ;;  %v209_v47 = vadd.f32 %v481_v45, %v347_v16  ;;  %v241_v48 = vadd.f32 %v489_v46, %v347_v16  ;;  %v200_v49 = vpop.f32.mrb[5].mxu0  ;;  %v232_v50 = vpop.f32.mrb[5].mxu1 }
  0xff   :  { %400 = vst [vmem:[%s621_s3] sm:$0xff] %v399_v43   ;;  %439 = vst [vmem:[%s621_s3 + $0x20] sm:$0xff] %v419_v44   ;;  %v201_v51 = vadd.f32 %v347_v16, %v200_v49  ;;  %v233_v52 = vadd.f32 %v347_v16, %v232_v50  ;;  %v482_v53 = vpop.f32.mrb[6].mxu0  ;;  %v490_v54 = vpop.f32.mrb[6].mxu1 }
 0x100   :  { %v212_v55 = vadd.f32 %v482_v53, %v347_v16  ;;  %v244_v56 = vadd.f32 %v490_v54, %v347_v16  ;;  %v203_v57 = vpop.f32.mrb[7].mxu0  ;;  %v235_v58 = vpop.f32.mrb[7].mxu1  ;;  %v253_v61 = vmax.f32 %v209_v47, 0.0  ;;  %v261_v62 = vmax.f32 %v241_v48, 0.0 }
 0x101   :  { %v204_v59 = vadd.f32 %v347_v16, %v203_v57  ;;  %v236_v60 = vadd.f32 %v347_v16, %v235_v58  ;;  %v251_v1 = vmax.f32 %v201_v51, 0.0  ;;  %v259_v2 = vmax.f32 %v233_v52, 0.0 }
 0x102   :  { %v254_v63 = vmax.f32 %v212_v55, 0.0  ;;  %v262_v0 = vmax.f32 %v244_v56, 0.0 }
 0x103   :  { %v252_v3 = vmax.f32 %v204_v59, 0.0  ;;  %v260_v4 = vmax.f32 %v236_v60, 0.0 }
 0x104   :  { %v414_v5 = vpack.c.bf16 %v254_v63, %v253_v61  ;;  %v434_v6 = vpack.c.bf16 %v262_v0, %v261_v62 }
 0x105   :  { %v409_v7 = vpack.c.bf16 %v252_v3, %v251_v1  ;;  %v429_v8 = vpack.c.bf16 %v260_v4, %v259_v2 }
 0x106   :  { %438 = vst [vmem:[%s621_s3 + $0x18] sm:$0xff] %v414_v5   ;;  %442 = vst [vmem:[%s621_s3 + $0x38] sm:$0xff] %v434_v6  }
 0x107   :  { %437 = vst [vmem:[%s621_s3 + $0x10] sm:$0xff] %v409_v7   ;;  %441 = vst [vmem:[%s621_s3 + $0x30] sm:$0xff] %v429_v8  }

// kernel: ublock_forward.4
= control target key start
LH: loop header
LB: loop body
LE: loop exit
PB: predicated region body
PF: predicated region fallthrough
CT: control target
= control target key end

     0   :  { %s4488_s12 = smov 0   ;;  %s4490_s13 = smov 0   ;;  %s5277_s0 = inlined_call_operand.vmem [shape: bf16[2,496,128], index: 0, kind: input, shape index: {}]   ;;  %s5278_s1 = inlined_call_operand.vmem [shape: bf16[9,128,128], index: 1, kind: input, shape index: {}]   ;;  %s5279_s2 = inlined_call_operand.vmem [shape: f32[1,128], index: 2, kind: input, shape index: {}]   ;;  %s5280_s3 = inlined_call_operand.vmem [shape: bf16[2,28,16,128], index: 3, kind: output, shape index: {}]  }
   0x1   :  { %s4492_s14 = smov 0   ;;  %s4494_s15 = smov 0  }
   0x2   :  { %s4496_s16 = smov 0  }
   0x3 LB: > { %s22_s17 = sadd.s32 1, %s4458_s14  ;;  %s25_s18 = sadd.s32 1, %s4462_s15  ;;  %s4466_s16 = sphi %s4496_s16, %s13_s16   ;;  %s4462_s15 = sphi %s4494_s15, %s5284_s15   ;;  %s4458_s14 = sphi %s4492_s14, %s5283_s14   ;;  %s4454_s13 = sphi %s4490_s13, %s5282_s13   ;;  %s4450_s12 = sphi %s4488_s12, %s5281_s12  }
   0x4   : > { %p23_p0 = scmp.ge.s32.totalorder %s22_s17, 2  ;;  %p3083_p1 = scmp.ge.s32.totalorder %s4466_s16, 1 }
   0x5   : > { %p151_p2 = scmp.lt.s32.totalorder %s4466_s16, 5 }
   0x6   : > { %s5286_s17 = smov (%p23_p0, %s22_s17), 0  ;;  %s5288_s18 = smov (!%p23_p0, %s25_s18), %s4462_s15 }
   0x7   : > { %p152_p3 = pnand %p3083_p1, %p151_p2  ;;  %p27_p4 = scmp.ge.s32.totalorder %s5288_s18, 2 }
   0x8   : > { %v4325_v0 = vld [vmem:[%s5278_s1 + $0x40] sm:$0xff] (!%p152_p3)   ;;  %p180_p5 = scmp.lt.s32.totalorder (!%p152_p3), %s4454_s13, 1  ;;  %v4327_v2 = vld [vmem:[%s5278_s1 + $0x48] sm:$0xff] (!%p152_p3)   ;;  %v4329_v4 = vld [vmem:[%s5278_s1 + $0x50] sm:$0xff] (!%p152_p3)   ;;  %s197_s29 = smul.u32 (!%p152_p3), 224, %s4450_s12  ;;  %vm889_vm1 = vcmask (!%p152_p3), 1046528  }
   0x9   : > { %s5290_s18 = smov (%p27_p4, %s5288_s18), 0  ;;  %155 = sbr.rel (%p152_p3) target bundleno = 516 (0x204), region = 32 }
   0xa   : > { %v4326_v1 = vld [vmem:[%s5278_s1 + $0x100] sm:$0xff] (!%p152_p3)   ;;  %3647 = vmatprep.subr.bf16.mxu1 (!%p152_p3), %v4325_v0  ;;  %v4328_v3 = vld [vmem:[%s5278_s1 + $0x108] sm:$0xff] (!%p152_p3)   ;;  %v4330_v5 = vld [vmem:[%s5278_s1 + $0x110] sm:$0xff] (!%p152_p3)   ;;  %s198_s8 = sshra.s32 (!%p152_p3), %s197_s29, 3  ;;  %vm341_vm0 = vsmask.f32 (!%p152_p3), 7424 }
   0xb   : > { %3823 = vmatprep.subr.bf16.mxu0 (!%p152_p3), %v4326_v1  ;;  %3648 = vmatpush3.bf16.msra.mxu1 (!%p152_p3), %v4325_v0  ;;  %v4331_v6 = vld [vmem:[%s5278_s1 + $0x58] sm:$0xff] (!%p152_p3)   ;;  %s3087_s21 = sshll.u32 (!%p152_p3), %s198_s8, 2  ;;  %v4333_v8 = vld [vmem:[%s5278_s1 + $0x60] sm:$0xff] (!%p152_p3)   ;;  %v4335_v10 = vld [vmem:[%s5278_s1 + $0x68] sm:$0xff] (!%p152_p3)   ;;  %s185_s6 = smul.u32 (!%p152_p3), 14, %s4450_s12 }
   0xc   : > { %3824 = vmatpush3.bf16.msra.mxu0 (!%p152_p3), %v4326_v1  ;;  %3649 = vmatprep.subr.bf16.mxu1 (!%p152_p3), %v4327_v2  ;;  %v4332_v7 = vld [vmem:[%s5278_s1 + $0x118] sm:$0xff] (!%p152_p3)   ;;  %v4334_v9 = vld [vmem:[%s5278_s1 + $0x120] sm:$0xff] (!%p152_p3)   ;;  %v4336_v11 = vld [vmem:[%s5278_s1 + $0x128] sm:$0xff] (!%p152_p3)  }
   0xd   : > { %3825 = vmatprep.subr.bf16.mxu0 (!%p152_p3), %v4328_v3  ;;  %v4337_v14 = vld [vmem:[%s5278_s1 + $0x70] sm:$0xff] (!%p152_p3)   ;;  %v4339_v27 = vld [vmem:[%s5278_s1 + $0x78] sm:$0xff] (!%p152_p3)   ;;  %v4345_v40 = vld [vmem:[%s5278_s1 + $0x140] sm:$0xff] (!%p152_p3)   ;;  %p188_p6 = scmp.lt.s32.totalorder (!%p152_p3), %s185_s6, 27 }
   0xe   : > { %v4338_v16 = vld [vmem:[%s5278_s1 + $0x130] sm:$0xff] (!%p152_p3)   ;;  %v4340_v32 = vld [vmem:[%s5278_s1 + $0x138] sm:$0xff] (!%p152_p3)   ;;  %v4348_v42 = vld [vmem:[%s5278_s1] sm:$0xff] (!%p152_p3)  }
   0xf   : > { %3650 = vmatpush3.bf16.msra.mxu1 (!%p152_p3), %v4327_v2  ;;  %v4346_v49 = vld [vmem:[%s5278_s1 + $0x148] sm:$0xff] (!%p152_p3)   ;;  %v4350_v56 = vld [vmem:[%s5278_s1 + $0x150] sm:$0xff] (!%p152_p3)   ;;  %v4351_v63 = vld [vmem:[%s5278_s1 + $0x158] sm:$0xff] (!%p152_p3)  }
  0x10   : > { %s5292_s13 = smov (!%p180_p5, %s4454_s13), 1  ;;  %3826 = vmatpush3.bf16.msra.mxu0 %v4328_v3  ;;  %3651 = vmatprep.subr.bf16.mxu1 %v4329_v4  ;;  %v4352_v52 = vld [vmem:[%s5278_s1 + $0x8] sm:$0xff]   ;;  %v4357_v60 = vld [vmem:[%s5278_s1 + $0x10] sm:$0xff]  }
  0x11   : > { %s4283_s5 = smul.u32 248, %s5292_s13  ;;  %3827 = vmatprep.subr.bf16.mxu0 %v4330_v5 }
  0x12   : > { %s4284_s7 = smul.u32 56, %s5292_s13 }
  0x13   : > { %3652 = vmatpush3.bf16.msra.mxu1 %v4329_v4  ;;  %s184_s20 = scalar_lea.vmem %s5277_s0, %s4283_s5  ;;  %v4362_v4 = vld [vmem:[%s5278_s1 + $0x18] sm:$0xff]  }
  0x14   : > { %3828 = vmatpush3.bf16.msra.mxu0 %v4330_v5  ;;  %3653 = vmatprep.subr.bf16.mxu1 %v4331_v6  ;;  %s4560_s28 = scalar_lea.vmem %s184_s20, %s3087_s21 }
  0x15   : > { %3829 = vmatprep.subr.bf16.mxu0 %v4332_v7  ;;  %v4566_v12 = vld [vmem:[%s4560_s28] sm:$0xff]   ;;  %v4569_v13 = vld [vmem:[%s4560_s28 + $0x8] sm:$0xff]   ;;  %v4575_v15 = vld [vmem:[%s4560_s28 + $0x10] sm:$0xff]  }
  0x16   : > { %v343_v17 = vshrl.u32 %v4566_v12, 16  ;;  %v345_v18 = vshll.u32 %v4566_v12, 16  ;;  %v350_v19 = vshll.u32 %v4569_v13, 16  ;;  %v354_v20 = vshrl.u32 %v4569_v13, 16  ;;  %v4586_v22 = vld [vmem:[%s4560_s28 + $0x18] sm:$0xff]   ;;  %v4594_v31 = vld [vmem:[%s4560_s28 + $0x20] sm:$0xff]  }
  0x17   : > { %3654 = vmatpush3.bf16.msra.mxu1 %v4331_v6  ;;  %v358_v21 = vshll.u32 %v4575_v15, 16  ;;  %v366_v26 = vshll.u32 %v4586_v22, 16  ;;  %v362_v30 = vshrl.u32 %v4575_v15, 16  ;;  %v370_v35 = vshrl.u32 %v4586_v22, 16  ;;  %v4604_v38 = vld [vmem:[%s4560_s28 + $0x28] sm:$0xff]   ;;  %v4614_v45 = vld [vmem:[%s4560_s28 + $0x30] sm:$0xff]  }
  0x18   : > { %3830 = vmatpush3.bf16.msra.mxu0 %v4332_v7  ;;  %3655 = vmatprep.subr.bf16.mxu1 %v4333_v8  ;;  %v347_v23 = vrot.slane %v345_v18, 1  ;;  %v352_v24 = vrot.slane %v350_v19, 1  ;;  %v374_v37 = vshll.u32 %v4594_v31, 16  ;;  %v382_v44 = vshll.u32 %v4604_v38, 16  ;;  %v4634_v54 = vld [vmem:[%s4560_s28 + $0x38] sm:$0xff]   ;;  %v4641_v58 = vld [vmem:[%s4560_s28 + $0x40] sm:$0xff]  }
  0x19   : > { %3831 = vmatprep.subr.bf16.mxu0 %v4334_v9  ;;  %v360_v25 = vrot.slane %v358_v21, 1  ;;  %v368_v36 = vrot.slane %v366_v26, 1  ;;  %v378_v47 = vshrl.u32 %v4594_v31, 16  ;;  %v390_v48 = vshll.u32 %v4614_v45, 16  ;;  %v4667_v7 = vld [vmem:[%s4560_s28 + $0x48] sm:$0xff]   ;;  %v4360_v26 = vld [vmem:[%s5278_s1 + $0x170] sm:$0xff]  }
  0x1a   : > { %v348_v28 = vor.u32 %v347_v23, %v343_v17  ;;  %v356_v29 = vor.u32 %v354_v20, %v352_v24  ;;  %v376_v41 = vrot.slane %v374_v37, 1  ;;  %v386_v51 = vshrl.u32 %v4604_v38, 16  ;;  %v4356_v18 = vld [vmem:[%s5278_s1 + $0x168] sm:$0xff]   ;;  %v4688_v20 = vld [vmem:[%s4560_s28 + $0x50] sm:$0xff]   ;;  %v4696_v23 = vld [vmem:[%s4560_s28 + $0x58] sm:$0xff]  }
  0x1b   : > { %3656 = vmatpush3.bf16.msra.mxu1 %v4333_v8  ;;  %v364_v39 = vor.u32 %v362_v30, %v360_v25  ;;  %v372_v43 = vor.u32 %v370_v35, %v368_v36  ;;  %v384_v53 = vrot.slane %v382_v44, 1  ;;  %v392_v57 = vrot.slane %v390_v48, 1  ;;  %v4355_v8 = vld [vmem:[%s5278_s1 + $0x160] sm:$0xff]   ;;  %v4369_v21 = vld [vmem:[%s5278_s1 + $0x28] sm:$0xff]   ;;  %v4718_v37 = vld [vmem:[%s4560_s28 + $0x70] sm:$0xf] }
  0x1c   : > { %3832 = vmatpush3.bf16.msra.mxu0 %v4334_v9  ;;  %3657 = vmatprep.subr.bf16.mxu1 %v4335_v10  ;;  %v353_v33 = vsel %vm341_vm0, %v348_v28, %v352_v24  ;;  %v361_v34 = vsel %vm341_vm0, %v356_v29, %v360_v25  ;;  %v380_v55 = vor.u32 %v378_v47, %v376_v41  ;;  %v398_v61 = vshll.u32 %v4634_v54, 16  ;;  %v4734_v47 = vld [vmem:[%s4560_s28 + $0x68] sm:$0xff]  }
  0x1d   : > { %3833 = vmatprep.subr.bf16.mxu0 %v4336_v11  ;;  %3663 = vmatprep.mubr.bf16.mxu1 %v353_v33  ;;  %v4617_v46 = vsel %vm341_vm0, %v364_v39, %v368_v36  ;;  %v4625_v50 = vsel %vm341_vm0, %v372_v43, %v376_v41  ;;  %v388_v59 = vor.u32 %v386_v51, %v384_v53  ;;  %v394_v0 = vshrl.u32 %v4614_v45, 16  ;;  %v4361_v33 = vld [vmem:[%s5278_s1 + $0x178] sm:$0xff]  }
  0x1e   : > { %3839 = vmatprep.mubr.bf16.mxu0 %v361_v34  ;;  %v4648_v62 = vsel %vm341_vm0, %v380_v55, %v384_v53  ;;  %v402_v2 = vshrl.u32 %v4634_v54, 16  ;;  %v406_v3 = vshll.u32 %v4641_v58, 16  ;;  %v400_v5 = vrot.slane %v398_v61, 1 }
  0x1f   : > { %3658 = vmatpush3.bf16.msra.mxu1 %v4335_v10  ;;  %v4655_v1 = vsel %vm341_vm0, %v388_v59, %v392_v57  ;;  %v396_v6 = vor.u32 %v394_v0, %v392_v57  ;;  %v414_v17 = vshll.u32 %v4667_v7, 16  ;;  %v893_v28 = vrot.slane %v4575_v15, 1 }
  0x20   : > { %3834 = vmatpush3.bf16.msra.mxu0 %v4336_v11  ;;  %3659 = vmatprep.subr.bf16.mxu1 %v4337_v14  ;;  %v404_v9 = vor.u32 %v402_v2, %v400_v5  ;;  %v408_v10 = vrot.slane %v406_v3, 1  ;;  %v4365_v11 = vld [vmem:[%s5278_s1 + $0x20] sm:$0xff]   ;;  %v418_v29 = vshrl.u32 %v4667_v7, 16  ;;  %v422_v30 = vshll.u32 %v4688_v20, 16 }
  0x21   : > { %3835 = vmatprep.subr.bf16.mxu0 %v4338_v16  ;;  %v416_v25 = vrot.slane %v414_v17, 1  ;;  %v430_v35 = vshll.u32 %v4696_v23, 16  ;;  %v895_v44 = vrot.slane %v4586_v22, 1  ;;  %v3118_v48 = vcombine.low %v4718_v37, %v4718_v37 }
  0x22   : > { %v4684_v19 = vsel %vm341_vm0, %v404_v9, %v408_v10  ;;  %v424_v41 = vrot.slane %v422_v30, 1  ;;  %v897_v53 = vrot.slane %v4594_v31, 1  ;;  %v890_v55 = vrot.slane %v4566_v12, 1  ;;  %v4367_v9 = vld [vmem:[%s5278_s1 + $0x188] sm:$0xff]  }
  0x23   : > { %3660 = vmatpush3.bf16.msra.mxu1 %v4337_v14  ;;  %v4676_v14 = vsel %vm341_vm0, %v396_v6, %v400_v5  ;;  %v420_v43 = vor.u32 %v418_v29, %v416_v25  ;;  %v917_v57 = vrot.slane %v3118_v48, 1  ;;  %v434_v0 = vshrl.u32 %v4696_v23, 16 }
  0x24   : > { %3836 = vmatpush3.bf16.msra.mxu0 %v4338_v16  ;;  %3661 = vmatprep.subr.bf16.mxu1 %v4339_v27  ;;  %v410_v16 = vshrl.u32 %v4641_v58, 16  ;;  %v4765_v3 = vsel %vm889_vm1, %v893_v28, %v895_v44  ;;  %v446_v6 = vshll.u32 %v4734_v47, 16 }
  0x25   : > { %3837 = vmatprep.subr.bf16.mxu0 %v4340_v32 }
  0x26   : > { %v412_v24 = vor.u32 %v410_v16, %v408_v10  ;;  %v899_v16 = vrot.slane %v4604_v38, 1 }
  0x27   : > { %3662 = vmatpush3.bf16.msra.mxu1 %v4339_v27  ;;  %v891_v27 = vrot.slane %v4569_v13, 1 }
  0x28   : > { %3838 = vmatpush3.bf16.msra.mxu0 %v4340_v32  ;;  %3691 = vmatprep.subr.bf16.mxu1 %v4348_v42  ;;  %v4374_v32 = vld [vmem:[%s5278_s1 + $0x30] sm:$0xff]   ;;  %v4715_v36 = vsel %vm341_vm0, %v412_v24, %v416_v25  ;;  %v901_v24 = vrot.slane %v4614_v45, 1 }
  0x29   : > { %3867 = vmatprep.subr.bf16.mxu0 %v4345_v40  ;;  %v4721_v39 = vsel %vm889_vm1, %v891_v27, %v893_v28  ;;  %v4754_v61 = vsel %vm889_vm1, %v890_v55, %v891_v27  ;;  %v454_v27 = vshll.u32 %v3118_v48, 16  ;;  %v4793_v28 = vsel %vm889_vm1, %v897_v53, %v899_v16 }
  0x2a   : > { %3664 = vmatmul.mubr.bf16.vlgmr.msra.gmra.mrb[0].mxu1 %v361_v34  ;;  %v426_v34 = vshrl.u32 %v4688_v20, 16  ;;  %v4799_v30 = vsel %vm889_vm1, %v899_v16, %v901_v24  ;;  %v4385_v16 = vld [vmem:[%s5278_s1 + $0x98] sm:$0xff]  }
  0x2b   : > { %3840 = vmatmul.mubr.bf16.vlgmr.msra.gmra.mrb[0].mxu0 %v4617_v46  ;;  %3667 = vmatprep.mubr.bf16.mxu1 %v4617_v46 }
  0x2c   : > { %3868 = vmatpush3.bf16.msra.mxu0 %v4345_v40  ;;  %3843 = vmatprep.mubr.bf16.mxu0 %v4625_v50  ;;  %v4724_v40 = vld [vmem:[%s4560_s28 + $0x60] sm:$0xff]   ;;  %v428_v51 = vor.u32 %v426_v34, %v424_v41  ;;  %v456_v34 = vrot.slane %v454_v27, 1  ;;  %v4389_v27 = vld [vmem:[%s5278_s1 + $0xa8] sm:$0xff]  }
  0x2d   : > { %3869 = vmatprep.subr.bf16.mxu0 %v4346_v49  ;;  %3692 = vmatpush3.bf16.msra.mxu1 %v4348_v42  ;;  %v4375_v42 = vld [vmem:[%s5278_s1 + $0x38] sm:$0xff]   ;;  %v438_v59 = vshll.u32 %v4724_v40, 16  ;;  %v442_v5 = vshrl.u32 %v4724_v40, 16 }
  0x2e   : > { %3693 = vmatprep.subr.bf16.mxu1 %v4352_v52 }
  0x2f   : > { %v440_v10 = vrot.slane %v438_v59, 1  ;;  %v4384_v59 = vld [vmem:[%s5278_s1 + $0x1b8] sm:$0xff]  }
  0x30   : > { %3870 = vmatpush3.bf16.msra.mxu0 %v4346_v49  ;;  %v4364_v49 = vld [vmem:[%s5278_s1 + $0x180] sm:$0xff]  }
  0x31   : > { %3871 = vmatprep.subr.bf16.mxu0 %v4350_v56  ;;  %3694 = vmatpush3.bf16.msra.mxu1 %v4352_v52  ;;  %v432_v52 = vrot.slane %v430_v35, 1  ;;  %v444_v17 = vor.u32 %v442_v5, %v440_v10  ;;  %v903_v35 = vrot.slane %v4634_v54, 1  ;;  %v913_v5 = vrot.slane %v4724_v40, 1 }
  0x32   : > { %3668 = vmatmul.mubr.bf16.gmra.mrb[4].mxu1 %v4625_v50  ;;  %3695 = vmatprep.subr.bf16.mxu1 %v4357_v60 }
  0x33   : > { %3844 = vmatmul.mubr.bf16.gmra.mrb[4].mxu0 %v4648_v62  ;;  %3671 = vmatprep.mubr.bf16.mxu1 %v4648_v62 }
  0x34   : > { %3872 = vmatpush3.bf16.msra.mxu0 %v4350_v56  ;;  %3847 = vmatprep.mubr.bf16.mxu0 %v4655_v1  ;;  %v4745_v56 = vrot.slane %v4734_v47, 1 }
  0x35   : > { %3873 = vmatprep.subr.bf16.mxu0 %v4351_v63  ;;  %3696 = vmatpush3.bf16.msra.mxu1 %v4357_v60  ;;  %v4751_v60 = vld [vmem:[%s5278_s1 + $0x80] sm:$0xff]  }
  0x36   : > { %3697 = vmatprep.subr.bf16.mxu1 %v4362_v4  ;;  %v4762_v2 = vsel %vm889_vm1, %v4745_v56, %v917_v57 }
  0x38   : > { %3874 = vmatpush3.bf16.msra.mxu0 %v4351_v63  ;;  %v4757_v63 = vsel %vm341_vm0, %v420_v43, %v424_v41  ;;  %v905_v41 = vrot.slane %v4641_v58, 1 }
  0x39   : > { %3875 = vmatprep.subr.bf16.mxu0 %v4355_v8  ;;  %3698 = vmatpush3.bf16.msra.mxu1 %v4362_v4  ;;  %v4768_v4 = vsel %vm341_vm0, %v428_v51, %v432_v52  ;;  %v907_v51 = vrot.slane %v4667_v7, 1 }
  0x3a   : > { %3672 = vmatmul.mubr.bf16.gmra.mrb[8].mxu1 %v4655_v1  ;;  %3699 = vmatprep.subr.bf16.mxu1 %v4365_v11  ;;  %v4821_v48 = vsel %vm889_vm1, %v903_v35, %v905_v41 }
  0x3b   : > { %3848 = vmatmul.mubr.bf16.gmra.mrb[8].mxu0 %v4676_v14  ;;  %3675 = vmatprep.mubr.bf16.mxu1 %v4676_v14  ;;  %v4835_v55 = vsel %vm889_vm1, %v905_v41, %v907_v51  ;;  %v4395_v41 = vld [vmem:[%s5278_s1 + $0xc0] sm:$0xff]  }
  0x3c   : > { %3876 = vmatpush3.bf16.msra.mxu0 %v4355_v8  ;;  %3851 = vmatprep.mubr.bf16.mxu0 %v4684_v19  ;;  %v4773_v8 = vsel %vm889_vm1, %v895_v44, %v897_v53  ;;  %v4818_v44 = vsel %vm889_vm1, %v901_v24, %v903_v35  ;;  %v4381_v53 = vld [vmem:[%s5278_s1 + $0x1b0] sm:$0xff]   ;;  %v4392_v35 = vld [vmem:[%s5278_s1 + $0xb8] sm:$0xff]  }
  0x3d   : > { %3877 = vmatprep.subr.bf16.mxu0 %v4356_v18  ;;  %3700 = vmatpush3.bf16.msra.mxu1 %v4365_v11  ;;  %v436_v11 = vor.u32 %v434_v0, %v432_v52  ;;  %v909_v52 = vrot.slane %v4688_v20, 1  ;;  %v911_v0 = vrot.slane %v4696_v23, 1 }
  0x3e   : > { %3701 = vmatprep.subr.bf16.mxu1 %v4369_v21 }
  0x3f   : > { %v4789_v25 = vsel %vm341_vm0, %v436_v11, %v440_v10  ;;  %v4841_v57 = vsel %vm889_vm1, %v907_v51, %v909_v52  ;;  %v4861_v10 = vsel %vm889_vm1, %v909_v52, %v911_v0  ;;  %v4867_v11 = vsel %vm889_vm1, %v911_v0, %v913_v5  ;;  %v4397_v51 = vld [vmem:[%s5278_s1 + $0xc8] sm:$0xff]   ;;  %v4399_v52 = vld [vmem:[%s5278_s1 + $0xd0] sm:$0xff]   ;;  %v233_v0 = vld [vmem:[%s4560_s28 + $0x7c] sm:$0xf] }
  0x40   : > { %3878 = vmatpush3.bf16.msra.mxu0 %v4356_v18  ;;  %v448_v18 = vrot.slane %v446_v6, 1  ;;  %v231_v6 = vld [vmem:[%s4560_s28 + $0x74] sm:$0xf] }
  0x41   : > { %3879 = vmatprep.subr.bf16.mxu0 %v4360_v26  ;;  %3702 = vmatpush3.bf16.msra.mxu1 %v4369_v21  ;;  %v4370_v21 = vld [vmem:[%s5278_s1 + $0x190] sm:$0xff]  }
  0x42   : > { %3676 = vmatmul.mubr.bf16.gmra.mrb[12].mxu1 %v4684_v19  ;;  %3703 = vmatprep.subr.bf16.mxu1 %v4374_v32  ;;  %v4796_v29 = vsel %vm341_vm0, %v444_v17, %v448_v18  ;;  %v4880_v17 = vld [vmem:[%s4560_s28 + $0x78] sm:$0xf] }
  0x43   : > { %3852 = vmatmul.mubr.bf16.gmra.mrb[12].mxu0 %v4715_v36  ;;  %3679 = vmatprep.mubr.bf16.mxu1 %v4715_v36  ;;  %v4891_v24 = vcombine.low %v4880_v17, %v4880_v17 }
  0x44   : > { %3880 = vmatpush3.bf16.msra.mxu0 %v4360_v26  ;;  %3883 = vmatprep.mubr.bf16.mxu0 %v4721_v39  ;;  %v450_v26 = vshrl.u32 %v4734_v47, 16 }
  0x45   : > { %3881 = vmatprep.subr.bf16.mxu0 %v4361_v33  ;;  %3704 = vmatpush3.bf16.msra.mxu1 %v4374_v32  ;;  %v4376_v32 = vld [vmem:[%s5278_s1 + $0x198] sm:$0xff]  }
  0x46   : > { %3705 = vmatprep.subr.bf16.mxu1 %v4375_v42 }
  0x48   : > { %3882 = vmatpush3.bf16.msra.mxu0 %v4361_v33  ;;  %v4807_v33 = vor.u32 %v450_v26, %v448_v18  ;;  %v4387_v18 = vld [vmem:[%s5278_s1 + $0xa0] sm:$0xff]  }
  0x49   : > { %3911 = vmatprep.subr.bf16.mxu0 %v4364_v49  ;;  %3706 = vmatpush3.bf16.msra.mxu1 %v4375_v42  ;;  %v4377_v42 = vld [vmem:[%s5278_s1 + $0x1a0] sm:$0xff]  }
  0x4a   : > { %3680 = vmatmul.mubr.bf16.gmra.mrb[16].mxu1 %v4757_v63  ;;  %3735 = vmatprep.subr.bf16.mxu1 %v4751_v60  ;;  %v457_v43 = vsel %vm341_vm0, %v4807_v33, %v456_v34 }
  0x4b   : > { %3884 = vmatmul.mubr.bf16.vlgmr.msra.gmra.mrb[0].mxu0 %v4765_v3  ;;  %3683 = vmatprep.mubr.bf16.mxu1 %v4768_v4 }
  0x4c   : > { %3912 = vmatpush3.bf16.msra.mxu0 %v4364_v49  ;;  %3887 = vmatprep.mubr.bf16.mxu0 %v4773_v8  ;;  %v4379_v49 = vld [vmem:[%s5278_s1 + $0x1a8] sm:$0xff]  }
  0x4d   : > { %3913 = vmatprep.subr.bf16.mxu0 %v4367_v9 }
  0x50   : > { %3914 = vmatpush3.bf16.msra.mxu0 %v4367_v9  ;;  %v4386_v9 = vld [vmem:[%s5278_s1 + $0x1c0] sm:$0xff]  }
  0x51   : > { %3915 = vmatprep.subr.bf16.mxu0 %v4370_v21 }
  0x52   : > { %3684 = vmatmul.mubr.bf16.gmra.mrb[20].mxu1 %v4789_v25 }
  0x53   : > { %3888 = vmatmul.mubr.bf16.gmra.mrb[4].mxu0 %v4793_v28  ;;  %3687 = vmatprep.mubr.bf16.mxu1 %v4796_v29 }
  0x54   : > { %3891 = vmatprep.mubr.bf16.mxu0 %v4799_v30  ;;  %3916 = vmatpush3.bf16.msra.mxu0 %v4370_v21  ;;  %v4887_v21 = vsel %vm889_vm1, %v913_v5, %v4745_v56  ;;  %v4408_v5 = vld [vmem:[%s5278_s1 + $0xf0] sm:$0xff]  }
  0x55   : > { %3917 = vmatprep.subr.bf16.mxu0 %v4376_v32 }
  0x58   : > { %3918 = vmatpush3.bf16.msra.mxu0 %v4376_v32  ;;  %v1671_v32 = vrot.slane %v4891_v24, 1 }
  0x59   : > { %3919 = vmatprep.subr.bf16.mxu0 %v4377_v42 }
  0x5a   : > { %3688 = vmatmul.mubr.bf16.gmra.mrb[24].mxu1 %v457_v43  ;;  %v4393_v43 = vld [vmem:[%s5278_s1 + $0x1d8] sm:$0xff]  }
  0x5b   : > { %3892 = vmatmul.mubr.bf16.gmra.mrb[8].mxu0 %v4818_v44  ;;  %3707 = vmatprep.mubr.bf16.mxu1 %v4566_v12  ;;  %v4380_v12 = vld [vmem:[%s5278_s1 + $0x88] sm:$0xff]  }
  0x5c   : > { %3895 = vmatprep.mubr.bf16.mxu0 %v4821_v48  ;;  %3920 = vmatpush3.bf16.msra.mxu0 %v4377_v42  ;;  %v4388_v42 = vld [vmem:[%s5278_s1 + $0x1c8] sm:$0xff]  }
  0x5d   : > { %3921 = vmatprep.subr.bf16.mxu0 %v4379_v49 }
  0x60   : > { %3922 = vmatpush3.bf16.msra.mxu0 %v4379_v49  ;;  %v4398_v49 = vld [vmem:[%s5278_s1 + $0x1f0] sm:$0xff]  }
  0x61   : > { %3923 = vmatprep.subr.bf16.mxu0 %v4381_v53 }
  0x62   : > { %3708 = vmatmul.mubr.bf16.vlgmr.msra.gmra.mrb[0].mxu1 %v4569_v13  ;;  %v4382_v13 = vld [vmem:[%s5278_s1 + $0x90] sm:$0xff]  }
  0x63   : > { %3896 = vmatmul.mubr.bf16.gmra.mrb[12].mxu0 %v4835_v55  ;;  %3711 = vmatprep.mubr.bf16.mxu1 %v4575_v15 }
  0x64   : > { %3899 = vmatprep.mubr.bf16.mxu0 %v4841_v57  ;;  %3736 = vmatpush3.bf16.msra.mxu1 %v4751_v60  ;;  %v4864_v60 = vcombine.low %v4718_v37, %v231_v6  ;;  %v4409_v6 = vld [vmem:[%s5278_s1 + $0xf8] sm:$0xff]  }
  0x65   : > { %3737 = vmatprep.subr.bf16.mxu1 %v4380_v12  ;;  %3924 = vmatpush3.bf16.msra.mxu0 %v4381_v53  ;;  %v4402_v53 = vld [vmem:[%s5278_s1 + $0xd8] sm:$0xff]  }
  0x66   : > { %3925 = vmatprep.subr.bf16.mxu0 %v4384_v59  ;;  %v4877_v37 = vrot.slane %v4864_v60, 1 }
  0x68   : > { %3738 = vmatpush3.bf16.msra.mxu1 %v4380_v12  ;;  %v4896_v26 = vsel %vm889_vm1, %v4745_v56, %v4877_v37  ;;  %v4391_v56 = vld [vmem:[%s5278_s1 + $0xb0] sm:$0xff]   ;;  %v1672_v34 = vsel %vm889_vm1, %v4877_v37, %v1671_v32  ;;  %v4404_v12 = vld [vmem:[%s5278_s1 + $0xe0] sm:$0xff]  }
  0x69   : > { %3739 = vmatprep.subr.bf16.mxu1 %v4382_v13  ;;  %3926 = vmatpush3.bf16.msra.mxu0 %v4384_v59  ;;  %v4406_v59 = vld [vmem:[%s5278_s1 + $0xe8] sm:$0xff]   ;;  %v4421_v32 = vld [vmem:[%s5278_s1 + $0x110] sm:$0xff]  }
  0x6a   : > { %3712 = vmatmul.mubr.bf16.gmra.mrb[4].mxu1 %v4586_v22  ;;  %3955 = vmatprep.subr.bf16.mxu0 %v4386_v9 }
  0x6b   : > { %3900 = vmatmul.mubr.bf16.gmra.mrb[16].mxu0 %v4861_v10  ;;  %3715 = vmatprep.mubr.bf16.mxu1 %v4594_v31 }
  0x6c   : > { %3903 = vmatprep.mubr.bf16.mxu0 %v4867_v11  ;;  %3740 = vmatpush3.bf16.msra.mxu1 %v4382_v13  ;;  %v4988_v13 = vcombine.low %v4880_v17, %v233_v0  ;;  %v4410_v17 = vld [vmem:[%s5278_s1 + $0x218] sm:$0xff]  }
  0x6d   : > { %3741 = vmatprep.subr.bf16.mxu1 %v4385_v16 }
  0x70   : > { %3742 = vmatpush3.bf16.msra.mxu1 %v4385_v16  ;;  %v4416_v16 = vld [vmem:[%s5278_s1 + $0x100] sm:$0xff]  }
  0x71   : > { %3743 = vmatprep.subr.bf16.mxu1 %v4387_v18 }
  0x72   : > { %3716 = vmatmul.mubr.bf16.gmra.mrb[8].mxu1 %v4604_v38 }
  0x73   : > { %3904 = vmatmul.mubr.bf16.gmra.mrb[20].mxu0 %v4887_v21  ;;  %3719 = vmatprep.mubr.bf16.mxu1 %v4614_v45 }
  0x74   : > { %3907 = vmatprep.mubr.bf16.mxu0 %v4896_v26  ;;  %3744 = vmatpush3.bf16.msra.mxu1 %v4387_v18  ;;  %v4418_v18 = vld [vmem:[%s4560_s28 + $0x10] sm:$0xff]  }
  0x75   : > { %3745 = vmatprep.subr.bf16.mxu1 %v4389_v27 }
  0x78   : > { %3746 = vmatpush3.bf16.msra.mxu1 %v4389_v27  ;;  %v1417_v27 = vshll.u32 %v4864_v60, 16 }
  0x79   : > { %3747 = vmatprep.subr.bf16.mxu1 %v4391_v56 }
  0x7a   : > { %3720 = vmatmul.mubr.bf16.gmra.mrb[12].mxu1 %v4634_v54 }
  0x7b   : > { %3908 = vmatmul.mubr.bf16.gmra.mrb[24].mxu0 %v1672_v34  ;;  %3723 = vmatprep.mubr.bf16.mxu1 %v4641_v58  ;;  %v2159_v34 = vshll.u32 %v4988_v13, 16 }
  0x7c   : > { %3927 = vmatprep.mubr.bf16.mxu0 %v4575_v15  ;;  %3748 = vmatpush3.bf16.msra.mxu1 %v4391_v56  ;;  %v4390_v15 = vld [vmem:[%s5278_s1 + $0x1d0] sm:$0xff]   ;;  %v1421_v56 = vshrl.u32 %v4864_v60, 16 }
  0x7d   : > { %3749 = vmatprep.subr.bf16.mxu1 %v4392_v35 }
  0x80   : > { %3750 = vmatpush3.bf16.msra.mxu1 %v4392_v35  ;;  %v4422_v35 = vld [vmem:[%s4560_s28 + $0x20] sm:$0xff]  }
  0x81   : > { %3779 = vmatprep.subr.bf16.mxu1 %v4395_v41 }
  0x82   : > { %3724 = vmatmul.mubr.bf16.gmra.mrb[16].mxu1 %v4667_v7 }
  0x83   : > { %3928 = vmatmul.mubr.bf16.vlgmr.msra.gmra.mrb[0].mxu0 %v4586_v22  ;;  %3727 = vmatprep.mubr.bf16.mxu1 %v4688_v20  ;;  %v4394_v22 = vld [vmem:[%s5278_s1 + $0x1e0] sm:$0xff]  }
  0x84   : > { %3956 = vmatpush3.bf16.msra.mxu0 %v4386_v9  ;;  %3931 = vmatprep.mubr.bf16.mxu0 %v4594_v31  ;;  %v4396_v31 = vld [vmem:[%s5278_s1 + $0x1e8] sm:$0xff]  }
  0x85   : > { %3957 = vmatprep.subr.bf16.mxu0 %v4388_v42  ;;  %v4405_v9 = vld [vmem:[%s5278_s1 + $0x208] sm:$0xff]  }
  0x88   : > { %3958 = vmatpush3.bf16.msra.mxu0 %v4388_v42  ;;  %v5051_v42 = vld [vmem:[%s4560_s28 + $0x80] ss:$0 sps:$4 sm:$0xff]  }
  0x89   : > { %3959 = vmatprep.subr.bf16.mxu0 %v4390_v15 }
  0x8a   : > { %3728 = vmatmul.mubr.bf16.gmra.mrb[20].mxu1 %v4696_v23 }
  0x8b   : > { %3932 = vmatmul.mubr.bf16.gmra.mrb[4].mxu0 %v4604_v38  ;;  %3731 = vmatprep.mubr.bf16.mxu1 %v4724_v40 }
  0x8c   : > { %3935 = vmatprep.mubr.bf16.mxu0 %v4614_v45  ;;  %3960 = vmatpush3.bf16.msra.mxu0 %v4390_v15 }
  0x8d   : > { %3961 = vmatprep.subr.bf16.mxu0 %v4393_v43 }
  0x90   : > { %3962 = vmatpush3.bf16.msra.mxu0 %v4393_v43  ;;  %v2161_v43 = vrot.slane %v2159_v34, 1 }
  0x91   : > { %3963 = vmatprep.subr.bf16.mxu0 %v4394_v22 }
  0x92   : > { %3732 = vmatmul.mubr.bf16.gmra.mrb[24].mxu1 %v4734_v47 }
  0x93   : > { %3936 = vmatmul.mubr.bf16.gmra.mrb[8].mxu0 %v4634_v54  ;;  %3751 = vmatprep.mubr.bf16.mxu1 %v4754_v61  ;;  %v4401_v61 = vld [vmem:[%s5278_s1 + $0x1f8] sm:$0xff]  }
  0x94   : > { %3939 = vmatprep.mubr.bf16.mxu0 %v4641_v58  ;;  %3964 = vmatpush3.bf16.msra.mxu0 %v4394_v22  ;;  %v4423_v22 = vld [vmem:[%s5278_s1 + $0x118] sm:$0xff]  }
  0x95   : > { %3965 = vmatprep.subr.bf16.mxu0 %v4396_v31 }
  0x98   : > { %3966 = vmatpush3.bf16.msra.mxu0 %v4396_v31 }
  0x99   : > { %3967 = vmatprep.subr.bf16.mxu0 %v4398_v49 }
  0x9a   : > { %3752 = vmatmul.mubr.bf16.vlgmr.msra.gmra.mrb[0].mxu1 %v4721_v39  ;;  %v4403_v39 = vld [vmem:[%s5278_s1 + $0x200] sm:$0xff]  }
  0x9b   : > { %3940 = vmatmul.mubr.bf16.gmra.mrb[12].mxu0 %v4667_v7  ;;  %3755 = vmatprep.mubr.bf16.mxu1 %v4765_v3 }
  0x9c   : > { %3943 = vmatprep.mubr.bf16.mxu0 %v4688_v20  ;;  %3780 = vmatpush3.bf16.msra.mxu1 %v4395_v41  ;;  %v1419_v41 = vrot.slane %v1417_v27, 1 }
  0x9d   : > { %3781 = vmatprep.subr.bf16.mxu1 %v4397_v51  ;;  %3968 = vmatpush3.bf16.msra.mxu0 %v4398_v49  ;;  %v2163_v49 = vshrl.u32 %v4988_v13, 16 }
  0x9e   : > { %3969 = vmatprep.subr.bf16.mxu0 %v4401_v61  ;;  %v1423_v15 = vor.u32 %v1421_v56, %v1419_v41  ;;  %v1420_v31 = vsel %vm341_vm0, %v4807_v33, %v1419_v41 }
  0xa0   : > { %3782 = vmatpush3.bf16.msra.mxu1 %v4397_v51  ;;  %v2162_v51 = vsel %vm341_vm0, %v1423_v15, %v2161_v43 }
  0xa1   : > { %3783 = vmatprep.subr.bf16.mxu1 %v4399_v52  ;;  %3970 = vmatpush3.bf16.msra.mxu0 %v4401_v61  ;;  %v4424_v61 = vld [vmem:[%s5278_s1 + $0x120] sm:$0xff]  }
  0xa2   : > { %3756 = vmatmul.mubr.bf16.gmra.mrb[4].mxu1 %v4773_v8  ;;  %3999 = vmatprep.subr.bf16.mxu0 %v4403_v39 }
  0xa3   : > { %3944 = vmatmul.mubr.bf16.gmra.mrb[16].mxu0 %v4696_v23  ;;  %3759 = vmatprep.mubr.bf16.mxu1 %v4793_v28 }
  0xa4   : > { %3947 = vmatprep.mubr.bf16.mxu0 %v4724_v40  ;;  %3784 = vmatpush3.bf16.msra.mxu1 %v4399_v52  ;;  %v2165_v52 = vor.u32 %v2163_v49, %v2161_v43 }
  0xa5   : > { %3785 = vmatprep.subr.bf16.mxu1 %v4402_v53 }
  0xa8   : > { %3786 = vmatpush3.bf16.msra.mxu1 %v4402_v53 }
  0xa9   : > { %3787 = vmatprep.subr.bf16.mxu1 %v4404_v12 }
  0xaa   : > { %3760 = vmatmul.mubr.bf16.gmra.mrb[8].mxu1 %v4799_v30 }
  0xab   : > { %3948 = vmatmul.mubr.bf16.gmra.mrb[20].mxu0 %v4734_v47  ;;  %3763 = vmatprep.mubr.bf16.mxu1 %v4818_v44 }
  0xac   : > { %3951 = vmatprep.mubr.bf16.mxu0 %v4864_v60  ;;  %3788 = vmatpush3.bf16.msra.mxu1 %v4404_v12  ;;  %v4426_v12 = vld [vmem:[%s5278_s1 + $0x130] sm:$0xff]  }
  0xad   : > { %3789 = vmatprep.subr.bf16.mxu1 %v4406_v59 }
  0xb0   : > { %3790 = vmatpush3.bf16.msra.mxu1 %v4406_v59 }
  0xb1   : > { %3791 = vmatprep.subr.bf16.mxu1 %v4408_v5 }
  0xb2   : > { %3764 = vmatmul.mubr.bf16.gmra.mrb[12].mxu1 %v4821_v48 }
  0xb3   : > { %3952 = vmatmul.mubr.bf16.gmra.mrb[24].mxu0 %v4988_v13  ;;  %3767 = vmatprep.mubr.bf16.mxu1 %v4835_v55 }
  0xb4   : > { %3971 = vmatprep.mubr.bf16.mxu0 %v4617_v46  ;;  %3792 = vmatpush3.bf16.msra.mxu1 %v4408_v5  ;;  %v4407_v46 = vld [vmem:[%s5278_s1 + $0x210] sm:$0xff]  }
  0xb5   : > { %3793 = vmatprep.subr.bf16.mxu1 %v4409_v6 }
  0xb8   : > { %3794 = vmatpush3.bf16.msra.mxu1 %v4409_v6 }
  0xb9   : > { %4043 = vmatprep.subr.bf16.mxu1 %v4416_v16 }
  0xba   : > { %3768 = vmatmul.mubr.bf16.gmra.mrb[16].mxu1 %v4841_v57 }
  0xbb   : > { %3972 = vmatmul.mubr.bf16.vlgmr.msra.gmra.mrb[0].mxu0 %v4625_v50  ;;  %3771 = vmatprep.mubr.bf16.mxu1 %v4861_v10  ;;  %v4411_v50 = vld [vmem:[%s5278_s1 + $0x220] sm:$0xff]  }
  0xbc   : > { %4000 = vmatpush3.bf16.msra.mxu0 %v4403_v39  ;;  %3975 = vmatprep.mubr.bf16.mxu0 %v4648_v62  ;;  %v4412_v62 = vld [vmem:[%s5278_s1 + $0x228] sm:$0xff]  }
  0xbd   : > { %4001 = vmatprep.subr.bf16.mxu0 %v4405_v9  ;;  %v4425_v39 = vld [vmem:[%s5278_s1 + $0x128] sm:$0xff]  }
  0xc0   : > { %4002 = vmatpush3.bf16.msra.mxu0 %v4405_v9 }
  0xc1   : > { %4003 = vmatprep.subr.bf16.mxu0 %v4407_v46 }
  0xc2   : > { %3772 = vmatmul.mubr.bf16.gmra.mrb[20].mxu1 %v4867_v11 }
  0xc3   : > { %3976 = vmatmul.mubr.bf16.gmra.mrb[4].mxu0 %v4655_v1  ;;  %3775 = vmatprep.mubr.bf16.mxu1 %v4887_v21  ;;  %v4417_v1 = vld [vmem:[%s4560_s28 + $0x8] sm:$0xff]  }
  0xc4   : > { %3979 = vmatprep.mubr.bf16.mxu0 %v4676_v14  ;;  %4004 = vmatpush3.bf16.msra.mxu0 %v4407_v46  ;;  %v4413_v14 = vld [vmem:[%s5278_s1 + $0x230] sm:$0xff]  }
  0xc5   : > { %4005 = vmatprep.subr.bf16.mxu0 %v4410_v17 }
  0xc8   : > { %4006 = vmatpush3.bf16.msra.mxu0 %v4410_v17 }
  0xc9   : > { %4007 = vmatprep.subr.bf16.mxu0 %v4411_v50 }
  0xca   : > { %3776 = vmatmul.mubr.bf16.gmra.mrb[24].mxu1 %v4762_v2  ;;  %v4415_v2 = vld [vmem:[%s5278_s1 + $0x238] sm:$0xff]  }
  0xcb   : > { %3980 = vmatmul.mubr.bf16.gmra.mrb[8].mxu0 %v4684_v19  ;;  %3795 = vmatprep.mubr.bf16.mxu1 %v4417_v1  ;;  %v4419_v19 = vld [vmem:[%s4560_s28 + $0x18] sm:$0xff]  }
  0xcc   : > { %3983 = vmatprep.mubr.bf16.mxu0 %v4715_v36  ;;  %4008 = vmatpush3.bf16.msra.mxu0 %v4411_v50  ;;  %v4420_v36 = vld [vmem:[%s5278_s1 + $0x108] sm:$0xff]  }
  0xcd   : > { %4009 = vmatprep.subr.bf16.mxu0 %v4412_v62 }
  0xd0   : > { %4010 = vmatpush3.bf16.msra.mxu0 %v4412_v62 }
  0xd1   : > { %4011 = vmatprep.subr.bf16.mxu0 %v4413_v14 }
  0xd2   : > { %3796 = vmatmul.mubr.bf16.vlgmr.msra.gmra.mrb[0].mxu1 %v4418_v18 }
  0xd3   : > { %3984 = vmatmul.mubr.bf16.gmra.mrb[12].mxu0 %v4757_v63  ;;  %3799 = vmatprep.mubr.bf16.mxu1 %v4419_v19 }
  0xd4   : > { %3987 = vmatprep.mubr.bf16.mxu0 %v4768_v4  ;;  %4051 = vmatpush3.bf16.msra.mxu1 %v4416_v16 }
  0xd5   : > { %4044 = vmatprep.subr.bf16.mxu1 %v4420_v36  ;;  %4012 = vmatpush3.bf16.msra.mxu0 %v4413_v14 }
  0xd6   : > { %4013 = vmatprep.subr.bf16.mxu0 %v4415_v2 }
  0xd8   : > { %4052 = vmatpush3.bf16.msra.mxu1 %v4420_v36 }
  0xd9   : > { %4045 = vmatprep.subr.bf16.mxu1 %v4421_v32  ;;  %4014 = vmatpush3.bf16.msra.mxu0 %v4415_v2 }
  0xda   : > { %3800 = vmatmul.mubr.bf16.gmra.mrb[4].mxu1 %v4422_v35 }
  0xdb   : > { %3988 = vmatmul.mubr.bf16.gmra.mrb[16].mxu0 %v4789_v25  ;;  %3803 = vmatprep.mubr.bf16.mxu1 %v4604_v38  ;;  %v2167_v38 = vshll.u32 %v5051_v42, 16 }
  0xdc   : > { %3991 = vmatprep.mubr.bf16.mxu0 %v4796_v29  ;;  %4053 = vmatpush3.bf16.msra.mxu1 %v4421_v32 }
  0xdd   : > { %4046 = vmatprep.subr.bf16.mxu1 %v4423_v22  ;;  %v2169_v33 = vrot.slane %v2167_v38, 1 }
  0xdf   : > { %v2170_v53 = vsel %vm341_vm0, %v2165_v52, %v2169_v33 }
  0xe0   : > { %4054 = vmatpush3.bf16.msra.mxu1 %v4423_v22 }
  0xe1   : > { %4047 = vmatprep.subr.bf16.mxu1 %v4424_v61 }
  0xe2   : > { %3804 = vmatmul.mubr.bf16.gmra.mrb[8].mxu1 %v4614_v45  ;;  %v4427_v45 = vld [vmem:[%s5278_s1 + $0x138] sm:$0xff]  }
  0xe3   : > { %3992 = vmatmul.mubr.bf16.gmra.mrb[20].mxu0 %v1420_v31  ;;  %3807 = vmatprep.mubr.bf16.mxu1 %v4634_v54  ;;  %v1425_v54 = vshll.u32 %v4891_v24, 16 }
  0xe4   : > { %3995 = vmatprep.mubr.bf16.mxu0 %v2162_v51  ;;  %4055 = vmatpush3.bf16.msra.mxu1 %v4424_v61 }
  0xe5   : > { %4048 = vmatprep.subr.bf16.mxu1 %v4425_v39 }
  0xe8   : > { %4056 = vmatpush3.bf16.msra.mxu1 %v4425_v39 }
  0xe9   : > { %4049 = vmatprep.subr.bf16.mxu1 %v4426_v12 }
  0xea   : > { %3808 = vmatmul.mubr.bf16.gmra.mrb[12].mxu1 %v4641_v58  ;;  %v1427_v58 = vrot.slane %v1425_v54, 1 }
  0xeb   : > { %3996 = vmatmul.mubr.bf16.gmra.mrb[24].mxu0 %v2170_v53  ;;  %3811 = vmatprep.mubr.bf16.mxu1 %v4667_v7  ;;  %v2411_v7 = vrot.slane %v4988_v13, 1  ;;  %v5134_v13 = vld [vmem:[%s5279_s2] ss:$0 sm:$0xff] }
  0xec   : > { %4015 = vmatprep.mubr.bf16.mxu0 %v4765_v3  ;;  %4057 = vmatpush3.bf16.msra.mxu1 %v4426_v12 }
  0xed   : > { %4050 = vmatprep.subr.bf16.mxu1 %v4427_v45 }
  0xf0   : > { %4058 = vmatpush3.bf16.msra.mxu1 %v4427_v45 }
  0xf2   : > { %3812 = vmatmul.mubr.bf16.gmra.mrb[16].mxu1 %v4688_v20  ;;  %v1428_v20 = vsel %vm341_vm0, %v1423_v15, %v1427_v58 }
  0xf3   : > { %4016 = vmatmul.mubr.bf16.vlgmr.msra.gmra.mrb[0].mxu0 %v4773_v8  ;;  %3815 = vmatprep.mubr.bf16.mxu1 %v4696_v23  ;;  %v2412_v23 = vsel %vm889_vm1, %v4877_v37, %v2411_v7 }
  0xf4   : > { %4019 = vmatprep.mubr.bf16.mxu0 %v4793_v28 }
  0xfa   : > { %3816 = vmatmul.mubr.bf16.gmra.mrb[20].mxu1 %v4724_v40  ;;  %v2413_v40 = vrot.slane %v5051_v42, 1 }
  0xfb   : > { %4020 = vmatmul.mubr.bf16.gmra.mrb[4].mxu0 %v4799_v30  ;;  %3819 = vmatprep.mubr.bf16.mxu1 %v4734_v47 }
  0xfc   : > { %4023 = vmatprep.mubr.bf16.mxu0 %v4818_v44  ;;  %v2414_v47 = vsel %vm889_vm1, %v2411_v7, %v2413_v40 }
 0x102   : > { %3820 = vmatmul.mubr.bf16.gmra.mrb[24].mxu1 %v4864_v60  ;;  %v2716_v60 = vlaneseq }
 0x103   : > { %4024 = vmatmul.mubr.bf16.gmra.mrb[8].mxu0 %v4821_v48  ;;  %3855 = vmatprep.mubr.bf16.mxu1 %v4757_v63 }
 0x104   : > { %4027 = vmatprep.mubr.bf16.mxu0 %v4835_v55  ;;  %v2717_v24 = vshrl.u32 %v2716_v60, 7 }
 0x106   : > { %v5129_v0 = vadd.s32 8, %v2717_v24 }
 0x108   : > { %vm2734_vm3 = vcmp.lt.s32.totalorder %v5129_v0, 14 }
 0x10a   : > { %3856 = vmatmul.mubr.bf16.vlgmr.msra.gmra.mrb[16].mxu1 %v4768_v4 }
 0x10b   : > { %4028 = vmatmul.mubr.bf16.gmra.mrb[12].mxu0 %v4841_v57  ;;  %3859 = vmatprep.mubr.bf16.mxu1 %v4789_v25 }
 0x10c   : > { %4031 = vmatprep.mubr.bf16.mxu0 %v4861_v10 }
 0x112   : > { %3860 = vmatmul.mubr.bf16.gmra.mrb[20].mxu1 %v4796_v29 }
 0x113   : > { %4032 = vmatmul.mubr.bf16.gmra.mrb[16].mxu0 %v4867_v11  ;;  %3863 = vmatprep.mubr.bf16.mxu1 %v1420_v31 }
 0x114   : > { %4035 = vmatprep.mubr.bf16.mxu0 %v4887_v21 }
 0x11a   : > { %3864 = vmatmul.mubr.bf16.gmra.mrb[24].mxu1 %v1428_v20 }
 0x11b   : > { %4036 = vmatmul.mubr.bf16.gmra.mrb[20].mxu0 %v4896_v26  ;;  %v5125_v26 = vstv %s185_s6  ;;  %s5294_s6 = smov (!%p188_p6, %s185_s6), 27 }
 0x11c   : > { %4039 = vmatprep.mubr.bf16.mxu0 %v2412_v23  ;;  %v2703_v59 = vadd.s32 1, %v5125_v26  ;;  %s3085_s9 = sshll.u32 %s5294_s6, 1  ;;  %vm2719_vm4 = vcmp.lt.s32.totalorder %v5125_v26, 14  ;;  %v2705_v32 = vadd.s32 3, %v5125_v26  ;;  %v2704_v35 = vadd.s32 2, %v5125_v26 }
 0x11d   : > { %s192_s10 = sadd.s32 %s4284_s7, %s3085_s9  ;;  %vm2736_vm6 = vmand %vm2719_vm4, %vm2734_vm3  ;;  %v2707_v23 = vadd.s32 5, %v5125_v26 }
 0x11e   : > { %vm2720_vm2 = vcmp.lt.s32.totalorder %v2703_v59, 14  ;;  %s3086_s13 = sshll.u32 %s192_s10, 2  ;;  %vm2722_vm7 = vcmp.lt.s32.totalorder %v2705_v32, 14  ;;  %vm2721_vm8 = vcmp.lt.s32.totalorder %v2704_v35, 14 }
 0x11f   : > { %vm2738_vm5 = vmand %vm2720_vm2, %vm2734_vm3  ;;  %s5155_s20 = scalar_lea.vmem %s5280_s3, %s3086_s13  ;;  %vm2724_vm11 = vcmp.lt.s32.totalorder %v2707_v23, 14 }
 0x120   : > { %vm2742_vm9 = vmand %vm2722_vm7, %vm2734_vm3 }
 0x121   : > { %vm2740_vm10 = vmand %vm2721_vm8, %vm2734_vm3 }
 0x122   : > { %vm2746_vm13 = vmand %vm2724_vm11, %vm2734_vm3 }
 0x123   : > { %4040 = vmatmul.mubr.bf16.gmra.mrb[24].mxu0 %v2414_v47 }
 0x1a5   : > { %v3797_v63 = vpop.f32.mrb[0].mxu1 }
 0x1a6   : > { %v1257_v3 = vpop.f32.mrb[1].mxu1 }
 0x1a7   : > { %v3798_v4 = vpop.f32.mrb[2].mxu1 }
 0x1a8   : > { %v1260_v8 = vpop.f32.mrb[3].mxu1 }
 0x1ad   : > { %v3801_v25 = vpop.f32.mrb[4].mxu1 }
 0x1ae   : > { %v1273_v28 = vpop.f32.mrb[5].mxu1 }
 0x1af   : > { %v3802_v29 = vpop.f32.mrb[6].mxu1 }
 0x1b0   : > { %v5106_v30 = vpop.f32.mrb[7].mxu1 }
 0x1b5   : > { %v5108_v44 = vpop.f32.mrb[8].mxu1 }
 0x1b6   : > { %v5110_v48 = vpop.f32.mrb[9].mxu1 }
 0x1b7   : > { %v5112_v55 = vpop.f32.mrb[10].mxu1 }
 0x1b8   : > { %v5114_v57 = vpop.f32.mrb[11].mxu1 }
 0x1bd   : > { %v5117_v10 = vpop.f32.mrb[12].mxu1 }
 0x1be   : > { %v5119_v11 = vpop.f32.mrb[13].mxu1 }
 0x1bf   : > { %v5121_v37 = vpop.f32.mrb[14].mxu1 }
 0x1c0   : > { %v5123_v21 = vpop.f32.mrb[15].mxu1 }
 0x1c6   : > { %v4017_v5 = vpop.f32.mrb[0].mxu0 }
 0x1c7   : > { %v4059_v6 = vadd.f32 %v4017_v5, %v3797_v63  ;;  %v2499_v9 = vpop.f32.mrb[1].mxu0  ;;  %v2706_v63 = vadd.s32 4, %v5125_v26 }
 0x1c8   : > { %v4060_v16 = vadd.f32 %v2499_v9, %v1257_v3  ;;  %v4018_v46 = vpop.f32.mrb[2].mxu0 }
 0x1c9   : > { %v2647_v17 = vadd.f32 %v4059_v6, %v5134_v13  ;;  %v4061_v50 = vadd.f32 %v4018_v46, %v3798_v4  ;;  %v2502_v62 = vpop.f32.mrb[3].mxu0  ;;  %vm2723_vm12 = vcmp.lt.s32.totalorder %v2706_v63, 14 }
 0x1ca   : > { %v2645_v1 = vadd.f32 %v4060_v16, %v5134_v13  ;;  %v4062_v14 = vadd.f32 %v2502_v62, %v1260_v8  ;;  %vm2744_vm14 = vmand %vm2723_vm12, %vm2734_vm3 }
 0x1cb   : > { %v2675_v18 = vmax.f32 %v2647_v17, 0.0  ;;  %v2648_v2 = vadd.f32 %v4061_v50, %v5134_v13 }
 0x1cc   : > { %v2673_v19 = vmax.f32 %v2645_v1, 0.0  ;;  %v2646_v36 = vadd.f32 %v4062_v14, %v5134_v13  ;;  %v2709_v1 = vadd.s32 7, %v5125_v26 }
 0x1cd   : > { %v2676_v27 = vmax.f32 %v2648_v2, 0.0  ;;  %v2821_v41 = vsel %vm2720_vm2, %v2675_v18, 0.0  ;;  %v2708_v2 = vadd.s32 6, %v5125_v26 }
 0x1ce   : > { %v2674_v56 = vmax.f32 %v2646_v36, 0.0  ;;  %v4021_v34 = vpop.f32.mrb[4].mxu0  ;;  %v2819_v22 = vsel %vm2719_vm4, %v2673_v19, 0.0  ;;  %vm2726_vm15 = vcmp.lt.s32.totalorder %v2709_v1, 14 }
 0x1cf   : > { %v2822_v42 = vsel %vm2738_vm5, %v2676_v27, 0.0  ;;  %v4063_v15 = vadd.f32 %v4021_v34, %v3801_v25  ;;  %v2515_v43 = vpop.f32.mrb[5].mxu0  ;;  %vm2725_vm0 = vcmp.lt.s32.totalorder %v2708_v2, 14  ;;  %vm2750_vm1 = vmand %vm2726_vm15, %vm2734_vm3 }
 0x1d0   : > { %v3374_v31 = vpack.c.bf16 %v2822_v42, %v2821_v41  ;;  %v2820_v49 = vsel %vm2736_vm6, %v2674_v56, 0.0  ;;  %v4064_v38 = vadd.f32 %v2515_v43, %v1273_v28  ;;  %v4022_v51 = vpop.f32.mrb[6].mxu0  ;;  %vm2748_vm2 = vmand %vm2725_vm0, %vm2734_vm3 }
 0x1d1   : > { %v3369_v61 = vpack.c.bf16 %v2820_v49, %v2819_v22  ;;  %v2651_v52 = vadd.f32 %v4063_v15, %v5134_v13  ;;  %v4065_v33 = vadd.f32 %v4022_v51, %v3802_v29  ;;  %v2518_v39 = vpop.f32.mrb[7].mxu0 }
 0x1d2   : > { %3436 = vst [vmem:[%s5155_s20 + $0x8] sm:$0xff] %v3374_v31   ;;  %v2649_v53 = vadd.f32 %v4064_v38, %v5134_v13  ;;  %v4066_v12 = vadd.f32 %v2518_v39, %v5106_v30 }
 0x1d3   : > { %3370 = vst [vmem:[%s5155_s20] sm:$0xff] %v3369_v61   ;;  %v2679_v45 = vmax.f32 %v2651_v52, 0.0  ;;  %v2652_v54 = vadd.f32 %v4065_v33, %v5134_v13 }
 0x1d4   : > { %v2677_v58 = vmax.f32 %v2649_v53, 0.0  ;;  %v2650_v7 = vadd.f32 %v4066_v12, %v5134_v13  ;;  %v2711_v53 = vadd.s32 9, %v5125_v26 }
 0x1d5   : > { %v2680_v20 = vmax.f32 %v2652_v54, 0.0  ;;  %v2825_v3 = vsel %vm2722_vm7, %v2679_v45, 0.0  ;;  %v2710_v54 = vadd.s32 8, %v5125_v26 }
 0x1d6   : > { %v2678_v40 = vmax.f32 %v2650_v7, 0.0  ;;  %v4025_v47 = vpop.f32.mrb[8].mxu0  ;;  %v2823_v28 = vsel %vm2721_vm8, %v2677_v58, 0.0  ;;  %vm2728_vm4 = vcmp.lt.s32.totalorder %v2711_v53, 14 }
 0x1d7   : > { %v2826_v4 = vsel %vm2742_vm9, %v2680_v20, 0.0  ;;  %v4067_v8 = vadd.f32 %v4025_v47, %v5108_v44  ;;  %v2531_v25 = vpop.f32.mrb[9].mxu0  ;;  %vm2727_vm5 = vcmp.lt.s32.totalorder %v2710_v54, 14  ;;  %vm2754_vm6 = vmand %vm2728_vm4, %vm2734_vm3 }
 0x1d8   : > { %v3384_v29 = vpack.c.bf16 %v2826_v4, %v2825_v3  ;;  %v2824_v30 = vsel %vm2740_vm10, %v2678_v40, 0.0  ;;  %v4068_v60 = vadd.f32 %v2531_v25, %v5110_v48  ;;  %v4026_v24 = vpop.f32.mrb[10].mxu0  ;;  %vm2752_vm7 = vmand %vm2727_vm5, %vm2734_vm3 }
 0x1d9   : > { %v3379_v59 = vpack.c.bf16 %v2824_v30, %v2823_v28  ;;  %v2655_v5 = vadd.f32 %v4067_v8, %v5134_v13  ;;  %v4069_v6 = vadd.f32 %v4026_v24, %v5112_v55  ;;  %v2534_v9 = vpop.f32.mrb[11].mxu0 }
 0x1da   : > { %3438 = vst [vmem:[%s5155_s20 + $0x18] sm:$0xff] %v3384_v29   ;;  %v2653_v16 = vadd.f32 %v4068_v60, %v5134_v13  ;;  %v4070_v44 = vadd.f32 %v2534_v9, %v5114_v57 }
 0x1db   : > { %3437 = vst [vmem:[%s5155_s20 + $0x10] sm:$0xff] %v3379_v59   ;;  %v2683_v46 = vmax.f32 %v2655_v5, 0.0  ;;  %v2656_v17 = vadd.f32 %v4069_v6, %v5134_v13 }
 0x1dc   : > { %v2681_v50 = vmax.f32 %v2653_v16, 0.0  ;;  %v2654_v48 = vadd.f32 %v4070_v44, %v5134_v13 }
 0x1dd   : > { %v2684_v62 = vmax.f32 %v2656_v17, 0.0  ;;  %v3857_v55 = vpop.f32.mrb[16].mxu1  ;;  %v2829_v19 = vsel %vm2724_vm11, %v2683_v46, 0.0  ;;  %v2713_v17 = vadd.s32 11, %v5125_v26 }
 0x1de   : > { %v2682_v57 = vmax.f32 %v2654_v48, 0.0  ;;  %v4029_v14 = vpop.f32.mrb[12].mxu0  ;;  %v1577_v18 = vpop.f32.mrb[17].mxu1  ;;  %v2827_v34 = vsel %vm2723_vm12, %v2681_v50, 0.0 }
 0x1df   : > { %v2830_v36 = vsel %vm2746_vm13, %v2684_v62, 0.0  ;;  %v4071_v27 = vadd.f32 %v4029_v14, %v5117_v10  ;;  %v2547_v32 = vpop.f32.mrb[13].mxu0  ;;  %v3858_v56 = vpop.f32.mrb[18].mxu1  ;;  %vm2730_vm8 = vcmp.lt.s32.totalorder %v2713_v17, 14 }
 0x1e0   : > { %v3394_v35 = vpack.c.bf16 %v2830_v36, %v2829_v19  ;;  %v2828_v41 = vsel %vm2744_vm14, %v2682_v57, 0.0  ;;  %v4072_v42 = vadd.f32 %v2547_v32, %v5119_v11  ;;  %v4030_v15 = vpop.f32.mrb[14].mxu0  ;;  %v1580_v43 = vpop.f32.mrb[19].mxu1  ;;  %vm2758_vm10 = vmand %vm2730_vm8, %vm2734_vm3 }
 0x1e1   : > { %v3389_v22 = vpack.c.bf16 %v2828_v41, %v2827_v34  ;;  %v2659_v31 = vadd.f32 %v4071_v27, %v5134_v13  ;;  %v4073_v49 = vadd.f32 %v4030_v15, %v5121_v37  ;;  %v2550_v38 = vpop.f32.mrb[15].mxu0 }
 0x1e2   : > { %3440 = vst [vmem:[%s5155_s20 + $0x28] sm:$0xff] %v3394_v35   ;;  %v2657_v10 = vadd.f32 %v4072_v42, %v5134_v13  ;;  %v4074_v51 = vadd.f32 %v2550_v38, %v5123_v21 }
 0x1e3   : > { %3439 = vst [vmem:[%s5155_s20 + $0x20] sm:$0xff] %v3389_v22   ;;  %v2687_v61 = vmax.f32 %v2659_v31, 0.0  ;;  %v2660_v52 = vadd.f32 %v4073_v49, %v5134_v13 }
 0x1e4   : > { %v2685_v11 = vmax.f32 %v2657_v10, 0.0  ;;  %v2658_v33 = vadd.f32 %v4074_v51, %v5134_v13 }
 0x1e5   : > { %v2688_v39 = vmax.f32 %v2660_v52, 0.0  ;;  %v3861_v37 = vpop.f32.mrb[20].mxu1  ;;  %v2833_v58 = vsel %vm2726_vm15, %v2687_v61, 0.0  ;;  %v2715_v61 = vadd.s32 13, %v5125_v26 }
 0x1e6   : > { %v2686_v21 = vmax.f32 %v2658_v33, 0.0  ;;  %v4033_v12 = vpop.f32.mrb[16].mxu0  ;;  %v1593_v45 = vpop.f32.mrb[21].mxu1  ;;  %v2831_v47 = vsel %vm2725_vm0, %v2685_v11, 0.0  ;;  %v2714_v33 = vadd.s32 12, %v5125_v26 }
 0x1e7   : > { %v2834_v7 = vsel %vm2750_vm1, %v2688_v39, 0.0  ;;  %v4075_v20 = vadd.f32 %v4033_v12, %v3857_v55  ;;  %v2563_v23 = vpop.f32.mrb[17].mxu0  ;;  %v3862_v40 = vpop.f32.mrb[22].mxu1  ;;  %v2712_v55 = vadd.s32 10, %v5125_v26  ;;  %vm2732_vm12 = vcmp.lt.s32.totalorder %v2715_v61, 14 }
 0x1e8   : > { %v3404_v63 = vpack.c.bf16 %v2834_v7, %v2833_v58  ;;  %v2832_v3 = vsel %vm2748_vm2, %v2686_v21, 0.0  ;;  %v4076_v4 = vadd.f32 %v2563_v23, %v1577_v18  ;;  %v4034_v8 = vpop.f32.mrb[18].mxu0  ;;  %v1596_v25 = vpop.f32.mrb[23].mxu1  ;;  %vm2731_vm13 = vcmp.lt.s32.totalorder %v2714_v33, 14  ;;  %vm2762_vm14 = vmand %vm2732_vm12, %vm2734_vm3 }
 0x1e9   : > { %v3399_v28 = vpack.c.bf16 %v2832_v3, %v2831_v47  ;;  %v2663_v29 = vadd.f32 %v4075_v20, %v5134_v13  ;;  %v4077_v30 = vadd.f32 %v4034_v8, %v3858_v56  ;;  %v2566_v60 = vpop.f32.mrb[19].mxu0  ;;  %vm2729_vm9 = vcmp.lt.s32.totalorder %v2712_v55, 14  ;;  %vm2760_vm15 = vmand %vm2731_vm13, %vm2734_vm3 }
 0x1ea   : > { %3442 = vst [vmem:[%s5155_s20 + $0x38] sm:$0xff] %v3404_v63   ;;  %v2661_v24 = vadd.f32 %v4076_v4, %v5134_v13  ;;  %v4078_v59 = vadd.f32 %v2566_v60, %v1580_v43  ;;  %vm2756_vm11 = vmand %vm2729_vm9, %vm2734_vm3 }
 0x1eb   : > { %3441 = vst [vmem:[%s5155_s20 + $0x30] sm:$0xff] %v3399_v28   ;;  %v2691_v5 = vmax.f32 %v2663_v29, 0.0  ;;  %v2664_v6 = vadd.f32 %v4077_v30, %v5134_v13 }
 0x1ec   : > { %v2689_v9 = vmax.f32 %v2661_v24, 0.0  ;;  %v2662_v16 = vadd.f32 %v4078_v59, %v5134_v13 }
 0x1ed   : > { %v2692_v44 = vmax.f32 %v2664_v6, 0.0  ;;  %v3865_v46 = vpop.f32.mrb[24].mxu1  ;;  %v2837_v1 = vsel %vm2728_vm4, %v2691_v5, 0.0 }
 0x1ee   : > { %v2690_v50 = vmax.f32 %v2662_v16, 0.0  ;;  %v4037_v48 = vpop.f32.mrb[20].mxu0  ;;  %v1609_v62 = vpop.f32.mrb[25].mxu1  ;;  %v2835_v19 = vsel %vm2727_vm5, %v2689_v9, 0.0 }
 0x1ef   : > { %v2838_v57 = vsel %vm2754_vm6, %v2692_v44, 0.0  ;;  %v4079_v14 = vadd.f32 %v4037_v48, %v3861_v37  ;;  %v2579_v18 = vpop.f32.mrb[21].mxu0  ;;  %v3866_v2 = vpop.f32.mrb[26].mxu1 }
 0x1f0   : > { %v3414_v36 = vpack.c.bf16 %v2838_v57, %v2837_v1  ;;  %v2836_v27 = vsel %vm2752_vm7, %v2690_v50, 0.0  ;;  %v4080_v32 = vadd.f32 %v2579_v18, %v1593_v45  ;;  %v4038_v56 = vpop.f32.mrb[22].mxu0  ;;  %v1612_v34 = vpop.f32.mrb[27].mxu1 }
 0x1f1   : > { %v3409_v35 = vpack.c.bf16 %v2836_v27, %v2835_v19  ;;  %v2667_v41 = vadd.f32 %v4079_v14, %v5134_v13  ;;  %v4081_v42 = vadd.f32 %v4038_v56, %v3862_v40  ;;  %v2582_v15 = vpop.f32.mrb[23].mxu0 }
 0x1f2   : > { %3444 = vst [vmem:[%s5155_s20 + $0x48] sm:$0xff] %v3414_v36   ;;  %v2665_v43 = vadd.f32 %v4080_v32, %v5134_v13  ;;  %v4082_v22 = vadd.f32 %v2582_v15, %v1596_v25 }
 0x1f3   : > { %3443 = vst [vmem:[%s5155_s20 + $0x40] sm:$0xff] %v3409_v35   ;;  %v2695_v31 = vmax.f32 %v2667_v41, 0.0  ;;  %v2668_v49 = vadd.f32 %v4081_v42, %v5134_v13 }
 0x1f4   : > { %v2693_v38 = vmax.f32 %v2665_v43, 0.0  ;;  %v2666_v10 = vadd.f32 %v4082_v22, %v5134_v13 }
 0x1f5   : > { %v2696_v51 = vmax.f32 %v2668_v49, 0.0  ;;  %v2841_v39 = vsel %vm2730_vm8, %v2695_v31, 0.0 }
 0x1f6   : > { %v2694_v52 = vmax.f32 %v2666_v10, 0.0  ;;  %v4041_v11 = vpop.f32.mrb[24].mxu0  ;;  %v2839_v12 = vsel %vm2729_vm9, %v2693_v38, 0.0 }
 0x1f7   : > { %v2842_v37 = vsel %vm2758_vm10, %v2696_v51, 0.0  ;;  %v4083_v53 = vadd.f32 %v4041_v11, %v3865_v46  ;;  %v2595_v21 = vpop.f32.mrb[25].mxu0 }
 0x1f8   : > { %v3424_v45 = vpack.c.bf16 %v2842_v37, %v2841_v39  ;;  %v2840_v54 = vsel %vm2756_vm11, %v2694_v52, 0.0  ;;  %v4084_v58 = vadd.f32 %v2595_v21, %v1609_v62  ;;  %v4042_v7 = vpop.f32.mrb[26].mxu0 }
 0x1f9   : > { %v3419_v20 = vpack.c.bf16 %v2840_v54, %v2839_v12  ;;  %v2671_v23 = vadd.f32 %v4083_v53, %v5134_v13  ;;  %v4085_v40 = vadd.f32 %v4042_v7, %v3866_v2  ;;  %v2598_v47 = vpop.f32.mrb[27].mxu0 }
 0x1fa   : > { %3446 = vst [vmem:[%s5155_s20 + $0x58] sm:$0xff] %v3424_v45   ;;  %v2669_v26 = vadd.f32 %v4084_v58, %v5134_v13  ;;  %v4086_v63 = vadd.f32 %v2598_v47, %v1612_v34 }
 0x1fb   : > { %3445 = vst [vmem:[%s5155_s20 + $0x50] sm:$0xff] %v3419_v20   ;;  %v2699_v3 = vmax.f32 %v2671_v23, 0.0  ;;  %v2672_v4 = vadd.f32 %v4085_v40, %v5134_v13 }
 0x1fc   : > { %v2697_v8 = vmax.f32 %v2669_v26, 0.0  ;;  %v2670_v25 = vadd.f32 %v4086_v63, %v5134_v13 }
 0x1fd   : > { %v2700_v28 = vmax.f32 %v2672_v4, 0.0  ;;  %v2845_v30 = vsel %vm2732_vm12, %v2699_v3, 0.0 }
 0x1fe   : > { %v2698_v29 = vmax.f32 %v2670_v25, 0.0  ;;  %v2843_v24 = vsel %vm2731_vm13, %v2697_v8, 0.0 }
 0x1ff   : > { %v2846_v60 = vsel %vm2762_vm14, %v2700_v28, 0.0 }
 0x200   : > { %v3434_v59 = vpack.c.bf16 %v2846_v60, %v2845_v30  ;;  %v2844_v5 = vsel %vm2760_vm15, %v2698_v29, 0.0 }
 0x201   : > { %v3429_v6 = vpack.c.bf16 %v2844_v5, %v2843_v24 }
 0x202   : > { %3448 = vst [vmem:[%s5155_s20 + $0x68] sm:$0xff] %v3434_v59  }
 0x203   : > { %3447 = vst [vmem:[%s5155_s20 + $0x60] sm:$0xff] %v3429_v6  }
 0x204 PF: > { %s13_s16 = sadd.s32 1, %s4466_s16   ;;  %s5281_s12 = smov %s4458_s14 }
 0x205   : > { %p10_p7 = scmp.ge.s32.totalorder %s13_s16, 6   ;;  %s5282_s13 = smov %s4462_s15 }
 0x206   : > { %s5283_s14 = smov %s5286_s17  ;;  %s5284_s15 = smov %s5290_s18 }
 0x207   :  { %12 = sbr.rel (!%p10_p7) target bundleno = 3 (0x3), region = 71 }

// kernel: ublock_forward.5
= control target key start
LH: loop header
LB: loop body
LE: loop exit
PB: predicated region body
PF: predicated region fallthrough
CT: control target
= control target key end

     0   :  { %s4405_s12 = smov 0   ;;  %s4407_s13 = smov 0   ;;  %s5116_s0 = inlined_call_operand.vmem [shape: bf16[2,448,128], index: 0, kind: input, shape index: {}]   ;;  %s5117_s1 = inlined_call_operand.vmem [shape: bf16[9,128,128], index: 1, kind: input, shape index: {}]   ;;  %s5118_s2 = inlined_call_operand.vmem [shape: f32[1,128], index: 2, kind: input, shape index: {}]   ;;  %s5119_s3 = inlined_call_operand.vmem [shape: bf16[2,14,16,128], index: 3, kind: output, shape index: {}]  }
   0x1   :  { %s4409_s14 = smov 0  }
   0x2 LB: > { %s25_s15 = sadd.s32 1, %s4378_s13  ;;  %p3080_p0 = scmp.ge.s32.totalorder %s4382_s14, 1  ;;  %s4382_s14 = sphi %s4409_s14, %s13_s14   ;;  %s4378_s13 = sphi %s4407_s13, %s5121_s13   ;;  %s4374_s12 = sphi %s4405_s12, %s5120_s12  }
   0x3   : > { %p27_p1 = scmp.ge.s32.totalorder %s25_s15, 2  ;;  %p151_p2 = scmp.lt.s32.totalorder %s4382_s14, 3 }
   0x5   : > { %s5123_s15 = smov (%p27_p1, %s25_s15), 0  ;;  %p152_p3 = pnand %p3080_p0, %p151_p2 }
   0x6   : > { %v4257_v0 = vld [vmem:[%s5117_s1 + $0x40] sm:$0xff] (!%p152_p3)   ;;  %v4259_v2 = vld [vmem:[%s5117_s1 + $0x48] sm:$0xff] (!%p152_p3)   ;;  %p180_p4 = scmp.lt.s32.totalorder (!%p152_p3), %s4374_s12, 1  ;;  %v4261_v4 = vld [vmem:[%s5117_s1 + $0x50] sm:$0xff] (!%p152_p3)   ;;  %vm341_vm0 = vsmask.f32 (!%p152_p3), 7424 }
   0x7   : > { %155 = sbr.rel (%p152_p3) target bundleno = 505 (0x1f9), region = 32  ;;  %v4258_v1 = vld [vmem:[%s5117_s1 + $0x100] sm:$0xff] (!%p152_p3)   ;;  %3626 = vmatprep.subr.bf16.mxu1 (!%p152_p3), %v4257_v0  ;;  %v4260_v3 = vld [vmem:[%s5117_s1 + $0x108] sm:$0xff] (!%p152_p3)   ;;  %v4262_v5 = vld [vmem:[%s5117_s1 + $0x110] sm:$0xff] (!%p152_p3)   ;;  %vm889_vm1 = vcmask (!%p152_p3), 1046528  }
   0x8   : > { %3802 = vmatprep.subr.bf16.mxu0 (!%p152_p3), %v4258_v1  ;;  %3627 = vmatpush3.bf16.msra.mxu1 (!%p152_p3), %v4257_v0  ;;  %v4263_v6 = vld [vmem:[%s5117_s1 + $0x58] sm:$0xff] (!%p152_p3)   ;;  %v4265_v8 = vld [vmem:[%s5117_s1 + $0x60] sm:$0xff] (!%p152_p3)   ;;  %v4267_v10 = vld [vmem:[%s5117_s1 + $0x68] sm:$0xff] (!%p152_p3)  }
   0x9   : > { %3803 = vmatpush3.bf16.msra.mxu0 (!%p152_p3), %v4258_v1  ;;  %3628 = vmatprep.subr.bf16.mxu1 (!%p152_p3), %v4259_v2  ;;  %v4264_v7 = vld [vmem:[%s5117_s1 + $0x118] sm:$0xff] (!%p152_p3)   ;;  %v4266_v9 = vld [vmem:[%s5117_s1 + $0x120] sm:$0xff] (!%p152_p3)   ;;  %v4268_v11 = vld [vmem:[%s5117_s1 + $0x128] sm:$0xff] (!%p152_p3)  }
   0xa   : > { %3804 = vmatprep.subr.bf16.mxu0 (!%p152_p3), %v4260_v3  ;;  %v4269_v14 = vld [vmem:[%s5117_s1 + $0x70] sm:$0xff] (!%p152_p3)   ;;  %v4271_v27 = vld [vmem:[%s5117_s1 + $0x78] sm:$0xff] (!%p152_p3)   ;;  %v4277_v40 = vld [vmem:[%s5117_s1 + $0x140] sm:$0xff] (!%p152_p3)  }
   0xb   : > { %v4270_v16 = vld [vmem:[%s5117_s1 + $0x130] sm:$0xff] (!%p152_p3)   ;;  %v4272_v32 = vld [vmem:[%s5117_s1 + $0x138] sm:$0xff] (!%p152_p3)   ;;  %v4280_v42 = vld [vmem:[%s5117_s1] sm:$0xff] (!%p152_p3)  }
   0xc   : > { %3629 = vmatpush3.bf16.msra.mxu1 (!%p152_p3), %v4259_v2  ;;  %v4278_v49 = vld [vmem:[%s5117_s1 + $0x148] sm:$0xff] (!%p152_p3)   ;;  %v4282_v56 = vld [vmem:[%s5117_s1 + $0x150] sm:$0xff] (!%p152_p3)   ;;  %v4283_v63 = vld [vmem:[%s5117_s1 + $0x158] sm:$0xff] (!%p152_p3)  }
   0xd   : > { %3805 = vmatpush3.bf16.msra.mxu0 (!%p152_p3), %v4260_v3  ;;  %3630 = vmatprep.subr.bf16.mxu1 (!%p152_p3), %v4261_v4  ;;  %v4284_v52 = vld [vmem:[%s5117_s1 + $0x8] sm:$0xff] (!%p152_p3)   ;;  %v4289_v60 = vld [vmem:[%s5117_s1 + $0x10] sm:$0xff] (!%p152_p3)  }
   0xe   : > { %s5125_s12 = smov (!%p180_p4, %s4374_s12), 1  ;;  %3806 = vmatprep.subr.bf16.mxu0 %v4262_v5 }
   0xf   : > { %s4230_s5 = smul.u32 224, %s5125_s12 }
  0x10   : > { %3631 = vmatpush3.bf16.msra.mxu1 %v4261_v4  ;;  %v4294_v4 = vld [vmem:[%s5117_s1 + $0x18] sm:$0xff]   ;;  %s4231_s24 = smul.u32 112, %s5125_s12 }
  0x11   : > { %3807 = vmatpush3.bf16.msra.mxu0 %v4262_v5  ;;  %3632 = vmatprep.subr.bf16.mxu1 %v4263_v6  ;;  %s4462_s18 = scalar_lea.vmem %s5116_s0, %s4230_s5 }
  0x12   : > { %3808 = vmatprep.subr.bf16.mxu0 %v4264_v7  ;;  %v4468_v12 = vld [vmem:[%s4462_s18] sm:$0xff]   ;;  %v4471_v13 = vld [vmem:[%s4462_s18 + $0x8] sm:$0xff]   ;;  %v4477_v15 = vld [vmem:[%s4462_s18 + $0x10] sm:$0xff]   ;;  %s5012_s27 = scalar_lea.vmem %s5119_s3, %s4231_s24 }
  0x13   : > { %v343_v17 = vshrl.u32 %v4468_v12, 16  ;;  %v345_v18 = vshll.u32 %v4468_v12, 16  ;;  %v350_v19 = vshll.u32 %v4471_v13, 16  ;;  %v354_v20 = vshrl.u32 %v4471_v13, 16  ;;  %v4488_v22 = vld [vmem:[%s4462_s18 + $0x18] sm:$0xff]   ;;  %v4496_v31 = vld [vmem:[%s4462_s18 + $0x20] sm:$0xff]  }
  0x14   : > { %3633 = vmatpush3.bf16.msra.mxu1 %v4263_v6  ;;  %v358_v21 = vshll.u32 %v4477_v15, 16  ;;  %v366_v26 = vshll.u32 %v4488_v22, 16  ;;  %v362_v30 = vshrl.u32 %v4477_v15, 16  ;;  %v370_v35 = vshrl.u32 %v4488_v22, 16  ;;  %v4506_v38 = vld [vmem:[%s4462_s18 + $0x28] sm:$0xff]   ;;  %v4516_v45 = vld [vmem:[%s4462_s18 + $0x30] sm:$0xff]  }
  0x15   : > { %3809 = vmatpush3.bf16.msra.mxu0 %v4264_v7  ;;  %3634 = vmatprep.subr.bf16.mxu1 %v4265_v8  ;;  %v347_v23 = vrot.slane %v345_v18, 1  ;;  %v352_v24 = vrot.slane %v350_v19, 1  ;;  %v374_v37 = vshll.u32 %v4496_v31, 16  ;;  %v382_v44 = vshll.u32 %v4506_v38, 16  ;;  %v4536_v54 = vld [vmem:[%s4462_s18 + $0x38] sm:$0xff]   ;;  %v4543_v58 = vld [vmem:[%s4462_s18 + $0x40] sm:$0xff]  }
  0x16   : > { %3810 = vmatprep.subr.bf16.mxu0 %v4266_v9  ;;  %v360_v25 = vrot.slane %v358_v21, 1  ;;  %v368_v36 = vrot.slane %v366_v26, 1  ;;  %v378_v47 = vshrl.u32 %v4496_v31, 16  ;;  %v390_v48 = vshll.u32 %v4516_v45, 16  ;;  %v4569_v7 = vld [vmem:[%s4462_s18 + $0x48] sm:$0xff]   ;;  %v4292_v26 = vld [vmem:[%s5117_s1 + $0x170] sm:$0xff]  }
  0x17   : > { %v348_v28 = vor.u32 %v347_v23, %v343_v17  ;;  %v356_v29 = vor.u32 %v354_v20, %v352_v24  ;;  %v376_v41 = vrot.slane %v374_v37, 1  ;;  %v386_v51 = vshrl.u32 %v4506_v38, 16  ;;  %v4288_v18 = vld [vmem:[%s5117_s1 + $0x168] sm:$0xff]   ;;  %v4590_v20 = vld [vmem:[%s4462_s18 + $0x50] sm:$0xff]   ;;  %v4598_v23 = vld [vmem:[%s4462_s18 + $0x58] sm:$0xff]  }
  0x18   : > { %3635 = vmatpush3.bf16.msra.mxu1 %v4265_v8  ;;  %v364_v39 = vor.u32 %v362_v30, %v360_v25  ;;  %v372_v43 = vor.u32 %v370_v35, %v368_v36  ;;  %v384_v53 = vrot.slane %v382_v44, 1  ;;  %v392_v57 = vrot.slane %v390_v48, 1  ;;  %v4287_v8 = vld [vmem:[%s5117_s1 + $0x160] sm:$0xff]   ;;  %v4301_v21 = vld [vmem:[%s5117_s1 + $0x28] sm:$0xff]   ;;  %v4620_v37 = vld [vmem:[%s4462_s18 + $0x70] sm:$0xf] }
  0x19   : > { %3811 = vmatpush3.bf16.msra.mxu0 %v4266_v9  ;;  %3636 = vmatprep.subr.bf16.mxu1 %v4267_v10  ;;  %v353_v33 = vsel %vm341_vm0, %v348_v28, %v352_v24  ;;  %v361_v34 = vsel %vm341_vm0, %v356_v29, %v360_v25  ;;  %v380_v55 = vor.u32 %v378_v47, %v376_v41  ;;  %v398_v61 = vshll.u32 %v4536_v54, 16  ;;  %v4636_v47 = vld [vmem:[%s4462_s18 + $0x68] sm:$0xff]  }
  0x1a   : > { %3812 = vmatprep.subr.bf16.mxu0 %v4268_v11  ;;  %3642 = vmatprep.mubr.bf16.mxu1 %v353_v33  ;;  %v4519_v46 = vsel %vm341_vm0, %v364_v39, %v368_v36  ;;  %v4527_v50 = vsel %vm341_vm0, %v372_v43, %v376_v41  ;;  %v388_v59 = vor.u32 %v386_v51, %v384_v53  ;;  %v394_v0 = vshrl.u32 %v4516_v45, 16  ;;  %v4293_v33 = vld [vmem:[%s5117_s1 + $0x178] sm:$0xff]  }
  0x1b   : > { %3818 = vmatprep.mubr.bf16.mxu0 %v361_v34  ;;  %v4550_v62 = vsel %vm341_vm0, %v380_v55, %v384_v53  ;;  %v402_v2 = vshrl.u32 %v4536_v54, 16  ;;  %v406_v3 = vshll.u32 %v4543_v58, 16  ;;  %v400_v5 = vrot.slane %v398_v61, 1 }
  0x1c   : > { %3637 = vmatpush3.bf16.msra.mxu1 %v4267_v10  ;;  %v4557_v1 = vsel %vm341_vm0, %v388_v59, %v392_v57  ;;  %v396_v6 = vor.u32 %v394_v0, %v392_v57  ;;  %v414_v17 = vshll.u32 %v4569_v7, 16  ;;  %v893_v28 = vrot.slane %v4477_v15, 1 }
  0x1d   : > { %3813 = vmatpush3.bf16.msra.mxu0 %v4268_v11  ;;  %3638 = vmatprep.subr.bf16.mxu1 %v4269_v14  ;;  %v404_v9 = vor.u32 %v402_v2, %v400_v5  ;;  %v408_v10 = vrot.slane %v406_v3, 1  ;;  %v4297_v11 = vld [vmem:[%s5117_s1 + $0x20] sm:$0xff]   ;;  %v418_v29 = vshrl.u32 %v4569_v7, 16  ;;  %v422_v30 = vshll.u32 %v4590_v20, 16 }
  0x1e   : > { %3814 = vmatprep.subr.bf16.mxu0 %v4270_v16  ;;  %v416_v25 = vrot.slane %v414_v17, 1  ;;  %v430_v35 = vshll.u32 %v4598_v23, 16  ;;  %v895_v44 = vrot.slane %v4488_v22, 1  ;;  %v3113_v48 = vcombine.low %v4620_v37, %v4620_v37 }
  0x1f   : > { %v4586_v19 = vsel %vm341_vm0, %v404_v9, %v408_v10  ;;  %v424_v41 = vrot.slane %v422_v30, 1  ;;  %v897_v53 = vrot.slane %v4496_v31, 1  ;;  %v890_v55 = vrot.slane %v4468_v12, 1  ;;  %v4299_v9 = vld [vmem:[%s5117_s1 + $0x188] sm:$0xff]  }
  0x20   : > { %3639 = vmatpush3.bf16.msra.mxu1 %v4269_v14  ;;  %v4578_v14 = vsel %vm341_vm0, %v396_v6, %v400_v5  ;;  %v420_v43 = vor.u32 %v418_v29, %v416_v25  ;;  %v917_v57 = vrot.slane %v3113_v48, 1  ;;  %v434_v0 = vshrl.u32 %v4598_v23, 16 }
  0x21   : > { %3815 = vmatpush3.bf16.msra.mxu0 %v4270_v16  ;;  %3640 = vmatprep.subr.bf16.mxu1 %v4271_v27  ;;  %v410_v16 = vshrl.u32 %v4543_v58, 16  ;;  %v4667_v3 = vsel %vm889_vm1, %v893_v28, %v895_v44  ;;  %v446_v6 = vshll.u32 %v4636_v47, 16 }
  0x22   : > { %3816 = vmatprep.subr.bf16.mxu0 %v4272_v32 }
  0x23   : > { %v412_v24 = vor.u32 %v410_v16, %v408_v10  ;;  %v899_v16 = vrot.slane %v4506_v38, 1 }
  0x24   : > { %3641 = vmatpush3.bf16.msra.mxu1 %v4271_v27  ;;  %v891_v27 = vrot.slane %v4471_v13, 1 }
  0x25   : > { %3817 = vmatpush3.bf16.msra.mxu0 %v4272_v32  ;;  %3670 = vmatprep.subr.bf16.mxu1 %v4280_v42  ;;  %v4306_v32 = vld [vmem:[%s5117_s1 + $0x30] sm:$0xff]   ;;  %v4617_v36 = vsel %vm341_vm0, %v412_v24, %v416_v25  ;;  %v901_v24 = vrot.slane %v4516_v45, 1 }
  0x26   : > { %3846 = vmatprep.subr.bf16.mxu0 %v4277_v40  ;;  %v4623_v39 = vsel %vm889_vm1, %v891_v27, %v893_v28  ;;  %v4656_v61 = vsel %vm889_vm1, %v890_v55, %v891_v27  ;;  %v454_v27 = vshll.u32 %v3113_v48, 16  ;;  %v4695_v28 = vsel %vm889_vm1, %v897_v53, %v899_v16 }
  0x27   : > { %3643 = vmatmul.mubr.bf16.vlgmr.msra.gmra.mrb[0].mxu1 %v361_v34  ;;  %v426_v34 = vshrl.u32 %v4590_v20, 16  ;;  %v4701_v30 = vsel %vm889_vm1, %v899_v16, %v901_v24  ;;  %v4317_v16 = vld [vmem:[%s5117_s1 + $0x98] sm:$0xff]  }
  0x28   : > { %3819 = vmatmul.mubr.bf16.vlgmr.msra.gmra.mrb[0].mxu0 %v4519_v46  ;;  %3646 = vmatprep.mubr.bf16.mxu1 %v4519_v46 }
  0x29   : > { %3847 = vmatpush3.bf16.msra.mxu0 %v4277_v40  ;;  %3822 = vmatprep.mubr.bf16.mxu0 %v4527_v50  ;;  %v4626_v40 = vld [vmem:[%s4462_s18 + $0x60] sm:$0xff]   ;;  %v428_v51 = vor.u32 %v426_v34, %v424_v41  ;;  %v456_v34 = vrot.slane %v454_v27, 1  ;;  %v4321_v27 = vld [vmem:[%s5117_s1 + $0xa8] sm:$0xff]  }
  0x2a   : > { %3848 = vmatprep.subr.bf16.mxu0 %v4278_v49  ;;  %3671 = vmatpush3.bf16.msra.mxu1 %v4280_v42  ;;  %v4307_v42 = vld [vmem:[%s5117_s1 + $0x38] sm:$0xff]   ;;  %v438_v59 = vshll.u32 %v4626_v40, 16  ;;  %v442_v5 = vshrl.u32 %v4626_v40, 16 }
  0x2b   : > { %3672 = vmatprep.subr.bf16.mxu1 %v4284_v52 }
  0x2c   : > { %v440_v10 = vrot.slane %v438_v59, 1  ;;  %v4316_v59 = vld [vmem:[%s5117_s1 + $0x1b8] sm:$0xff]  }
  0x2d   : > { %3849 = vmatpush3.bf16.msra.mxu0 %v4278_v49  ;;  %v4296_v49 = vld [vmem:[%s5117_s1 + $0x180] sm:$0xff]  }
  0x2e   : > { %3850 = vmatprep.subr.bf16.mxu0 %v4282_v56  ;;  %3673 = vmatpush3.bf16.msra.mxu1 %v4284_v52  ;;  %v432_v52 = vrot.slane %v430_v35, 1  ;;  %v444_v17 = vor.u32 %v442_v5, %v440_v10  ;;  %v903_v35 = vrot.slane %v4536_v54, 1  ;;  %v913_v5 = vrot.slane %v4626_v40, 1 }
  0x2f   : > { %3647 = vmatmul.mubr.bf16.gmra.mrb[4].mxu1 %v4527_v50  ;;  %3674 = vmatprep.subr.bf16.mxu1 %v4289_v60 }
  0x30   : > { %3823 = vmatmul.mubr.bf16.gmra.mrb[4].mxu0 %v4550_v62  ;;  %3650 = vmatprep.mubr.bf16.mxu1 %v4550_v62 }
  0x31   : > { %3851 = vmatpush3.bf16.msra.mxu0 %v4282_v56  ;;  %3826 = vmatprep.mubr.bf16.mxu0 %v4557_v1  ;;  %v4647_v56 = vrot.slane %v4636_v47, 1 }
  0x32   : > { %3852 = vmatprep.subr.bf16.mxu0 %v4283_v63  ;;  %3675 = vmatpush3.bf16.msra.mxu1 %v4289_v60  ;;  %v4653_v60 = vld [vmem:[%s5117_s1 + $0x80] sm:$0xff]  }
  0x33   : > { %3676 = vmatprep.subr.bf16.mxu1 %v4294_v4  ;;  %v4664_v2 = vsel %vm889_vm1, %v4647_v56, %v917_v57 }
  0x35   : > { %3853 = vmatpush3.bf16.msra.mxu0 %v4283_v63  ;;  %v4659_v63 = vsel %vm341_vm0, %v420_v43, %v424_v41  ;;  %v905_v41 = vrot.slane %v4543_v58, 1 }
  0x36   : > { %3854 = vmatprep.subr.bf16.mxu0 %v4287_v8  ;;  %3677 = vmatpush3.bf16.msra.mxu1 %v4294_v4  ;;  %v4670_v4 = vsel %vm341_vm0, %v428_v51, %v432_v52  ;;  %v907_v51 = vrot.slane %v4569_v7, 1 }
  0x37   : > { %3651 = vmatmul.mubr.bf16.gmra.mrb[8].mxu1 %v4557_v1  ;;  %3678 = vmatprep.subr.bf16.mxu1 %v4297_v11  ;;  %v4723_v48 = vsel %vm889_vm1, %v903_v35, %v905_v41 }
  0x38   : > { %3827 = vmatmul.mubr.bf16.gmra.mrb[8].mxu0 %v4578_v14  ;;  %3654 = vmatprep.mubr.bf16.mxu1 %v4578_v14  ;;  %v4737_v55 = vsel %vm889_vm1, %v905_v41, %v907_v51  ;;  %v4327_v41 = vld [vmem:[%s5117_s1 + $0xc0] sm:$0xff]  }
  0x39   : > { %3855 = vmatpush3.bf16.msra.mxu0 %v4287_v8  ;;  %3830 = vmatprep.mubr.bf16.mxu0 %v4586_v19  ;;  %v4675_v8 = vsel %vm889_vm1, %v895_v44, %v897_v53  ;;  %v4720_v44 = vsel %vm889_vm1, %v901_v24, %v903_v35  ;;  %v4313_v53 = vld [vmem:[%s5117_s1 + $0x1b0] sm:$0xff]   ;;  %v4324_v35 = vld [vmem:[%s5117_s1 + $0xb8] sm:$0xff]  }
  0x3a   : > { %3856 = vmatprep.subr.bf16.mxu0 %v4288_v18  ;;  %3679 = vmatpush3.bf16.msra.mxu1 %v4297_v11  ;;  %v436_v11 = vor.u32 %v434_v0, %v432_v52  ;;  %v909_v52 = vrot.slane %v4590_v20, 1  ;;  %v911_v0 = vrot.slane %v4598_v23, 1 }
  0x3b   : > { %3680 = vmatprep.subr.bf16.mxu1 %v4301_v21 }
  0x3c   : > { %v4691_v25 = vsel %vm341_vm0, %v436_v11, %v440_v10  ;;  %v4743_v57 = vsel %vm889_vm1, %v907_v51, %v909_v52  ;;  %v4763_v10 = vsel %vm889_vm1, %v909_v52, %v911_v0  ;;  %v4769_v11 = vsel %vm889_vm1, %v911_v0, %v913_v5  ;;  %v4329_v51 = vld [vmem:[%s5117_s1 + $0xc8] sm:$0xff]   ;;  %v4331_v52 = vld [vmem:[%s5117_s1 + $0xd0] sm:$0xff]   ;;  %v233_v0 = vld [vmem:[%s4462_s18 + $0x7c] sm:$0xf] }
  0x3d   : > { %3857 = vmatpush3.bf16.msra.mxu0 %v4288_v18  ;;  %v448_v18 = vrot.slane %v446_v6, 1  ;;  %v231_v6 = vld [vmem:[%s4462_s18 + $0x74] sm:$0xf] }
  0x3e   : > { %3858 = vmatprep.subr.bf16.mxu0 %v4292_v26  ;;  %3681 = vmatpush3.bf16.msra.mxu1 %v4301_v21  ;;  %v4302_v21 = vld [vmem:[%s5117_s1 + $0x190] sm:$0xff]  }
  0x3f   : > { %3655 = vmatmul.mubr.bf16.gmra.mrb[12].mxu1 %v4586_v19  ;;  %3682 = vmatprep.subr.bf16.mxu1 %v4306_v32  ;;  %v4698_v29 = vsel %vm341_vm0, %v444_v17, %v448_v18  ;;  %v4782_v17 = vld [vmem:[%s4462_s18 + $0x78] sm:$0xf] }
  0x40   : > { %3831 = vmatmul.mubr.bf16.gmra.mrb[12].mxu0 %v4617_v36  ;;  %3658 = vmatprep.mubr.bf16.mxu1 %v4617_v36  ;;  %v4793_v24 = vcombine.low %v4782_v17, %v4782_v17 }
  0x41   : > { %3859 = vmatpush3.bf16.msra.mxu0 %v4292_v26  ;;  %3862 = vmatprep.mubr.bf16.mxu0 %v4623_v39  ;;  %v450_v26 = vshrl.u32 %v4636_v47, 16 }
  0x42   : > { %3860 = vmatprep.subr.bf16.mxu0 %v4293_v33  ;;  %3683 = vmatpush3.bf16.msra.mxu1 %v4306_v32  ;;  %v4308_v32 = vld [vmem:[%s5117_s1 + $0x198] sm:$0xff]  }
  0x43   : > { %3684 = vmatprep.subr.bf16.mxu1 %v4307_v42 }
  0x45   : > { %3861 = vmatpush3.bf16.msra.mxu0 %v4293_v33  ;;  %v4709_v33 = vor.u32 %v450_v26, %v448_v18  ;;  %v4319_v18 = vld [vmem:[%s5117_s1 + $0xa0] sm:$0xff]  }
  0x46   : > { %3890 = vmatprep.subr.bf16.mxu0 %v4296_v49  ;;  %3685 = vmatpush3.bf16.msra.mxu1 %v4307_v42  ;;  %v4309_v42 = vld [vmem:[%s5117_s1 + $0x1a0] sm:$0xff]  }
  0x47   : > { %3659 = vmatmul.mubr.bf16.gmra.mrb[16].mxu1 %v4659_v63  ;;  %3714 = vmatprep.subr.bf16.mxu1 %v4653_v60  ;;  %v457_v43 = vsel %vm341_vm0, %v4709_v33, %v456_v34 }
  0x48   : > { %3863 = vmatmul.mubr.bf16.vlgmr.msra.gmra.mrb[0].mxu0 %v4667_v3  ;;  %3662 = vmatprep.mubr.bf16.mxu1 %v4670_v4 }
  0x49   : > { %3891 = vmatpush3.bf16.msra.mxu0 %v4296_v49  ;;  %3866 = vmatprep.mubr.bf16.mxu0 %v4675_v8  ;;  %v4311_v49 = vld [vmem:[%s5117_s1 + $0x1a8] sm:$0xff]  }
  0x4a   : > { %3892 = vmatprep.subr.bf16.mxu0 %v4299_v9 }
  0x4d   : > { %3893 = vmatpush3.bf16.msra.mxu0 %v4299_v9  ;;  %v4318_v9 = vld [vmem:[%s5117_s1 + $0x1c0] sm:$0xff]  }
  0x4e   : > { %3894 = vmatprep.subr.bf16.mxu0 %v4302_v21 }
  0x4f   : > { %3663 = vmatmul.mubr.bf16.gmra.mrb[20].mxu1 %v4691_v25 }
  0x50   : > { %3867 = vmatmul.mubr.bf16.gmra.mrb[4].mxu0 %v4695_v28  ;;  %3666 = vmatprep.mubr.bf16.mxu1 %v4698_v29 }
  0x51   : > { %3870 = vmatprep.mubr.bf16.mxu0 %v4701_v30  ;;  %3895 = vmatpush3.bf16.msra.mxu0 %v4302_v21  ;;  %v4789_v21 = vsel %vm889_vm1, %v913_v5, %v4647_v56  ;;  %v4340_v5 = vld [vmem:[%s5117_s1 + $0xf0] sm:$0xff]  }
  0x52   : > { %3896 = vmatprep.subr.bf16.mxu0 %v4308_v32 }
  0x55   : > { %3897 = vmatpush3.bf16.msra.mxu0 %v4308_v32  ;;  %v1671_v32 = vrot.slane %v4793_v24, 1 }
  0x56   : > { %3898 = vmatprep.subr.bf16.mxu0 %v4309_v42 }
  0x57   : > { %3667 = vmatmul.mubr.bf16.gmra.mrb[24].mxu1 %v457_v43  ;;  %v4325_v43 = vld [vmem:[%s5117_s1 + $0x1d8] sm:$0xff]  }
  0x58   : > { %3871 = vmatmul.mubr.bf16.gmra.mrb[8].mxu0 %v4720_v44  ;;  %3686 = vmatprep.mubr.bf16.mxu1 %v4468_v12  ;;  %v4312_v12 = vld [vmem:[%s5117_s1 + $0x88] sm:$0xff]  }
  0x59   : > { %3874 = vmatprep.mubr.bf16.mxu0 %v4723_v48  ;;  %3899 = vmatpush3.bf16.msra.mxu0 %v4309_v42  ;;  %v4320_v42 = vld [vmem:[%s5117_s1 + $0x1c8] sm:$0xff]  }
  0x5a   : > { %3900 = vmatprep.subr.bf16.mxu0 %v4311_v49 }
  0x5d   : > { %3901 = vmatpush3.bf16.msra.mxu0 %v4311_v49  ;;  %v4330_v49 = vld [vmem:[%s5117_s1 + $0x1f0] sm:$0xff]  }
  0x5e   : > { %3902 = vmatprep.subr.bf16.mxu0 %v4313_v53 }
  0x5f   : > { %3687 = vmatmul.mubr.bf16.vlgmr.msra.gmra.mrb[0].mxu1 %v4471_v13  ;;  %v4314_v13 = vld [vmem:[%s5117_s1 + $0x90] sm:$0xff]  }
  0x60   : > { %3875 = vmatmul.mubr.bf16.gmra.mrb[12].mxu0 %v4737_v55  ;;  %3690 = vmatprep.mubr.bf16.mxu1 %v4477_v15 }
  0x61   : > { %3878 = vmatprep.mubr.bf16.mxu0 %v4743_v57  ;;  %3715 = vmatpush3.bf16.msra.mxu1 %v4653_v60  ;;  %v4766_v60 = vcombine.low %v4620_v37, %v231_v6  ;;  %v4341_v6 = vld [vmem:[%s5117_s1 + $0xf8] sm:$0xff]  }
  0x62   : > { %3716 = vmatprep.subr.bf16.mxu1 %v4312_v12  ;;  %3903 = vmatpush3.bf16.msra.mxu0 %v4313_v53  ;;  %v4334_v53 = vld [vmem:[%s5117_s1 + $0xd8] sm:$0xff]  }
  0x63   : > { %3904 = vmatprep.subr.bf16.mxu0 %v4316_v59  ;;  %v4779_v37 = vrot.slane %v4766_v60, 1 }
  0x65   : > { %3717 = vmatpush3.bf16.msra.mxu1 %v4312_v12  ;;  %v4798_v26 = vsel %vm889_vm1, %v4647_v56, %v4779_v37  ;;  %v4323_v56 = vld [vmem:[%s5117_s1 + $0xb0] sm:$0xff]   ;;  %v1672_v34 = vsel %vm889_vm1, %v4779_v37, %v1671_v32  ;;  %v4336_v12 = vld [vmem:[%s5117_s1 + $0xe0] sm:$0xff]  }
  0x66   : > { %3718 = vmatprep.subr.bf16.mxu1 %v4314_v13  ;;  %3905 = vmatpush3.bf16.msra.mxu0 %v4316_v59  ;;  %v4338_v59 = vld [vmem:[%s5117_s1 + $0xe8] sm:$0xff]   ;;  %v4353_v32 = vld [vmem:[%s5117_s1 + $0x110] sm:$0xff]  }
  0x67   : > { %3691 = vmatmul.mubr.bf16.gmra.mrb[4].mxu1 %v4488_v22  ;;  %3934 = vmatprep.subr.bf16.mxu0 %v4318_v9 }
  0x68   : > { %3879 = vmatmul.mubr.bf16.gmra.mrb[16].mxu0 %v4763_v10  ;;  %3694 = vmatprep.mubr.bf16.mxu1 %v4496_v31 }
  0x69   : > { %3882 = vmatprep.mubr.bf16.mxu0 %v4769_v11  ;;  %3719 = vmatpush3.bf16.msra.mxu1 %v4314_v13  ;;  %v4890_v13 = vcombine.low %v4782_v17, %v233_v0  ;;  %v4342_v17 = vld [vmem:[%s5117_s1 + $0x218] sm:$0xff]  }
  0x6a   : > { %3720 = vmatprep.subr.bf16.mxu1 %v4317_v16 }
  0x6d   : > { %3721 = vmatpush3.bf16.msra.mxu1 %v4317_v16  ;;  %v4348_v16 = vld [vmem:[%s5117_s1 + $0x100] sm:$0xff]  }
  0x6e   : > { %3722 = vmatprep.subr.bf16.mxu1 %v4319_v18 }
  0x6f   : > { %3695 = vmatmul.mubr.bf16.gmra.mrb[8].mxu1 %v4506_v38 }
  0x70   : > { %3883 = vmatmul.mubr.bf16.gmra.mrb[20].mxu0 %v4789_v21  ;;  %3698 = vmatprep.mubr.bf16.mxu1 %v4516_v45 }
  0x71   : > { %3886 = vmatprep.mubr.bf16.mxu0 %v4798_v26  ;;  %3723 = vmatpush3.bf16.msra.mxu1 %v4319_v18  ;;  %v4350_v18 = vld [vmem:[%s4462_s18 + $0x10] sm:$0xff]  }
  0x72   : > { %3724 = vmatprep.subr.bf16.mxu1 %v4321_v27 }
  0x75   : > { %3725 = vmatpush3.bf16.msra.mxu1 %v4321_v27  ;;  %v1417_v27 = vshll.u32 %v4766_v60, 16 }
  0x76   : > { %3726 = vmatprep.subr.bf16.mxu1 %v4323_v56 }
  0x77   : > { %3699 = vmatmul.mubr.bf16.gmra.mrb[12].mxu1 %v4536_v54 }
  0x78   : > { %3887 = vmatmul.mubr.bf16.gmra.mrb[24].mxu0 %v1672_v34  ;;  %3702 = vmatprep.mubr.bf16.mxu1 %v4543_v58  ;;  %v2159_v34 = vshll.u32 %v4890_v13, 16 }
  0x79   : > { %3906 = vmatprep.mubr.bf16.mxu0 %v4477_v15  ;;  %3727 = vmatpush3.bf16.msra.mxu1 %v4323_v56  ;;  %v4322_v15 = vld [vmem:[%s5117_s1 + $0x1d0] sm:$0xff]   ;;  %v1421_v56 = vshrl.u32 %v4766_v60, 16 }
  0x7a   : > { %3728 = vmatprep.subr.bf16.mxu1 %v4324_v35 }
  0x7d   : > { %3729 = vmatpush3.bf16.msra.mxu1 %v4324_v35  ;;  %v4354_v35 = vld [vmem:[%s4462_s18 + $0x20] sm:$0xff]  }
  0x7e   : > { %3758 = vmatprep.subr.bf16.mxu1 %v4327_v41 }
  0x7f   : > { %3703 = vmatmul.mubr.bf16.gmra.mrb[16].mxu1 %v4569_v7 }
  0x80   : > { %3907 = vmatmul.mubr.bf16.vlgmr.msra.gmra.mrb[0].mxu0 %v4488_v22  ;;  %3706 = vmatprep.mubr.bf16.mxu1 %v4590_v20  ;;  %v4326_v22 = vld [vmem:[%s5117_s1 + $0x1e0] sm:$0xff]  }
  0x81   : > { %3935 = vmatpush3.bf16.msra.mxu0 %v4318_v9  ;;  %3910 = vmatprep.mubr.bf16.mxu0 %v4496_v31  ;;  %v4328_v31 = vld [vmem:[%s5117_s1 + $0x1e8] sm:$0xff]  }
  0x82   : > { %3936 = vmatprep.subr.bf16.mxu0 %v4320_v42  ;;  %v4337_v9 = vld [vmem:[%s5117_s1 + $0x208] sm:$0xff]  }
  0x85   : > { %3937 = vmatpush3.bf16.msra.mxu0 %v4320_v42  ;;  %v4953_v42 = vld [vmem:[%s4462_s18 + $0x80] ss:$0 sps:$4 sm:$0xff]  }
  0x86   : > { %3938 = vmatprep.subr.bf16.mxu0 %v4322_v15 }
  0x87   : > { %3707 = vmatmul.mubr.bf16.gmra.mrb[20].mxu1 %v4598_v23 }
  0x88   : > { %3911 = vmatmul.mubr.bf16.gmra.mrb[4].mxu0 %v4506_v38  ;;  %3710 = vmatprep.mubr.bf16.mxu1 %v4626_v40 }
  0x89   : > { %3914 = vmatprep.mubr.bf16.mxu0 %v4516_v45  ;;  %3939 = vmatpush3.bf16.msra.mxu0 %v4322_v15 }
  0x8a   : > { %3940 = vmatprep.subr.bf16.mxu0 %v4325_v43 }
  0x8d   : > { %3941 = vmatpush3.bf16.msra.mxu0 %v4325_v43  ;;  %v2161_v43 = vrot.slane %v2159_v34, 1 }
  0x8e   : > { %3942 = vmatprep.subr.bf16.mxu0 %v4326_v22 }
  0x8f   : > { %3711 = vmatmul.mubr.bf16.gmra.mrb[28].mxu1 %v4636_v47 }
  0x90   : > { %3915 = vmatmul.mubr.bf16.gmra.mrb[8].mxu0 %v4536_v54  ;;  %3730 = vmatprep.mubr.bf16.mxu1 %v4656_v61  ;;  %v4333_v61 = vld [vmem:[%s5117_s1 + $0x1f8] sm:$0xff]  }
  0x91   : > { %3918 = vmatprep.mubr.bf16.mxu0 %v4543_v58  ;;  %3943 = vmatpush3.bf16.msra.mxu0 %v4326_v22  ;;  %v4355_v22 = vld [vmem:[%s5117_s1 + $0x118] sm:$0xff]  }
  0x92   : > { %3944 = vmatprep.subr.bf16.mxu0 %v4328_v31 }
  0x95   : > { %3945 = vmatpush3.bf16.msra.mxu0 %v4328_v31 }
  0x96   : > { %3946 = vmatprep.subr.bf16.mxu0 %v4330_v49 }
  0x97   : > { %3731 = vmatmul.mubr.bf16.vlgmr.msra.gmra.mrb[0].mxu1 %v4623_v39  ;;  %v4335_v39 = vld [vmem:[%s5117_s1 + $0x200] sm:$0xff]  }
  0x98   : > { %3919 = vmatmul.mubr.bf16.gmra.mrb[12].mxu0 %v4569_v7  ;;  %3734 = vmatprep.mubr.bf16.mxu1 %v4667_v3 }
  0x99   : > { %3922 = vmatprep.mubr.bf16.mxu0 %v4590_v20  ;;  %3759 = vmatpush3.bf16.msra.mxu1 %v4327_v41  ;;  %v1419_v41 = vrot.slane %v1417_v27, 1 }
  0x9a   : > { %3760 = vmatprep.subr.bf16.mxu1 %v4329_v51  ;;  %3947 = vmatpush3.bf16.msra.mxu0 %v4330_v49  ;;  %v2163_v49 = vshrl.u32 %v4890_v13, 16 }
  0x9b   : > { %3948 = vmatprep.subr.bf16.mxu0 %v4333_v61  ;;  %v1423_v15 = vor.u32 %v1421_v56, %v1419_v41  ;;  %v1420_v31 = vsel %vm341_vm0, %v4709_v33, %v1419_v41 }
  0x9d   : > { %3761 = vmatpush3.bf16.msra.mxu1 %v4329_v51  ;;  %v2162_v51 = vsel %vm341_vm0, %v1423_v15, %v2161_v43 }
  0x9e   : > { %3762 = vmatprep.subr.bf16.mxu1 %v4331_v52  ;;  %3949 = vmatpush3.bf16.msra.mxu0 %v4333_v61  ;;  %v4356_v61 = vld [vmem:[%s5117_s1 + $0x120] sm:$0xff]  }
  0x9f   : > { %3735 = vmatmul.mubr.bf16.gmra.mrb[4].mxu1 %v4675_v8  ;;  %3978 = vmatprep.subr.bf16.mxu0 %v4335_v39 }
  0xa0   : > { %3923 = vmatmul.mubr.bf16.gmra.mrb[16].mxu0 %v4598_v23  ;;  %3738 = vmatprep.mubr.bf16.mxu1 %v4695_v28 }
  0xa1   : > { %3926 = vmatprep.mubr.bf16.mxu0 %v4626_v40  ;;  %3763 = vmatpush3.bf16.msra.mxu1 %v4331_v52  ;;  %v2165_v52 = vor.u32 %v2163_v49, %v2161_v43  ;;  %v5035_v49 = vld [vmem:[%s5118_s2] ss:$0 sm:$0xff] }
  0xa2   : > { %3764 = vmatprep.subr.bf16.mxu1 %v4334_v53 }
  0xa5   : > { %3765 = vmatpush3.bf16.msra.mxu1 %v4334_v53 }
  0xa6   : > { %3766 = vmatprep.subr.bf16.mxu1 %v4336_v12 }
  0xa7   : > { %3739 = vmatmul.mubr.bf16.gmra.mrb[8].mxu1 %v4701_v30 }
  0xa8   : > { %3927 = vmatmul.mubr.bf16.gmra.mrb[20].mxu0 %v4636_v47  ;;  %3742 = vmatprep.mubr.bf16.mxu1 %v4720_v44 }
  0xa9   : > { %3930 = vmatprep.mubr.bf16.mxu0 %v4766_v60  ;;  %3767 = vmatpush3.bf16.msra.mxu1 %v4336_v12  ;;  %v4358_v12 = vld [vmem:[%s5117_s1 + $0x130] sm:$0xff]  }
  0xaa   : > { %3768 = vmatprep.subr.bf16.mxu1 %v4338_v59 }
  0xad   : > { %3769 = vmatpush3.bf16.msra.mxu1 %v4338_v59 }
  0xae   : > { %3770 = vmatprep.subr.bf16.mxu1 %v4340_v5 }
  0xaf   : > { %3743 = vmatmul.mubr.bf16.gmra.mrb[12].mxu1 %v4723_v48 }
  0xb0   : > { %3931 = vmatmul.mubr.bf16.gmra.mrb[28].mxu0 %v4890_v13  ;;  %3746 = vmatprep.mubr.bf16.mxu1 %v4737_v55 }
  0xb1   : > { %3950 = vmatprep.mubr.bf16.mxu0 %v4519_v46  ;;  %3771 = vmatpush3.bf16.msra.mxu1 %v4340_v5  ;;  %v4339_v46 = vld [vmem:[%s5117_s1 + $0x210] sm:$0xff]  }
  0xb2   : > { %3772 = vmatprep.subr.bf16.mxu1 %v4341_v6 }
  0xb5   : > { %3773 = vmatpush3.bf16.msra.mxu1 %v4341_v6 }
  0xb6   : > { %4022 = vmatprep.subr.bf16.mxu1 %v4348_v16 }
  0xb7   : > { %3747 = vmatmul.mubr.bf16.gmra.mrb[16].mxu1 %v4743_v57 }
  0xb8   : > { %3951 = vmatmul.mubr.bf16.vlgmr.msra.gmra.mrb[0].mxu0 %v4527_v50  ;;  %3750 = vmatprep.mubr.bf16.mxu1 %v4763_v10  ;;  %v4343_v50 = vld [vmem:[%s5117_s1 + $0x220] sm:$0xff]  }
  0xb9   : > { %3979 = vmatpush3.bf16.msra.mxu0 %v4335_v39  ;;  %3954 = vmatprep.mubr.bf16.mxu0 %v4550_v62  ;;  %v4344_v62 = vld [vmem:[%s5117_s1 + $0x228] sm:$0xff]  }
  0xba   : > { %3980 = vmatprep.subr.bf16.mxu0 %v4337_v9  ;;  %v4357_v39 = vld [vmem:[%s5117_s1 + $0x128] sm:$0xff]  }
  0xbd   : > { %3981 = vmatpush3.bf16.msra.mxu0 %v4337_v9 }
  0xbe   : > { %3982 = vmatprep.subr.bf16.mxu0 %v4339_v46 }
  0xbf   : > { %3751 = vmatmul.mubr.bf16.gmra.mrb[20].mxu1 %v4769_v11 }
  0xc0   : > { %3955 = vmatmul.mubr.bf16.gmra.mrb[4].mxu0 %v4557_v1  ;;  %3754 = vmatprep.mubr.bf16.mxu1 %v4789_v21  ;;  %v4349_v1 = vld [vmem:[%s4462_s18 + $0x8] sm:$0xff]  }
  0xc1   : > { %3958 = vmatprep.mubr.bf16.mxu0 %v4578_v14  ;;  %3983 = vmatpush3.bf16.msra.mxu0 %v4339_v46  ;;  %v4345_v14 = vld [vmem:[%s5117_s1 + $0x230] sm:$0xff]  }
  0xc2   : > { %3984 = vmatprep.subr.bf16.mxu0 %v4342_v17 }
  0xc5   : > { %3985 = vmatpush3.bf16.msra.mxu0 %v4342_v17 }
  0xc6   : > { %3986 = vmatprep.subr.bf16.mxu0 %v4343_v50 }
  0xc7   : > { %3755 = vmatmul.mubr.bf16.gmra.mrb[32].mxu1 %v4664_v2  ;;  %v4347_v2 = vld [vmem:[%s5117_s1 + $0x238] sm:$0xff]  }
  0xc8   : > { %3959 = vmatmul.mubr.bf16.gmra.mrb[8].mxu0 %v4586_v19  ;;  %3774 = vmatprep.mubr.bf16.mxu1 %v4349_v1  ;;  %v4351_v19 = vld [vmem:[%s4462_s18 + $0x18] sm:$0xff]  }
  0xc9   : > { %3962 = vmatprep.mubr.bf16.mxu0 %v4617_v36  ;;  %3987 = vmatpush3.bf16.msra.mxu0 %v4343_v50  ;;  %v4352_v36 = vld [vmem:[%s5117_s1 + $0x108] sm:$0xff]  }
  0xca   : > { %3988 = vmatprep.subr.bf16.mxu0 %v4344_v62 }
  0xcd   : > { %3989 = vmatpush3.bf16.msra.mxu0 %v4344_v62 }
  0xce   : > { %3990 = vmatprep.subr.bf16.mxu0 %v4345_v14 }
  0xcf   : > { %3775 = vmatmul.mubr.bf16.vlgmr.msra.gmra.mrb[0].mxu1 %v4350_v18 }
  0xd0   : > { %3963 = vmatmul.mubr.bf16.gmra.mrb[12].mxu0 %v4659_v63  ;;  %3778 = vmatprep.mubr.bf16.mxu1 %v4351_v19 }
  0xd1   : > { %3966 = vmatprep.mubr.bf16.mxu0 %v4670_v4  ;;  %4030 = vmatpush3.bf16.msra.mxu1 %v4348_v16 }
  0xd2   : > { %4023 = vmatprep.subr.bf16.mxu1 %v4352_v36  ;;  %3991 = vmatpush3.bf16.msra.mxu0 %v4345_v14 }
  0xd3   : > { %3992 = vmatprep.subr.bf16.mxu0 %v4347_v2 }
  0xd5   : > { %4031 = vmatpush3.bf16.msra.mxu1 %v4352_v36 }
  0xd6   : > { %4024 = vmatprep.subr.bf16.mxu1 %v4353_v32  ;;  %3993 = vmatpush3.bf16.msra.mxu0 %v4347_v2 }
  0xd7   : > { %3779 = vmatmul.mubr.bf16.gmra.mrb[4].mxu1 %v4354_v35 }
  0xd8   : > { %3967 = vmatmul.mubr.bf16.gmra.mrb[16].mxu0 %v4691_v25  ;;  %3782 = vmatprep.mubr.bf16.mxu1 %v4506_v38  ;;  %v2167_v38 = vshll.u32 %v4953_v42, 16 }
  0xd9   : > { %3970 = vmatprep.mubr.bf16.mxu0 %v4698_v29  ;;  %4032 = vmatpush3.bf16.msra.mxu1 %v4353_v32 }
  0xda   : > { %4025 = vmatprep.subr.bf16.mxu1 %v4355_v22  ;;  %v2169_v33 = vrot.slane %v2167_v38, 1 }
  0xdc   : > { %v2170_v53 = vsel %vm341_vm0, %v2165_v52, %v2169_v33 }
  0xdd   : > { %4033 = vmatpush3.bf16.msra.mxu1 %v4355_v22 }
  0xde   : > { %4026 = vmatprep.subr.bf16.mxu1 %v4356_v61 }
  0xdf   : > { %3783 = vmatmul.mubr.bf16.gmra.mrb[8].mxu1 %v4516_v45  ;;  %v4359_v45 = vld [vmem:[%s5117_s1 + $0x138] sm:$0xff]  }
  0xe0   : > { %3971 = vmatmul.mubr.bf16.gmra.mrb[20].mxu0 %v1420_v31  ;;  %3786 = vmatprep.mubr.bf16.mxu1 %v4536_v54  ;;  %v1425_v54 = vshll.u32 %v4793_v24, 16 }
  0xe1   : > { %3974 = vmatprep.mubr.bf16.mxu0 %v2162_v51  ;;  %4034 = vmatpush3.bf16.msra.mxu1 %v4356_v61 }
  0xe2   : > { %4027 = vmatprep.subr.bf16.mxu1 %v4357_v39 }
  0xe5   : > { %4035 = vmatpush3.bf16.msra.mxu1 %v4357_v39 }
  0xe6   : > { %4028 = vmatprep.subr.bf16.mxu1 %v4358_v12 }
  0xe7   : > { %3787 = vmatmul.mubr.bf16.gmra.mrb[12].mxu1 %v4543_v58  ;;  %v1427_v58 = vrot.slane %v1425_v54, 1 }
  0xe8   : > { %3975 = vmatmul.mubr.bf16.gmra.mrb[32].mxu0 %v2170_v53  ;;  %3790 = vmatprep.mubr.bf16.mxu1 %v4569_v7  ;;  %v2411_v7 = vrot.slane %v4890_v13, 1 }
  0xe9   : > { %3994 = vmatprep.mubr.bf16.mxu0 %v4667_v3  ;;  %4036 = vmatpush3.bf16.msra.mxu1 %v4358_v12 }
  0xea   : > { %4029 = vmatprep.subr.bf16.mxu1 %v4359_v45 }
  0xed   : > { %4037 = vmatpush3.bf16.msra.mxu1 %v4359_v45 }
  0xef   : > { %3791 = vmatmul.mubr.bf16.gmra.mrb[16].mxu1 %v4590_v20  ;;  %v1428_v20 = vsel %vm341_vm0, %v1423_v15, %v1427_v58 }
  0xf0   : > { %3995 = vmatmul.mubr.bf16.vlgmr.msra.gmra.mrb[0].mxu0 %v4675_v8  ;;  %3794 = vmatprep.mubr.bf16.mxu1 %v4598_v23  ;;  %v2412_v23 = vsel %vm889_vm1, %v4779_v37, %v2411_v7 }
  0xf1   : > { %3998 = vmatprep.mubr.bf16.mxu0 %v4695_v28 }
  0xf7   : > { %3795 = vmatmul.mubr.bf16.gmra.mrb[20].mxu1 %v4626_v40  ;;  %v2413_v40 = vrot.slane %v4953_v42, 1  ;;  %v2716_v42 = vlaneseq }
  0xf8   : > { %3999 = vmatmul.mubr.bf16.gmra.mrb[4].mxu0 %v4701_v30  ;;  %3798 = vmatprep.mubr.bf16.mxu1 %v4636_v47  ;;  %v4384_v30 = vmov 0.0|0.0  }
  0xf9   : > { %4002 = vmatprep.mubr.bf16.mxu0 %v4720_v44  ;;  %v2414_v47 = vsel %vm889_vm1, %v2411_v7, %v2413_v40  ;;  %v3327_v44 = vcombine.low %v4384_v30, %v4384_v30  ;;  %v2717_v43 = vshrl.u32 %v2716_v42, 7 }
  0xfb   : > { %2983 = vst [vmem:[%s5012_s27 + $0x60] sm:$0xf] %v3327_v44  ;;  %2985 = vst [vmem:[%s5012_s27 + $0x68] sm:$0xf] %v3327_v44  ;;  %v5037_v52 = vadd.s32 8, %v2717_v43 }
  0xfd   : > { %vm2734_vm2 = vcmp.lt.s32.totalorder %v5037_v52, 12 }
  0xff   : > { %3799 = vmatmul.mubr.bf16.gmra.mrb[36].mxu1 %v4766_v60 }
 0x100   : > { %4003 = vmatmul.mubr.bf16.gmra.mrb[8].mxu0 %v4723_v48  ;;  %3834 = vmatprep.mubr.bf16.mxu1 %v4659_v63  ;;  %v3328_v48 = vcombine.high %v4384_v30, %v4384_v30 }
 0x101   : > { %4006 = vmatprep.mubr.bf16.mxu0 %v4737_v55 }
 0x102   : > { %2984 = vst [vmem:[%s5012_s27 + $0x64] sm:$0xf] %v3328_v48  ;;  %2986 = vst [vmem:[%s5012_s27 + $0x6c] sm:$0xf] %v3328_v48 }
 0x107   : > { %3835 = vmatmul.mubr.bf16.vlgmr.msra.gmra.mrb[16].mxu1 %v4670_v4 }
 0x108   : > { %4007 = vmatmul.mubr.bf16.gmra.mrb[12].mxu0 %v4743_v57  ;;  %3838 = vmatprep.mubr.bf16.mxu1 %v4691_v25 }
 0x109   : > { %4010 = vmatprep.mubr.bf16.mxu0 %v4763_v10 }
 0x10f   : > { %3839 = vmatmul.mubr.bf16.gmra.mrb[20].mxu1 %v4698_v29 }
 0x110   : > { %4011 = vmatmul.mubr.bf16.gmra.mrb[16].mxu0 %v4769_v11  ;;  %3842 = vmatprep.mubr.bf16.mxu1 %v1420_v31 }
 0x111   : > { %4014 = vmatprep.mubr.bf16.mxu0 %v4789_v21 }
 0x117   : > { %3843 = vmatmul.mubr.bf16.gmra.mrb[40].mxu1 %v1428_v20 }
 0x118   : > { %4015 = vmatmul.mubr.bf16.gmra.mrb[20].mxu0 %v4798_v26 }
 0x119   : > { %4018 = vmatprep.mubr.bf16.mxu0 %v2412_v23 }
 0x120   : > { %4019 = vmatmul.mubr.bf16.gmra.mrb[36].mxu0 %v2414_v47 }
 0x12a   : > { %v3668_v63 = vpop.f32.mrb[24].mxu1 }
 0x12b   : > { %v650_v3 = vpop.f32.mrb[25].mxu1 }
 0x12c   : > { %v3669_v4 = vpop.f32.mrb[26].mxu1 }
 0x12d   : > { %v653_v8 = vpop.f32.mrb[27].mxu1 }
 0x14b   : > { %v3888_v25 = vpop.f32.mrb[24].mxu0 }
 0x14c   : > { %v1853_v28 = vpop.f32.mrb[25].mxu0 }
 0x14d   : > { %v3889_v29 = vpop.f32.mrb[26].mxu0 }
 0x14e   : > { %v1856_v55 = vpop.f32.mrb[27].mxu0 }
 0x162   : > { %v3712_v57 = vpop.f32.mrb[28].mxu1 }
 0x163   : > { %v857_v10 = vpop.f32.mrb[29].mxu1 }
 0x164   : > { %v3713_v60 = vpop.f32.mrb[30].mxu1 }
 0x165   : > { %v860_v11 = vpop.f32.mrb[31].mxu1 }
 0x183   : > { %v3932_v37 = vpop.f32.mrb[28].mxu0 }
 0x184   : > { %v2095_v21 = vpop.f32.mrb[29].mxu0 }
 0x185   : > { %v3933_v24 = vpop.f32.mrb[30].mxu0 }
 0x186   : > { %v2098_v26 = vpop.f32.mrb[31].mxu0 }
 0x19a   : > { %v3756_v59 = vpop.f32.mrb[32].mxu1 }
 0x19b   : > { %v1111_v0 = vpop.f32.mrb[33].mxu1 }
 0x19c   : > { %v3757_v5 = vpop.f32.mrb[34].mxu1 }
 0x19d   : > { %v1114_v13 = vpop.f32.mrb[35].mxu1 }
 0x1a2   : > { %v3776_v6 = vpop.f32.mrb[0].mxu1 }
 0x1a3   : > { %v1257_v9 = vpop.f32.mrb[1].mxu1 }
 0x1a4   : > { %v3777_v16 = vpop.f32.mrb[2].mxu1 }
 0x1a5   : > { %v1260_v46 = vpop.f32.mrb[3].mxu1 }
 0x1aa   : > { %v3780_v17 = vpop.f32.mrb[4].mxu1 }
 0x1ab   : > { %v1273_v50 = vpop.f32.mrb[5].mxu1 }
 0x1ac   : > { %v3781_v62 = vpop.f32.mrb[6].mxu1 }
 0x1ad   : > { %v1276_v1 = vpop.f32.mrb[7].mxu1 }
 0x1b2   : > { %v3784_v14 = vpop.f32.mrb[8].mxu1 }
 0x1b3   : > { %v5018_v18 = vpop.f32.mrb[9].mxu1 }
 0x1b4   : > { %v5020_v2 = vpop.f32.mrb[10].mxu1 }
 0x1b5   : > { %v5022_v19 = vpop.f32.mrb[11].mxu1 }
 0x1ba   : > { %v5024_v36 = vpop.f32.mrb[12].mxu1 }
 0x1bb   : > { %v3976_v27 = vpop.f32.mrb[32].mxu0  ;;  %v5026_v32 = vpop.f32.mrb[13].mxu1 }
 0x1bc   : > { %v2351_v56 = vpop.f32.mrb[33].mxu0  ;;  %v5028_v34 = vpop.f32.mrb[14].mxu1 }
 0x1bd   : > { %v3977_v35 = vpop.f32.mrb[34].mxu0  ;;  %v5030_v41 = vpop.f32.mrb[15].mxu1 }
 0x1be   : > { %v2354_v15 = vpop.f32.mrb[35].mxu0 }
 0x1c3   : > { %v3996_v22 = vpop.f32.mrb[0].mxu0 }
 0x1c4   : > { %v4038_v31 = vadd.f32 %v3996_v22, %v3776_v6  ;;  %v2499_v38 = vpop.f32.mrb[1].mxu0 }
 0x1c5   : > { %v4039_v51 = vadd.f32 %v2499_v38, %v1257_v9  ;;  %v3997_v61 = vpop.f32.mrb[2].mxu0 }
 0x1c6   : > { %v4040_v33 = vadd.f32 %v3997_v61, %v3777_v16  ;;  %v2502_v39 = vpop.f32.mrb[3].mxu0  ;;  %v2647_v53 = vadd.f32 %v4038_v31, %v5035_v49 }
 0x1c7   : > { %v4041_v12 = vadd.f32 %v2502_v39, %v1260_v46  ;;  %v2645_v45 = vadd.f32 %v4039_v51, %v5035_v49 }
 0x1c8   : > { %v2648_v54 = vadd.f32 %v4040_v33, %v5035_v49  ;;  %v2675_v20 = vmax.f32 %v2647_v53, 0.0 }
 0x1c9   : > { %v2646_v58 = vadd.f32 %v4041_v12, %v5035_v49  ;;  %v2673_v47 = vmax.f32 %v2645_v45, 0.0 }
 0x1ca   : > { %v2676_v7 = vmax.f32 %v2648_v54, 0.0 }
 0x1cb   : > { %v2674_v23 = vmax.f32 %v2646_v58, 0.0  ;;  %v4000_v40 = vpop.f32.mrb[4].mxu0 }
 0x1cc   : > { %v2822_v63 = vsel %vm2734_vm2, %v2676_v7, 0.0  ;;  %v4042_v3 = vadd.f32 %v4000_v40, %v3780_v17  ;;  %v2515_v4 = vpop.f32.mrb[5].mxu0 }
 0x1cd   : > { %v3365_v8 = vpack.c.bf16 %v2822_v63, %v2675_v20  ;;  %v2820_v25 = vsel %vm2734_vm2, %v2674_v23, 0.0  ;;  %v4043_v28 = vadd.f32 %v2515_v4, %v1273_v50  ;;  %v4001_v29 = vpop.f32.mrb[6].mxu0 }
 0x1ce   : > { %v3360_v30 = vpack.c.bf16 %v2820_v25, %v2673_v47  ;;  %v4044_v44 = vadd.f32 %v4001_v29, %v3781_v62  ;;  %v2518_v48 = vpop.f32.mrb[7].mxu0  ;;  %v2651_v55 = vadd.f32 %v4042_v3, %v5035_v49 }
 0x1cf   : > { %3417 = vst [vmem:[%s5012_s27 + $0x8] sm:$0xff] %v3365_v8   ;;  %v4045_v57 = vadd.f32 %v2518_v48, %v1276_v1  ;;  %v2649_v10 = vadd.f32 %v4043_v28, %v5035_v49 }
 0x1d0   : > { %3361 = vst [vmem:[%s5012_s27] sm:$0xff] %v3360_v30   ;;  %v2652_v60 = vadd.f32 %v4044_v44, %v5035_v49  ;;  %v2679_v24 = vmax.f32 %v2651_v55, 0.0 }
 0x1d1   : > { %v2650_v11 = vadd.f32 %v4045_v57, %v5035_v49  ;;  %v2677_v5 = vmax.f32 %v2649_v10, 0.0 }
 0x1d2   : > { %v2680_v37 = vmax.f32 %v2652_v60, 0.0  ;;  %v3800_v21 = vpop.f32.mrb[36].mxu1 }
 0x1d3   : > { %v2678_v26 = vmax.f32 %v2650_v11, 0.0  ;;  %v4004_v59 = vpop.f32.mrb[8].mxu0  ;;  %v1353_v0 = vpop.f32.mrb[37].mxu1 }
 0x1d4   : > { %v2826_v13 = vsel %vm2734_vm2, %v2680_v37, 0.0  ;;  %v4046_v6 = vadd.f32 %v4004_v59, %v3784_v14  ;;  %v2531_v9 = vpop.f32.mrb[9].mxu0  ;;  %v3801_v16 = vpop.f32.mrb[38].mxu1 }
 0x1d5   : > { %v3375_v46 = vpack.c.bf16 %v2826_v13, %v2679_v24  ;;  %v2824_v17 = vsel %vm2734_vm2, %v2678_v26, 0.0  ;;  %v4047_v50 = vadd.f32 %v2531_v9, %v5018_v18  ;;  %v4005_v62 = vpop.f32.mrb[10].mxu0  ;;  %v1356_v1 = vpop.f32.mrb[39].mxu1 }
 0x1d6   : > { %v3370_v27 = vpack.c.bf16 %v2824_v17, %v2677_v5  ;;  %v4048_v56 = vadd.f32 %v4005_v62, %v5020_v2  ;;  %v2534_v35 = vpop.f32.mrb[11].mxu0  ;;  %v2655_v42 = vadd.f32 %v4046_v6, %v5035_v49 }
 0x1d7   : > { %3419 = vst [vmem:[%s5012_s27 + $0x18] sm:$0xff] %v3375_v46   ;;  %v4049_v15 = vadd.f32 %v2534_v35, %v5022_v19  ;;  %v2653_v14 = vadd.f32 %v4047_v50, %v5035_v49 }
 0x1d8   : > { %3418 = vst [vmem:[%s5012_s27 + $0x10] sm:$0xff] %v3370_v27   ;;  %v2656_v43 = vadd.f32 %v4048_v56, %v5035_v49  ;;  %v2683_v38 = vmax.f32 %v2655_v42, 0.0 }
 0x1d9   : > { %v2654_v22 = vadd.f32 %v4049_v15, %v5035_v49  ;;  %v2681_v33 = vmax.f32 %v2653_v14, 0.0 }
 0x1da   : > { %v2684_v31 = vmax.f32 %v2656_v43, 0.0  ;;  %v3836_v18 = vpop.f32.mrb[16].mxu1 }
 0x1db   : > { %v2682_v51 = vmax.f32 %v2654_v22, 0.0  ;;  %v4008_v61 = vpop.f32.mrb[12].mxu0  ;;  %v1577_v2 = vpop.f32.mrb[17].mxu1 }
 0x1dc   : > { %v2830_v39 = vsel %vm2734_vm2, %v2684_v31, 0.0  ;;  %v4050_v19 = vadd.f32 %v4008_v61, %v5024_v36  ;;  %v2547_v53 = vpop.f32.mrb[13].mxu0  ;;  %v3837_v12 = vpop.f32.mrb[18].mxu1 }
 0x1dd   : > { %v3385_v45 = vpack.c.bf16 %v2830_v39, %v2683_v38  ;;  %v2828_v54 = vsel %vm2734_vm2, %v2682_v51, 0.0  ;;  %v4051_v58 = vadd.f32 %v2547_v53, %v5026_v32  ;;  %v4009_v7 = vpop.f32.mrb[14].mxu0  ;;  %v1580_v20 = vpop.f32.mrb[19].mxu1 }
 0x1de   : > { %v3380_v23 = vpack.c.bf16 %v2828_v54, %v2681_v33  ;;  %v4052_v40 = vadd.f32 %v4009_v7, %v5028_v34  ;;  %v2550_v47 = vpop.f32.mrb[15].mxu0  ;;  %v2659_v63 = vadd.f32 %v4050_v19, %v5035_v49 }
 0x1df   : > { %3421 = vst [vmem:[%s5012_s27 + $0x28] sm:$0xff] %v3385_v45   ;;  %v4053_v3 = vadd.f32 %v2550_v47, %v5030_v41  ;;  %v2657_v36 = vadd.f32 %v4051_v58, %v5035_v49 }
 0x1e0   : > { %3420 = vst [vmem:[%s5012_s27 + $0x20] sm:$0xff] %v3380_v23   ;;  %v2660_v4 = vadd.f32 %v4052_v40, %v5035_v49  ;;  %v2687_v28 = vmax.f32 %v2659_v63, 0.0 }
 0x1e1   : > { %v2658_v8 = vadd.f32 %v4053_v3, %v5035_v49  ;;  %v2685_v44 = vmax.f32 %v2657_v36, 0.0 }
 0x1e2   : > { %v2688_v25 = vmax.f32 %v2660_v4, 0.0  ;;  %v3840_v32 = vpop.f32.mrb[20].mxu1 }
 0x1e3   : > { %v2686_v29 = vmax.f32 %v2658_v8, 0.0  ;;  %v4012_v30 = vpop.f32.mrb[16].mxu0  ;;  %v1593_v34 = vpop.f32.mrb[21].mxu1 }
 0x1e4   : > { %v2834_v48 = vsel %vm2734_vm2, %v2688_v25, 0.0  ;;  %v4054_v41 = vadd.f32 %v4012_v30, %v3836_v18  ;;  %v2563_v55 = vpop.f32.mrb[17].mxu0  ;;  %v3841_v57 = vpop.f32.mrb[22].mxu1 }
 0x1e5   : > { %v3395_v10 = vpack.c.bf16 %v2834_v48, %v2687_v28  ;;  %v2832_v60 = vsel %vm2734_vm2, %v2686_v29, 0.0  ;;  %v4055_v11 = vadd.f32 %v2563_v55, %v1577_v2  ;;  %v4013_v37 = vpop.f32.mrb[18].mxu0  ;;  %v1596_v21 = vpop.f32.mrb[23].mxu1 }
 0x1e6   : > { %v3390_v24 = vpack.c.bf16 %v2832_v60, %v2685_v44  ;;  %v4056_v26 = vadd.f32 %v4013_v37, %v3837_v12  ;;  %v2566_v59 = vpop.f32.mrb[19].mxu0  ;;  %v2663_v0 = vadd.f32 %v4054_v41, %v5035_v49 }
 0x1e7   : > { %3423 = vst [vmem:[%s5012_s27 + $0x38] sm:$0xff] %v3395_v10   ;;  %v4057_v5 = vadd.f32 %v2566_v59, %v1580_v20  ;;  %v2661_v13 = vadd.f32 %v4055_v11, %v5035_v49 }
 0x1e8   : > { %3422 = vst [vmem:[%s5012_s27 + $0x30] sm:$0xff] %v3390_v24   ;;  %v2664_v6 = vadd.f32 %v4056_v26, %v5035_v49  ;;  %v2691_v17 = vmax.f32 %v2663_v0, 0.0 }
 0x1e9   : > { %v2662_v9 = vadd.f32 %v4057_v5, %v5035_v49  ;;  %v2689_v27 = vmax.f32 %v2661_v13, 0.0 }
 0x1ea   : > { %v2692_v16 = vmax.f32 %v2664_v6, 0.0  ;;  %v3844_v46 = vpop.f32.mrb[40].mxu1 }
 0x1eb   : > { %v2690_v50 = vmax.f32 %v2662_v9, 0.0  ;;  %v4016_v62 = vpop.f32.mrb[20].mxu0  ;;  %v1609_v1 = vpop.f32.mrb[41].mxu1 }
 0x1ec   : > { %v2838_v56 = vsel %vm2734_vm2, %v2692_v16, 0.0  ;;  %v4058_v35 = vadd.f32 %v4016_v62, %v3840_v32  ;;  %v2579_v42 = vpop.f32.mrb[21].mxu0  ;;  %v3845_v15 = vpop.f32.mrb[42].mxu1 }
 0x1ed   : > { %v3405_v14 = vpack.c.bf16 %v2838_v56, %v2691_v17  ;;  %v2836_v43 = vsel %vm2734_vm2, %v2690_v50, 0.0  ;;  %v4059_v22 = vadd.f32 %v2579_v42, %v1593_v34  ;;  %v4017_v31 = vpop.f32.mrb[22].mxu0  ;;  %v1612_v18 = vpop.f32.mrb[43].mxu1 }
 0x1ee   : > { %v3400_v38 = vpack.c.bf16 %v2836_v43, %v2689_v27  ;;  %v4060_v51 = vadd.f32 %v4017_v31, %v3841_v57  ;;  %v2582_v61 = vpop.f32.mrb[23].mxu0  ;;  %v2667_v2 = vadd.f32 %v4058_v35, %v5035_v49 }
 0x1ef   : > { %3425 = vst [vmem:[%s5012_s27 + $0x48] sm:$0xff] %v3405_v14   ;;  %v4061_v33 = vadd.f32 %v2582_v61, %v1596_v21  ;;  %v2665_v39 = vadd.f32 %v4059_v22, %v5035_v49 }
 0x1f0   : > { %3424 = vst [vmem:[%s5012_s27 + $0x40] sm:$0xff] %v3400_v38   ;;  %v2668_v19 = vadd.f32 %v4060_v51, %v5035_v49  ;;  %v2695_v45 = vmax.f32 %v2667_v2, 0.0 }
 0x1f1   : > { %v2666_v53 = vadd.f32 %v4061_v33, %v5035_v49  ;;  %v2693_v7 = vmax.f32 %v2665_v39, 0.0 }
 0x1f2   : > { %v2696_v12 = vmax.f32 %v2668_v19, 0.0 }
 0x1f3   : > { %v2694_v54 = vmax.f32 %v2666_v53, 0.0  ;;  %v4020_v58 = vpop.f32.mrb[36].mxu0 }
 0x1f4   : > { %v2842_v20 = vsel %vm2734_vm2, %v2696_v12, 0.0  ;;  %v2595_v23 = vpop.f32.mrb[37].mxu0 }
 0x1f5   : > { %v3415_v40 = vpack.c.bf16 %v2842_v20, %v2695_v45  ;;  %v2840_v47 = vsel %vm2734_vm2, %v2694_v54, 0.0  ;;  %v4021_v63 = vpop.f32.mrb[38].mxu0 }
 0x1f6   : > { %v3410_v3 = vpack.c.bf16 %v2840_v47, %v2693_v7  ;;  %v2598_v36 = vpop.f32.mrb[39].mxu0 }
 0x1f7   : > { %3427 = vst [vmem:[%s5012_s27 + $0x58] sm:$0xff] %v3415_v40  }
 0x1f8   : > { %3426 = vst [vmem:[%s5012_s27 + $0x50] sm:$0xff] %v3410_v3  }
 0x1f9 PF: > { %s13_s14 = sadd.s32 1, %s4382_s14   ;;  %s5120_s12 = smov %s4378_s13 }
 0x1fa   : > { %p10_p5 = scmp.ge.s32.totalorder %s13_s14, 4   ;;  %s5121_s13 = smov %s5123_s15 }
 0x1fc   :  { %12 = sbr.rel (!%p10_p5) target bundleno = 2 (0x2), region = 71 }

</bundles_post_ra>
